<compile_context>
chip_gen: v5e
topology: v5e:2x2
jax: 0.10.0
libtpu: 0.0.40
codegen_flags: <defaults>
</compile_context>

<pallas_src>
import jax
import jax.numpy as jnp
from jax import lax
from jax.experimental import pallas as pl
from jax.experimental.pallas import tpu as pltpu

BN_EPS = 1e-5                       # PyTorch BatchNorm2d default
VMEM_LIMIT = 48 * 1024 * 1024       # <= ~48 MiB keeps headroom on v7x's 64 MiB VMEM


def _choose_row_block(H, W):
    """Pick an even divisor TH of H targeting an MXU-friendly M = TH*W (>=256)."""
    divs = [d for d in range(2, H + 1, 2) if H % d == 0]
    if not divs:
        return H
    for d in divs:
        if d * W >= 256:
            return d
    return divs[-1]


# ---------------------------------------------------------------------------
# Kernel 1: conv3x3 + bias + ELU + BN-stats + 2x2 max/min pooling
# ---------------------------------------------------------------------------
def conv_elu_stat_pool_kernel(x_top_ref, x_mid_ref, x_bot_ref, w_ref, b_ref,
                              pmax_ref, pmin_ref, stats_ref, y_sc):
    # x_top/x_bot: (1, 1, W, Cin) halo rows (zero-masked at image edges)
    # x_mid      : (1, TH, W, Cin) main rows of this block
    # w_ref      : (9*Cin, Cout)   (dy, dx, cin) folded into K
    # b_ref      : (1, Cout)
    # pmax/pmin  : (1, TH//2, W//2, Cout) pooled max / min of ELU(conv)
    # stats_ref  : (1, 1, 2, Cout)  [sum, sum-of-squares] for this block
    # y_sc       : VMEM scratch (TH, W, Cout)
    TH = x_mid_ref.shape[1]
    W = x_mid_ref.shape[2]
    Cin = x_mid_ref.shape[3]
    Cout = pmax_ref.shape[3]
    hb = pl.program_id(1)
    n_hb = pl.num_programs(1)

    # Assemble TH+2 input rows; zero the halo rows that fall outside the image.
    top = x_top_ref[0] * (hb > 0).astype(jnp.float32)             # (1, W, Cin)
    bot = x_bot_ref[0] * (hb < n_hb - 1).astype(jnp.float32)      # (1, W, Cin)
    rows = jnp.concatenate([top, x_mid_ref[0], bot], axis=0)      # (TH+2, W, Cin)
    zcol = jnp.zeros((TH + 2, 1, Cin), jnp.float32)
    xw = jnp.concatenate([zcol, rows, zcol], axis=1)              # (TH+2, W+2, Cin)

    # im2col patch -> single MXU matmul (9 taps folded into K).
    taps = [xw[dy:dy + TH, dx:dx + W, :] for dy in range(3) for dx in range(3)]
    patch = jnp.concatenate(taps, axis=-1).reshape(TH * W, 9 * Cin)
    y = jnp.dot(patch, w_ref[...], preferred_element_type=jnp.float32)
    y = y + b_ref[...]                                            # (TH*W, Cout)
    # ELU(alpha=1)
    y = jnp.where(y > 0, y, jnp.exp(jnp.minimum(y, 0.0)) - 1.0)

    # Per-block BN statistics (f32 accumulation).
    s = jnp.sum(y, axis=0, keepdims=True)                         # (1, Cout)
    ss = jnp.sum(y * y, axis=0, keepdims=True)                    # (1, Cout)
    stats_ref[0, 0, :, :] = jnp.concatenate([s, ss], axis=0)      # (2, Cout)

    # 2x2 max AND min pooling of the pre-BN activation.
    y_sc[...] = y.reshape(TH, W, Cout)
    ev = y_sc[:, pl.ds(0, W // 2, 2), :]                          # even columns
    od = y_sc[:, pl.ds(1, W // 2, 2), :]                          # odd columns
    wmax = jnp.maximum(ev, od).reshape(TH // 2, 2, W // 2, Cout)
    wmin = jnp.minimum(ev, od).reshape(TH // 2, 2, W // 2, Cout)
    pmax_ref[0, :, :, :] = jnp.maximum(wmax[:, 0], wmax[:, 1])
    pmin_ref[0, :, :, :] = jnp.minimum(wmin[:, 0], wmin[:, 1])


# ---------------------------------------------------------------------------
# Kernel 2: BN affine applied to the pooled tiles (max-pool commutes with the
# per-channel affine up to the sign of scale).
# ---------------------------------------------------------------------------
def bn_pool_select_kernel(pmax_ref, pmin_ref, scale_ref, shift_ref, o_ref):
    mx = pmax_ref[...]
    mn = pmin_ref[...]
    sc = jnp.broadcast_to(scale_ref[...].reshape(1, 1, 1, -1), mx.shape)
    sh = jnp.broadcast_to(shift_ref[...].reshape(1, 1, 1, -1), mx.shape)
    o_ref[...] = jnp.where(sc >= 0.0, mx, mn) * sc + sh


# ---------------------------------------------------------------------------
# Wrapper: layout transposes, weight reshape, BN scale/shift, pallas plumbing.
# ---------------------------------------------------------------------------
@jax.jit
def encoding_block(x_nchw, w_hwio, bias, gamma, beta):
    x = jnp.transpose(x_nchw, (0, 2, 3, 1)).astype(jnp.float32)   # NCHW -> NHWC
    N, H, W, Cin = x.shape
    Cout = w_hwio.shape[-1]
    assert H % 2 == 0 and W % 2 == 0, "MaxPool2d(2,2) expects even H and W"
    TH = _choose_row_block(H, W)
    nH = H // TH
    # TODO(synk): width is not tiled (one TH-row block of the full width must
    # fit VMEM); very wide images additionally need W tiling with a 1-col halo.

    w2 = w_hwio.reshape(9 * Cin, Cout).astype(jnp.float32)        # (dy,dx,cin)->K
    b2 = bias.reshape(1, Cout).astype(jnp.float32)

    pool_shape = (N, H // 2, W // 2, Cout)
    pmax, pmin, stats = pl.pallas_call(
        conv_elu_stat_pool_kernel,
        out_shape=(
            jax.ShapeDtypeStruct(pool_shape, jnp.float32),
            jax.ShapeDtypeStruct(pool_shape, jnp.float32),
            jax.ShapeDtypeStruct((N, nH, 2, Cout), jnp.float32),
        ),
        grid=(N, nH),
        in_specs=[
            # top halo row (row index hb*TH-1, clamped; masked in-kernel at hb==0)
            pl.BlockSpec((1, 1, W, Cin),
                         lambda n, hb: (n, jnp.maximum(hb * TH - 1, 0), 0, 0)),
            # main TH rows of this block
            pl.BlockSpec((1, TH, W, Cin), lambda n, hb: (n, hb, 0, 0)),
            # bottom halo row (row index hb*TH+TH, clamped; masked at last block)
            pl.BlockSpec((1, 1, W, Cin),
                         lambda n, hb: (n, jnp.minimum(hb * TH + TH, H - 1), 0, 0)),
            pl.BlockSpec((9 * Cin, Cout), lambda n, hb: (0, 0)),
            pl.BlockSpec((1, Cout), lambda n, hb: (0, 0)),
        ],
        out_specs=(
            pl.BlockSpec((1, TH // 2, W // 2, Cout), lambda n, hb: (n, hb, 0, 0)),
            pl.BlockSpec((1, TH // 2, W // 2, Cout), lambda n, hb: (n, hb, 0, 0)),
            pl.BlockSpec((1, 1, 2, Cout), lambda n, hb: (n, hb, 0, 0)),
        ),
        scratch_shapes=[pltpu.VMEM((TH, W, Cout), jnp.float32)],
        compiler_params=pltpu.CompilerParams(
            dimension_semantics=("parallel", "parallel"),
            vmem_limit_bytes=VMEM_LIMIT),
    )(x, x, x, w2, b2)

    # BatchNorm training-mode batch statistics (biased variance) from fused sums.
    cnt = float(N * H * W)
    ssum = jnp.sum(stats[:, :, 0, :], axis=(0, 1))                # (Cout,)
    ssq = jnp.sum(stats[:, :, 1, :], axis=(0, 1))                 # (Cout,)
    mean = ssum / cnt
    # single-pass variance in f32; fine at activation-scale magnitudes
    var = jnp.maximum(ssq / cnt - mean * mean, 0.0)
    scale = (gamma.reshape(-1) * lax.rsqrt(var + BN_EPS)).reshape(1, Cout)
    shift = (beta.reshape(-1) - mean * scale.reshape(-1)).reshape(1, Cout)
    # TODO(synk): BatchNorm running_mean/running_var buffer updates are a
    # training-only side effect (do not affect forward output) and are not produced.

    out_nhwc = pl.pallas_call(
        bn_pool_select_kernel,
        out_shape=jax.ShapeDtypeStruct(pool_shape, jnp.float32),
        grid=(N, nH),
        in_specs=[
            pl.BlockSpec((1, TH // 2, W // 2, Cout), lambda n, hb: (n, hb, 0, 0)),
            pl.BlockSpec((1, TH // 2, W // 2, Cout), lambda n, hb: (n, hb, 0, 0)),
            pl.BlockSpec((1, Cout), lambda n, hb: (0, 0)),
            pl.BlockSpec((1, Cout), lambda n, hb: (0, 0)),
        ],
        out_specs=pl.BlockSpec((1, TH // 2, W // 2, Cout),
                               lambda n, hb: (n, hb, 0, 0)),
        compiler_params=pltpu.CompilerParams(
            dimension_semantics=("parallel", "parallel"),
            vmem_limit_bytes=VMEM_LIMIT),
    )(pmax, pmin, scale, shift)

    return jnp.transpose(out_nhwc, (0, 3, 1, 2))                  # NHWC -> NCHW


# ---------------------------------------------------------------------------
# Pure-JAX reference (correctness check only).
# ---------------------------------------------------------------------------
def reference(x_nchw, w_hwio, bias, gamma, beta):
    y = lax.conv_general_dilated(
        x_nchw, w_hwio, window_strides=(1, 1), padding="SAME",
        dimension_numbers=("NCHW", "HWIO", "NCHW"))
    y = y + bias.reshape(1, -1, 1, 1)
    y = jnp.where(y > 0, y, jnp.exp(jnp.minimum(y, 0.0)) - 1.0)            # ELU
    mean = jnp.mean(y, axis=(0, 2, 3), keepdims=True)
    var = jnp.mean((y - mean) ** 2, axis=(0, 2, 3), keepdims=True)         # biased
    y = (y - mean) * lax.rsqrt(var + BN_EPS) * gamma.reshape(1, -1, 1, 1) \
        + beta.reshape(1, -1, 1, 1)
    N, C, H, W = y.shape
    return y.reshape(N, C, H // 2, 2, W // 2, 2).max(axis=(3, 5))          # maxpool


if __name__ == "__main__":
    key = jax.random.PRNGKey(0)
    k1, k2, k3, k4, k5 = jax.random.split(key, 5)

    N, Cin, Cout, H, W = 2, 4, 8, 16, 16
    x = jax.random.normal(k1, (N, Cin, H, W), jnp.float32)                 # NCHW input
    w = jax.random.normal(k2, (3, 3, Cin, Cout), jnp.float32) * 0.1        # HWIO weights
    b = jax.random.normal(k3, (1, Cout), jnp.float32) * 0.1                # conv bias
    # mixed-sign gamma exercises both the max-pool and min-pool selection paths
    gamma = jax.random.normal(k4, (1, Cout), jnp.float32)
    beta = jax.random.normal(k5, (1, Cout), jnp.float32) * 0.1

    out = jax.block_until_ready(encoding_block(x, w, b, gamma, beta))
    ref = reference(x, w, b.reshape(-1), gamma.reshape(-1), beta.reshape(-1))

    assert out.shape == (N, Cout, H // 2, W // 2), out.shape
    assert jnp.allclose(out, ref, atol=1e-3, rtol=1e-3), \
        float(jnp.max(jnp.abs(out - ref)))
    print("KERNEL_OK")
</pallas_src>

<mosaic_0001>
module attributes {stable_mosaic.version = 11 : i64} {
  func.func @conv_elu_stat_pool_kernel(%arg0: i32, %arg1: i32, %arg2: memref<1x1x16x4xf32, #tpu.memory_space<vmem>>, %arg3: memref<1x16x16x4xf32, #tpu.memory_space<vmem>>, %arg4: memref<1x1x16x4xf32, #tpu.memory_space<vmem>>, %arg5: memref<36x8xf32, #tpu.memory_space<vmem>>, %arg6: memref<1x8xf32, #tpu.memory_space<vmem>>, %arg7: memref<1x8x8x8xf32, #tpu.memory_space<vmem>>, %arg8: memref<1x8x8x8xf32, #tpu.memory_space<vmem>>, %arg9: memref<1x1x2x8xf32, #tpu.memory_space<vmem>>, %arg10: memref<16x16x8xf32, #tpu.memory_space<vmem>>) attributes {dimension_semantics = [#tpu.dimension_semantics<parallel>, #tpu.dimension_semantics<parallel>], iteration_bounds = array<i64: 2, 1>, scalar_prefetch = 0 : i64, scratch_operands = 1 : i64, tpu.core_type = #tpu.core_type<tc>, window_params = [{transform_indices = @transform_0, window_bounds = array<i64: 1, 1, 16, 4>}, {transform_indices = @transform_1, window_bounds = array<i64: 1, 16, 16, 4>}, {transform_indices = @transform_2, window_bounds = array<i64: 1, 1, 16, 4>}, {pipeline_mode = #tpu.pipeline_mode<synchronous>, transform_indices = @transform_3, window_bounds = array<i64: 36, 8>}, {pipeline_mode = #tpu.pipeline_mode<synchronous>, transform_indices = @transform_4, window_bounds = array<i64: 1, 8>}, {transform_indices = @transform_5, window_bounds = array<i64: 1, 8, 8, 8>}, {transform_indices = @transform_6, window_bounds = array<i64: 1, 8, 8, 8>}, {transform_indices = @transform_7, window_bounds = array<i64: 1, 1, 2, 8>}]} {
    %c0 = arith.constant 0 : index
    %c0_0 = arith.constant 0 : index
    %c0_1 = arith.constant 0 : index
    %c0_2 = arith.constant 0 : index
    %0 = vector.load %arg2[%c0, %c0_0, %c0_1, %c0_2] : memref<1x1x16x4xf32, #tpu.memory_space<vmem>>, vector<1x1x16x4xf32>
    %1 = vector.shape_cast %0 : vector<1x1x16x4xf32> to vector<1x16x4xf32>
    %c0_i32 = arith.constant 0 : i32
    %2 = arith.cmpi sgt, %arg1, %c0_i32 : i32
    %3 = arith.extui %2 : i1 to i32
    %4 = arith.sitofp %3 : i32 to f32
    %5 = vector.broadcast %4 : f32 to vector<1x16x4xf32>
    %6 = arith.mulf %1, %5 : vector<1x16x4xf32>
    %c0_3 = arith.constant 0 : index
    %c0_4 = arith.constant 0 : index
    %c0_5 = arith.constant 0 : index
    %c0_6 = arith.constant 0 : index
    %7 = vector.load %arg4[%c0_3, %c0_4, %c0_5, %c0_6] : memref<1x1x16x4xf32, #tpu.memory_space<vmem>>, vector<1x1x16x4xf32>
    %8 = vector.shape_cast %7 : vector<1x1x16x4xf32> to vector<1x16x4xf32>
    %c0_i32_7 = arith.constant 0 : i32
    %9 = arith.cmpi slt, %arg1, %c0_i32_7 : i32
    %10 = arith.extui %9 : i1 to i32
    %11 = arith.sitofp %10 : i32 to f32
    %12 = vector.broadcast %11 : f32 to vector<1x16x4xf32>
    %13 = arith.mulf %8, %12 : vector<1x16x4xf32>
    %c0_8 = arith.constant 0 : index
    %c0_9 = arith.constant 0 : index
    %c0_10 = arith.constant 0 : index
    %c0_11 = arith.constant 0 : index
    %14 = vector.load %arg3[%c0_8, %c0_9, %c0_10, %c0_11] : memref<1x16x16x4xf32, #tpu.memory_space<vmem>>, vector<1x16x16x4xf32>
    %15 = vector.shape_cast %14 : vector<1x16x16x4xf32> to vector<16x16x4xf32>
    %16 = tpu.concatenate %6, %15, %13 in 0 : vector<1x16x4xf32>, vector<16x16x4xf32>, vector<1x16x4xf32> -> vector<18x16x4xf32>
    %cst = arith.constant 0.000000e+00 : f32
    %17 = vector.broadcast %cst : f32 to vector<18x1x4xf32>
    %18 = tpu.concatenate %17, %16, %17 in 1 : vector<18x1x4xf32>, vector<18x16x4xf32>, vector<18x1x4xf32> -> vector<18x18x4xf32>
    %19 = vector.extract_strided_slice %18 {offsets = [0, 0, 0], sizes = [16, 16, 4], strides = [1, 1, 1]} : vector<18x18x4xf32> to vector<16x16x4xf32>
    %20 = vector.extract_strided_slice %18 {offsets = [0, 1, 0], sizes = [16, 16, 4], strides = [1, 1, 1]} : vector<18x18x4xf32> to vector<16x16x4xf32>
    %21 = vector.extract_strided_slice %18 {offsets = [0, 2, 0], sizes = [16, 16, 4], strides = [1, 1, 1]} : vector<18x18x4xf32> to vector<16x16x4xf32>
    %22 = vector.extract_strided_slice %18 {offsets = [1, 0, 0], sizes = [16, 16, 4], strides = [1, 1, 1]} : vector<18x18x4xf32> to vector<16x16x4xf32>
    %23 = vector.extract_strided_slice %18 {offsets = [1, 1, 0], sizes = [16, 16, 4], strides = [1, 1, 1]} : vector<18x18x4xf32> to vector<16x16x4xf32>
    %24 = vector.extract_strided_slice %18 {offsets = [1, 2, 0], sizes = [16, 16, 4], strides = [1, 1, 1]} : vector<18x18x4xf32> to vector<16x16x4xf32>
    %25 = vector.extract_strided_slice %18 {offsets = [2, 0, 0], sizes = [16, 16, 4], strides = [1, 1, 1]} : vector<18x18x4xf32> to vector<16x16x4xf32>
    %26 = vector.extract_strided_slice %18 {offsets = [2, 1, 0], sizes = [16, 16, 4], strides = [1, 1, 1]} : vector<18x18x4xf32> to vector<16x16x4xf32>
    %27 = vector.extract_strided_slice %18 {offsets = [2, 2, 0], sizes = [16, 16, 4], strides = [1, 1, 1]} : vector<18x18x4xf32> to vector<16x16x4xf32>
    %28 = tpu.concatenate %19, %20, %21, %22, %23, %24, %25, %26, %27 in 2 : vector<16x16x4xf32>, vector<16x16x4xf32>, vector<16x16x4xf32>, vector<16x16x4xf32>, vector<16x16x4xf32>, vector<16x16x4xf32>, vector<16x16x4xf32>, vector<16x16x4xf32>, vector<16x16x4xf32> -> vector<16x16x36xf32>
    %29 = vector.shape_cast %28 : vector<16x16x36xf32> to vector<256x36xf32>
    %c0_12 = arith.constant 0 : index
    %c0_13 = arith.constant 0 : index
    %30 = vector.load %arg5[%c0_12, %c0_13] : memref<36x8xf32, #tpu.memory_space<vmem>>, vector<36x8xf32>
    %cst_14 = arith.constant dense<0.000000e+00> : vector<256x8xf32>
    %31 = tpu.matmul %29, %30, %cst_14 {dimension_numbers = #tpu.dot_dimension_numbers<[1], [0], [0], [1], [0, 0, 1, 1], [], []>} : vector<256x36xf32>, vector<36x8xf32>, vector<256x8xf32> -> vector<256x8xf32>
    %c0_15 = arith.constant 0 : index
    %c0_16 = arith.constant 0 : index
    %32 = vector.load %arg6[%c0_15, %c0_16] : memref<1x8xf32, #tpu.memory_space<vmem>>, vector<1x8xf32>
    %33 = vector.broadcast %32 : vector<1x8xf32> to vector<256x8xf32>
    %34 = arith.addf %31, %33 : vector<256x8xf32>
    %cst_17 = arith.constant 0.000000e+00 : f32
    %35 = vector.broadcast %cst_17 : f32 to vector<256x8xf32>
    %36 = arith.cmpf ogt, %34, %35 : vector<256x8xf32>
    %cst_18 = arith.constant 0.000000e+00 : f32
    %37 = vector.broadcast %cst_18 : f32 to vector<256x8xf32>
    %38 = arith.minimumf %34, %37 : vector<256x8xf32>
    %39 = math.exp %38 : vector<256x8xf32>
    %cst_19 = arith.constant 1.000000e+00 : f32
    %40 = vector.broadcast %cst_19 : f32 to vector<256x8xf32>
    %41 = arith.subf %39, %40 : vector<256x8xf32>
    %42 = arith.select %36, %34, %41 : vector<256x8xi1>, vector<256x8xf32>
    %cst_20 = arith.constant dense<0.000000e+00> : vector<8xf32>
    %43 = vector.multi_reduction <add>, %42, %cst_20 [0] : vector<256x8xf32> to vector<8xf32>
    %44 = vector.shape_cast %43 : vector<8xf32> to vector<1x8xf32>
    %45 = arith.mulf %42, %42 : vector<256x8xf32>
    %cst_21 = arith.constant dense<0.000000e+00> : vector<8xf32>
    %46 = vector.multi_reduction <add>, %45, %cst_21 [0] : vector<256x8xf32> to vector<8xf32>
    %47 = vector.shape_cast %46 : vector<8xf32> to vector<1x8xf32>
    %48 = tpu.concatenate %44, %47 in 0 : vector<1x8xf32>, vector<1x8xf32> -> vector<2x8xf32>
    %c0_22 = arith.constant 0 : index
    %c0_23 = arith.constant 0 : index
    %c0_24 = arith.constant 0 : index
    %c0_25 = arith.constant 0 : index
    %49 = vector.load %arg9[%c0_22, %c0_23, %c0_24, %c0_25] : memref<1x1x2x8xf32, #tpu.memory_space<vmem>>, vector<1x1x2x8xf32>
    %50 = vector.shape_cast %49 : vector<1x1x2x8xf32> to vector<2x8xf32>
    %51 = vector.shape_cast %48 : vector<2x8xf32> to vector<1x1x2x8xf32>
    tpu.vector_store %arg9[%c0_22, %c0_23, %c0_24, %c0_25], %51 {strides = array<i32>} : memref<1x1x2x8xf32, #tpu.memory_space<vmem>>, vector<1x1x2x8xf32>,
    %52 = vector.shape_cast %42 : vector<256x8xf32> to vector<16x16x8xf32>
    %c0_26 = arith.constant 0 : index
    %c0_27 = arith.constant 0 : index
    %c0_28 = arith.constant 0 : index
    %53 = vector.load %arg10[%c0_26, %c0_27, %c0_28] : memref<16x16x8xf32, #tpu.memory_space<vmem>>, vector<16x16x8xf32>
    tpu.vector_store %arg10[%c0_26, %c0_27, %c0_28], %52 {strides = array<i32>} : memref<16x16x8xf32, #tpu.memory_space<vmem>>, vector<16x16x8xf32>,
    %c0_29 = arith.constant 0 : index
    %c0_30 = arith.constant 0 : index
    %c0_31 = arith.constant 0 : index
    %54 = tpu.strided_load %arg10[%c0_29, %c0_30, %c0_31] {strides = array<i32: 1, 2, 1>} : memref<16x16x8xf32, #tpu.memory_space<vmem>>, vector<16x8x8xf32>
    %c0_32 = arith.constant 0 : index
    %c1 = arith.constant 1 : index
    %c0_33 = arith.constant 0 : index
    %55 = tpu.strided_load %arg10[%c0_32, %c1, %c0_33] {strides = array<i32: 1, 2, 1>} : memref<16x16x8xf32, #tpu.memory_space<vmem>>, vector<16x8x8xf32>
    %56 = arith.maximumf %54, %55 : vector<16x8x8xf32>
    %57 = vector.shape_cast %56 : vector<16x8x8xf32> to vector<8x2x8x8xf32>
    %58 = arith.minimumf %54, %55 : vector<16x8x8xf32>
    %59 = vector.shape_cast %58 : vector<16x8x8xf32> to vector<8x2x8x8xf32>
    %60 = vector.extract_strided_slice %57 {offsets = [0, 0, 0, 0], sizes = [8, 1, 8, 8], strides = [1, 1, 1, 1]} : vector<8x2x8x8xf32> to vector<8x1x8x8xf32>
    %61 = vector.shape_cast %60 : vector<8x1x8x8xf32> to vector<8x8x8xf32>
    %62 = vector.extract_strided_slice %57 {offsets = [0, 1, 0, 0], sizes = [8, 1, 8, 8], strides = [1, 1, 1, 1]} : vector<8x2x8x8xf32> to vector<8x1x8x8xf32>
    %63 = vector.shape_cast %62 : vector<8x1x8x8xf32> to vector<8x8x8xf32>
    %64 = arith.maximumf %61, %63 : vector<8x8x8xf32>
    %c0_34 = arith.constant 0 : index
    %c0_35 = arith.constant 0 : index
    %c0_36 = arith.constant 0 : index
    %c0_37 = arith.constant 0 : index
    %65 = vector.load %arg7[%c0_34, %c0_35, %c0_36, %c0_37] : memref<1x8x8x8xf32, #tpu.memory_space<vmem>>, vector<1x8x8x8xf32>
    %66 = vector.shape_cast %65 : vector<1x8x8x8xf32> to vector<8x8x8xf32>
    %67 = vector.shape_cast %64 : vector<8x8x8xf32> to vector<1x8x8x8xf32>
    tpu.vector_store %arg7[%c0_34, %c0_35, %c0_36, %c0_37], %67 {strides = array<i32>} : memref<1x8x8x8xf32, #tpu.memory_space<vmem>>, vector<1x8x8x8xf32>,
    %68 = vector.extract_strided_slice %59 {offsets = [0, 0, 0, 0], sizes = [8, 1, 8, 8], strides = [1, 1, 1, 1]} : vector<8x2x8x8xf32> to vector<8x1x8x8xf32>
    %69 = vector.shape_cast %68 : vector<8x1x8x8xf32> to vector<8x8x8xf32>
    %70 = vector.extract_strided_slice %59 {offsets = [0, 1, 0, 0], sizes = [8, 1, 8, 8], strides = [1, 1, 1, 1]} : vector<8x2x8x8xf32> to vector<8x1x8x8xf32>
    %71 = vector.shape_cast %70 : vector<8x1x8x8xf32> to vector<8x8x8xf32>
    %72 = arith.minimumf %69, %71 : vector<8x8x8xf32>
    %c0_38 = arith.constant 0 : index
    %c0_39 = arith.constant 0 : index
    %c0_40 = arith.constant 0 : index
    %c0_41 = arith.constant 0 : index
    %73 = vector.load %arg8[%c0_38, %c0_39, %c0_40, %c0_41] : memref<1x8x8x8xf32, #tpu.memory_space<vmem>>, vector<1x8x8x8xf32>
    %74 = vector.shape_cast %73 : vector<1x8x8x8xf32> to vector<8x8x8xf32>
    %75 = vector.shape_cast %72 : vector<8x8x8xf32> to vector<1x8x8x8xf32>
    tpu.vector_store %arg8[%c0_38, %c0_39, %c0_40, %c0_41], %75 {strides = array<i32>} : memref<1x8x8x8xf32, #tpu.memory_space<vmem>>, vector<1x8x8x8xf32>,
    return
  }
  func.func @transform_0(%arg0: i32, %arg1: i32) -> (i32, i32, i32, i32) {
    %c16_i32 = arith.constant 16 : i32
    %0 = arith.muli %arg1, %c16_i32 : i32
    %c1_i32 = arith.constant 1 : i32
    %1 = arith.subi %0, %c1_i32 : i32
    %c0_i32 = arith.constant 0 : i32
    %2 = arith.maxsi %1, %c0_i32 : i32
    %c0_i32_0 = arith.constant 0 : i32
    %c0_i32_1 = arith.constant 0 : i32
    %c0_i32_2 = arith.constant 0 : i32
    return %arg0, %2, %c0_i32_0, %c0_i32_1 : i32, i32, i32, i32
  }
  func.func @transform_1(%arg0: i32, %arg1: i32) -> (i32, i32, i32, i32) {
    %c0_i32 = arith.constant 0 : i32
    %c0_i32_0 = arith.constant 0 : i32
    %c0_i32_1 = arith.constant 0 : i32
    return %arg0, %arg1, %c0_i32, %c0_i32_0 : i32, i32, i32, i32
  }
  func.func @transform_2(%arg0: i32, %arg1: i32) -> (i32, i32, i32, i32) {
    %c16_i32 = arith.constant 16 : i32
    %0 = arith.muli %arg1, %c16_i32 : i32
    %c16_i32_0 = arith.constant 16 : i32
    %1 = arith.addi %0, %c16_i32_0 : i32
    %c15_i32 = arith.constant 15 : i32
    %2 = arith.minsi %1, %c15_i32 : i32
    %c0_i32 = arith.constant 0 : i32
    %c0_i32_1 = arith.constant 0 : i32
    %c0_i32_2 = arith.constant 0 : i32
    return %arg0, %2, %c0_i32, %c0_i32_1 : i32, i32, i32, i32
  }
  func.func @transform_3(%arg0: i32, %arg1: i32) -> (i32, i32) {
    %c0_i32 = arith.constant 0 : i32
    %c0_i32_0 = arith.constant 0 : i32
    %c0_i32_1 = arith.constant 0 : i32
    return %c0_i32, %c0_i32_0 : i32, i32
  }
  func.func @transform_4(%arg0: i32, %arg1: i32) -> (i32, i32) {
    %c0_i32 = arith.constant 0 : i32
    %c0_i32_0 = arith.constant 0 : i32
    %c0_i32_1 = arith.constant 0 : i32
    return %c0_i32, %c0_i32_0 : i32, i32
  }
  func.func @transform_5(%arg0: i32, %arg1: i32) -> (i32, i32, i32, i32) {
    %c0_i32 = arith.constant 0 : i32
    %c0_i32_0 = arith.constant 0 : i32
    %c0_i32_1 = arith.constant 0 : i32
    return %arg0, %arg1, %c0_i32, %c0_i32_0 : i32, i32, i32, i32
  }
  func.func @transform_6(%arg0: i32, %arg1: i32) -> (i32, i32, i32, i32) {
    %c0_i32 = arith.constant 0 : i32
    %c0_i32_0 = arith.constant 0 : i32
    %c0_i32_1 = arith.constant 0 : i32
    return %arg0, %arg1, %c0_i32, %c0_i32_0 : i32, i32, i32, i32
  }
  func.func @transform_7(%arg0: i32, %arg1: i32) -> (i32, i32, i32, i32) {
    %c0_i32 = arith.constant 0 : i32
    %c0_i32_0 = arith.constant 0 : i32
    %c0_i32_1 = arith.constant 0 : i32
    return %arg0, %arg1, %c0_i32, %c0_i32_0 : i32, i32, i32, i32
  }
}

module attributes {stable_mosaic.version = 11 : i64} {
  func.func @bn_pool_select_kernel(%arg0: i32, %arg1: i32, %arg2: memref<1x8x8x8xf32, #tpu.memory_space<vmem>>, %arg3: memref<1x8x8x8xf32, #tpu.memory_space<vmem>>, %arg4: memref<1x8xf32, #tpu.memory_space<vmem>>, %arg5: memref<1x8xf32, #tpu.memory_space<vmem>>, %arg6: memref<1x8x8x8xf32, #tpu.memory_space<vmem>>) attributes {dimension_semantics = [#tpu.dimension_semantics<parallel>, #tpu.dimension_semantics<parallel>], iteration_bounds = array<i64: 2, 1>, scalar_prefetch = 0 : i64, scratch_operands = 0 : i64, tpu.core_type = #tpu.core_type<tc>, window_params = [{transform_indices = @transform_0, window_bounds = array<i64: 1, 8, 8, 8>}, {transform_indices = @transform_1, window_bounds = array<i64: 1, 8, 8, 8>}, {pipeline_mode = #tpu.pipeline_mode<synchronous>, transform_indices = @transform_2, window_bounds = array<i64: 1, 8>}, {pipeline_mode = #tpu.pipeline_mode<synchronous>, transform_indices = @transform_3, window_bounds = array<i64: 1, 8>}, {transform_indices = @transform_4, window_bounds = array<i64: 1, 8, 8, 8>}]} {
    %c0 = arith.constant 0 : index
    %c0_0 = arith.constant 0 : index
    %c0_1 = arith.constant 0 : index
    %c0_2 = arith.constant 0 : index
    %0 = vector.load %arg2[%c0, %c0_0, %c0_1, %c0_2] : memref<1x8x8x8xf32, #tpu.memory_space<vmem>>, vector<1x8x8x8xf32>
    %c0_3 = arith.constant 0 : index
    %c0_4 = arith.constant 0 : index
    %c0_5 = arith.constant 0 : index
    %c0_6 = arith.constant 0 : index
    %1 = vector.load %arg3[%c0_3, %c0_4, %c0_5, %c0_6] : memref<1x8x8x8xf32, #tpu.memory_space<vmem>>, vector<1x8x8x8xf32>
    %c0_7 = arith.constant 0 : index
    %c0_8 = arith.constant 0 : index
    %2 = vector.load %arg4[%c0_7, %c0_8] : memref<1x8xf32, #tpu.memory_space<vmem>>, vector<1x8xf32>
    %3 = vector.shape_cast %2 : vector<1x8xf32> to vector<1x1x1x8xf32>
    %4 = vector.shape_cast %3 : vector<1x1x1x8xf32> to vector<1x1x1x8xf32>
    %5 = vector.broadcast %4 : vector<1x1x1x8xf32> to vector<1x8x8x8xf32>
    %c0_9 = arith.constant 0 : index
    %c0_10 = arith.constant 0 : index
    %6 = vector.load %arg5[%c0_9, %c0_10] : memref<1x8xf32, #tpu.memory_space<vmem>>, vector<1x8xf32>
    %7 = vector.shape_cast %6 : vector<1x8xf32> to vector<1x1x1x8xf32>
    %8 = vector.shape_cast %7 : vector<1x1x1x8xf32> to vector<1x1x1x8xf32>
    %9 = vector.broadcast %8 : vector<1x1x1x8xf32> to vector<1x8x8x8xf32>
    %cst = arith.constant 0.000000e+00 : f32
    %10 = vector.broadcast %cst : f32 to vector<1x8x8x8xf32>
    %11 = arith.cmpf oge, %5, %10 : vector<1x8x8x8xf32>
    %12 = arith.select %11, %0, %1 : vector<1x8x8x8xi1>, vector<1x8x8x8xf32>
    %13 = arith.mulf %12, %5 : vector<1x8x8x8xf32>
    %14 = arith.addf %13, %9 : vector<1x8x8x8xf32>
    %c0_11 = arith.constant 0 : index
    %c0_12 = arith.constant 0 : index
    %c0_13 = arith.constant 0 : index
    %c0_14 = arith.constant 0 : index
    %15 = vector.load %arg6[%c0_11, %c0_12, %c0_13, %c0_14] : memref<1x8x8x8xf32, #tpu.memory_space<vmem>>, vector<1x8x8x8xf32>
    tpu.vector_store %arg6[%c0_11, %c0_12, %c0_13, %c0_14], %14 {strides = array<i32>} : memref<1x8x8x8xf32, #tpu.memory_space<vmem>>, vector<1x8x8x8xf32>,
    return
  }
  func.func @transform_0(%arg0: i32, %arg1: i32) -> (i32, i32, i32, i32) {
    %c0_i32 = arith.constant 0 : i32
    %c0_i32_0 = arith.constant 0 : i32
    %c0_i32_1 = arith.constant 0 : i32
    return %arg0, %arg1, %c0_i32, %c0_i32_0 : i32, i32, i32, i32
  }
  func.func @transform_1(%arg0: i32, %arg1: i32) -> (i32, i32, i32, i32) {
    %c0_i32 = arith.constant 0 : i32
    %c0_i32_0 = arith.constant 0 : i32
    %c0_i32_1 = arith.constant 0 : i32
    return %arg0, %arg1, %c0_i32, %c0_i32_0 : i32, i32, i32, i32
  }
  func.func @transform_2(%arg0: i32, %arg1: i32) -> (i32, i32) {
    %c0_i32 = arith.constant 0 : i32
    %c0_i32_0 = arith.constant 0 : i32
    %c0_i32_1 = arith.constant 0 : i32
    return %c0_i32, %c0_i32_0 : i32, i32
  }
  func.func @transform_3(%arg0: i32, %arg1: i32) -> (i32, i32) {
    %c0_i32 = arith.constant 0 : i32
    %c0_i32_0 = arith.constant 0 : i32
    %c0_i32_1 = arith.constant 0 : i32
    return %c0_i32, %c0_i32_0 : i32, i32
  }
  func.func @transform_4(%arg0: i32, %arg1: i32) -> (i32, i32, i32, i32) {
    %c0_i32 = arith.constant 0 : i32
    %c0_i32_0 = arith.constant 0 : i32
    %c0_i32_1 = arith.constant 0 : i32
    return %arg0, %arg1, %c0_i32, %c0_i32_0 : i32, i32, i32, i32
  }
}

</mosaic_0001>

<bundles_post_ra>
// kernel: encoding_block.3
= control target key start
LH: loop header
LB: loop body
LE: loop exit
PB: predicated region body
PF: predicated region fallthrough
CT: control target
= control target key end

     0   :  { %s527_s15 = smov 0   ;;  %s529_s16 = smov 0   ;;  %s615_s0 = inlined_call_operand.vmem [shape: f32[2,8,8,8], index: 0, kind: input, shape index: {}]   ;;  %s616_s1 = inlined_call_operand.vmem [shape: f32[2,8,8,8], index: 1, kind: input, shape index: {}]   ;;  %s617_s2 = inlined_call_operand.vmem [shape: f32[1,8], index: 2, kind: input, shape index: {}]   ;;  %s618_s3 = inlined_call_operand.vmem [shape: f32[1,8], index: 3, kind: input, shape index: {}]   ;;  %s619_s4 = inlined_call_operand.vmem [shape: f32[2,8,8,8], index: 4, kind: output, shape index: {}]  }
   0x1   :  { %s531_s17 = smov 0  }
   0x2 LB: > { %s26_s18 = sadd.s32 1, %s496_s16  ;;  %p440_p0 = scmp.ge.s32.totalorder %s500_s17, 1  ;;  %s500_s17 = sphi %s531_s17, %s14_s17   ;;  %s496_s16 = sphi %s529_s16, %s621_s16   ;;  %s492_s15 = sphi %s527_s15, %s620_s15  }
   0x3   : > { %p28_p1 = scmp.ge.s32.totalorder %s26_s18, 2  ;;  %p200_p2 = scmp.lt.s32.totalorder %s500_s17, 3 }
   0x5   : > { %s623_s18 = smov (%p28_p1, %s26_s18), 0  ;;  %p201_p3 = pnand %p440_p0, %p200_p2 }
   0x6   : > { %p244_p4 = scmp.lt.s32.totalorder (!%p201_p3), %s492_s15, 1 }
   0x7   : > { %204 = sbr.rel (%p201_p3) target bundleno = 30 (0x1e), region = 36 }
   0xc   : > { %v476_v0 = vld [vmem:[%s617_s2] ss:$0 sm:$0xff]  ;;  %s625_s15 = smov (!%p244_p4, %s492_s15), 1  ;;  %vm322_vm1 = vcmask 64512  }
   0xd   : > { %s449_s21 = sshll.u32 %s625_s15, 6  ;;  %vm297_vm0 = vcmp.ge.f32.partialorder %v476_v0, 0.0  ;;  %v477_v1 = vld [vmem:[%s618_s3] ss:$0 sm:$0xff] }
   0xe   : > { %s551_s24 = scalar_lea.vmem %s615_s0, %s449_s21  ;;  %s556_s27 = scalar_lea.vmem %s616_s1, %s449_s21 }
   0xf   : > { %v273_v2 = vld [vmem:[%s551_s24] sm:$0xff]  ;;  %v274_v4 = vld [vmem:[%s551_s24 + $0x8] sm:$0xff]  ;;  %v275_v7 = vld [vmem:[%s551_s24 + $0x10] sm:$0xff]  ;;  %s576_s6 = scalar_lea.vmem %s619_s4, %s449_s21 }
  0x10   : > { %v281_v3 = vld [vmem:[%s556_s27] sm:$0xff]  ;;  %v282_v6 = vld [vmem:[%s556_s27 + $0x8] sm:$0xff]  ;;  %v283_v8 = vld [vmem:[%s556_s27 + $0x10] sm:$0xff] }
  0x11   : > { %v298_v5 = vsel %vm297_vm0, %v273_v2, %v281_v3  ;;  %v299_v10 = vsel %vm297_vm0, %v274_v4, %v282_v6  ;;  %v300_v11 = vsel %vm297_vm0, %v275_v7, %v283_v8  ;;  %v276_v12 = vld [vmem:[%s551_s24 + $0x18] sm:$0xff]  ;;  %v277_v14 = vld [vmem:[%s551_s24 + $0x20] sm:$0xff]  ;;  %v278_v19 = vld [vmem:[%s551_s24 + $0x28] sm:$0xff] }
  0x12   : > { %v306_v9 = vmul.f32 %v476_v0, %v298_v5  ;;  %v284_v13 = vld [vmem:[%s556_s27 + $0x18] sm:$0xff]  ;;  %v307_v15 = vmul.f32 %v476_v0, %v299_v10  ;;  %v308_v16 = vmul.f32 %v476_v0, %v300_v11  ;;  %v285_v18 = vld [vmem:[%s556_s27 + $0x20] sm:$0xff]  ;;  %v286_v20 = vld [vmem:[%s556_s27 + $0x28] sm:$0xff] }
  0x13   : > { %v301_v17 = vsel %vm297_vm0, %v276_v12, %v284_v13  ;;  %v302_v23 = vsel %vm297_vm0, %v277_v14, %v285_v18  ;;  %v303_v24 = vsel %vm297_vm0, %v278_v19, %v286_v20  ;;  %v279_v25 = vld [vmem:[%s551_s24 + $0x30] sm:$0xff]  ;;  %v280_v27 = vld [vmem:[%s551_s24 + $0x38] sm:$0xff] }
  0x14   : > { %v314_v21 = vadd.f32 %v477_v1, %v306_v9  ;;  %v309_v22 = vmul.f32 %v476_v0, %v301_v17  ;;  %v287_v26 = vld [vmem:[%s556_s27 + $0x30] sm:$0xff]  ;;  %v315_v28 = vadd.f32 %v477_v1, %v307_v15  ;;  %v316_v29 = vadd.f32 %v477_v1, %v308_v16  ;;  %v288_v32 = vld [vmem:[%s556_s27 + $0x38] sm:$0xff] }
  0x15   : > { %v310_v30 = vmul.f32 %v476_v0, %v302_v23  ;;  %v311_v31 = vmul.f32 %v476_v0, %v303_v24  ;;  %v304_v34 = vsel %vm297_vm0, %v279_v25, %v287_v26  ;;  %v305_v35 = vsel %vm297_vm0, %v280_v27, %v288_v32 }
  0x16   : > { %323 = vst.msk [vmem:[%s576_s6] sm:$0xff] %vm322_vm1, %v314_v21  ;;  %v317_v33 = vadd.f32 %v477_v1, %v309_v22  ;;  %v312_v38 = vmul.f32 %v476_v0, %v304_v34  ;;  %v313_v39 = vmul.f32 %v476_v0, %v305_v35 }
  0x17   : > { %324 = vst.msk [vmem:[%s576_s6 + $0x8] sm:$0xff] %vm322_vm1, %v315_v28  ;;  %v318_v36 = vadd.f32 %v477_v1, %v310_v30  ;;  %v319_v37 = vadd.f32 %v477_v1, %v311_v31 }
  0x18   : > { %325 = vst.msk [vmem:[%s576_s6 + $0x10] sm:$0xff] %vm322_vm1, %v316_v29  ;;  %v320_v40 = vadd.f32 %v477_v1, %v312_v38  ;;  %v321_v41 = vadd.f32 %v477_v1, %v313_v39 }
  0x19   : > { %326 = vst.msk [vmem:[%s576_s6 + $0x18] sm:$0xff] %vm322_vm1, %v317_v33 }
  0x1a   : > { %327 = vst.msk [vmem:[%s576_s6 + $0x20] sm:$0xff] %vm322_vm1, %v318_v36 }
  0x1b   : > { %328 = vst.msk [vmem:[%s576_s6 + $0x28] sm:$0xff] %vm322_vm1, %v319_v37 }
  0x1c   : > { %329 = vst.msk [vmem:[%s576_s6 + $0x30] sm:$0xff] %vm322_vm1, %v320_v40 }
  0x1d   : > { %330 = vst.msk [vmem:[%s576_s6 + $0x38] sm:$0xff] %vm322_vm1, %v321_v41 }
  0x1e PF: > { %s14_s17 = sadd.s32 1, %s500_s17   ;;  %s620_s15 = smov %s496_s16 }
  0x1f   : > { %p11_p5 = scmp.ge.s32.totalorder %s14_s17, 4   ;;  %s621_s16 = smov %s623_s18 }
  0x21   :  { %13 = sbr.rel (!%p11_p5) target bundleno = 2 (0x2), region = 69 }

// kernel: encoding_block.2
= control target key start
LH: loop header
LB: loop body
LE: loop exit
PB: predicated region body
PF: predicated region fallthrough
CT: control target
= control target key end

     0   :  { %s3209_s24 = smov 0   ;;  %s3211_s25 = smov 0   ;;  %s5394_s0 = inlined_call_operand.vmem [shape: f32[2,16,16,4], index: 0, kind: input, shape index: {}, may-alias: {0,1,2}]   ;;  %s5395_s1 = inlined_call_operand.vmem [shape: f32[2,16,16,4], index: 1, kind: input, shape index: {}, may-alias: {0,1,2}]   ;;  %s5396_s2 = inlined_call_operand.vmem [shape: f32[2,16,16,4], index: 2, kind: input, shape index: {}, may-alias: {0,1,2}]   ;;  %s5397_s3 = inlined_call_operand.vmem [shape: f32[36,8], index: 3, kind: input, shape index: {}]   ;;  %s5398_s4 = inlined_call_operand.vmem [shape: f32[1,8], index: 4, kind: input, shape index: {}]   ;;  %s5399_s5 = inlined_call_operand.vmem [shape: f32[2,8,8,8], index: 5, kind: output, shape index: {0}]   ;;  %s5400_s6 = inlined_call_operand.vmem [shape: f32[2,8,8,8], index: 6, kind: output, shape index: {1}]   ;;  %s5401_s7 = inlined_call_operand.vmem [shape: f32[2,1,2,8], index: 7, kind: output, shape index: {2}]  }
   0x1   :  { %s3213_s26 = smov 0  }
   0x2 LB: > { %s30_s27 = sadd.s32 1, %s3155_s25  ;;  %p2938_p0 = scmp.ge.s32.totalorder %s3159_s26, 1  ;;  %s3159_s26 = sphi %s3213_s26, %s18_s26   ;;  %s3155_s25 = sphi %s3211_s25, %s5895_s25   ;;  %s3151_s24 = sphi %s3209_s24, %s5894_s24  }
   0x3   : > { %p32_p1 = scmp.ge.s32.totalorder %s30_s27, 2  ;;  %p332_p2 = scmp.lt.s32.totalorder %s3159_s26, 3 }
   0x5   : > { %s5897_s27 = smov (%p32_p1, %s30_s27), 0  ;;  %p333_p3 = pnand %p2938_p0, %p332_p2 }
   0x7   : > { %336 = sbr.rel (%p333_p3) target bundleno = 991 (0x3df), region = 40 }
   0xc   : > { %p419_p4 = scmp.lt.s32.totalorder %s3151_s24, 1  ;;  %vm571_vm0 = vcmask 1040384   ;;  %vm746_vm1 = vcmask 1046528   ;;  %s3161_s12 = smov 4   ;;  %vm923_vm2 = vcmask 1045504   ;;  %vm1700_vm3 = vcmask 31744  }
   0xd   : > { %s3162_s13 = smov 8   ;;  %s3163_s14 = smov 12   ;;  %vm1733_vm4 = vcmask 64512   ;;  %vm1766_vm5 = vcmask 97280   ;;  %vm1799_vm6 = vcmask 130048   ;;  %vm1832_vm7 = vcmask 162816  }
   0xe   : > { %s5899_s24 = smov (!%p419_p4, %s3151_s24), 1  ;;  %s3164_s15 = smov 16   ;;  %vm2070_vm8 = vcmask 1043456   ;;  %vm1865_vm9 = vcmask 195584   ;;  %vm1898_vm10 = vcmask 228352   ;;  %vm1931_vm11 = vcmask 261120  }
   0xf   : > { %s3230_s28 = sshll.u32 %s5899_s24, 8  ;;  %s3165_s16 = smov 20   ;;  %vm1973_vm12 = vcmask 293888  }
  0x10   : > { %s3236_s8 = scalar_lea.vmem %s5395_s1, %s3230_s28  ;;  %s427_s11 = scalar_lea.vmem %s5394_s0, %s3230_s28 }
  0x11   : > { %v505_v0 = vld [vmem:[%s3236_s8 + $0x10] sm:$0xff]  ;;  %v506_v1 = vld [vmem:[%s3236_s8 + $0x18] sm:$0xff]  ;;  %v503_v2 = vld [vmem:[%s3236_s8] sm:$0xff]  ;;  %s3166_s17 = smov 28   ;;  %s3167_s18 = smov 24  }
  0x12   : > { %v578_v3 = vrot.slane %v505_v0, 7  ;;  %v579_v4 = vrot.slane %v506_v1, 7  ;;  %v504_v5 = vld [vmem:[%s3236_s8 + $0x8] sm:$0xff]  ;;  %v575_v6 = vrot.slane %v503_v2, 7  ;;  %v487_v7 = vld [vmem:[%s427_s11] sm:$0xff]  ;;  %v509_v25 = vld [vmem:[%s3236_s8 + $0x30] sm:$0xff] }
  0x13   : > { %v488_v8 = vld [vmem:[%s427_s11 + $0x8] sm:$0xff]  ;;  %v576_v9 = vrot.slane %v504_v5, 7  ;;  %v493_v10 = vmul.f32 0.0, %v487_v7  ;;  %v510_v26 = vld [vmem:[%s3236_s8 + $0x38] sm:$0xff]  ;;  %v507_v30 = vld [vmem:[%s3236_s8 + $0x20] sm:$0xff]  ;;  %v584_v37 = vrot.slane %v509_v25, 7 }
  0x14   : > { %v494_v11 = vmul.f32 0.0, %v488_v8  ;;  %v3247_v12 = vsel %vm571_vm0, %v578_v3, %v579_v4  ;;  %v3250_v13 = vsel %vm571_vm0, 0.0, %v578_v3  ;;  %v3253_v14 = vsel %vm571_vm0, 0.0, %v575_v6  ;;  %v508_v34 = vld [vmem:[%s3236_s8 + $0x28] sm:$0xff]  ;;  %v511_v49 = vld [vmem:[%s3236_s8 + $0x40] sm:$0xff]  ;;  %v513_v3 = vld [vmem:[%s3236_s8 + $0x50] sm:$0xff] }
  0x15   : > { %5530 = vst [vmem:[#allocation3_spill] sm:$0xff] %v3247_v12  ;;  %v757_v15 = vrot.slane %v3250_v13, 1  ;;  %v758_v16 = vrot.slane %v3247_v12, 1  ;;  %v3258_v17 = vsel %vm571_vm0, %v575_v6, %v576_v9  ;;  %v752_v18 = vrot.slane %v3253_v14, 1  ;;  %v512_v50 = vld [vmem:[%s3236_s8 + $0x48] sm:$0xff]  ;;  %v515_v1 = vld [vmem:[%s3236_s8 + $0x60] sm:$0xff] }
  0x16   : > { %5531 = vst [vmem:[#allocation4_spill] sm:$0xff] %v3253_v14  ;;  %v753_v19 = vrot.slane %v3258_v17, 1  ;;  %v572_v20 = vrot.slane %v493_v10, 7  ;;  %v573_v21 = vrot.slane %v494_v11, 7  ;;  %v3263_v22 = vsel %vm571_vm0, %v579_v4, 0.0  ;;  %v516_v2 = vld [vmem:[%s3236_s8 + $0x68] sm:$0xff] }
  0x17   : > { %5532 = vst [vmem:[#allocation5_spill] sm:$0xff] %v3258_v17  ;;  %v3266_v23 = vsel %vm746_vm1, %v757_v15, %v758_v16  ;;  %v3269_v24 = vsel %vm571_vm0, %v576_v9, 0.0  ;;  %v760_v33 = vrot.slane %v3263_v22, 1  ;;  %v585_v38 = vrot.slane %v510_v26, 7  ;;  %v514_v4 = vld [vmem:[%s3236_s8 + $0x58] sm:$0xff]  ;;  %v517_v26 = vld [vmem:[%s3236_s8 + $0x70] sm:$0xff] }
  0x18   : > { %835 = vrot.lane.b32.xlu2 %v3266_v23, %s3161_s12  ;;  %v3276_v27 = vsel %vm746_vm1, %v752_v18, %v753_v19  ;;  %v3279_v28 = vsel %vm571_vm0, %v572_v20, %v573_v21  ;;  %v3282_v29 = vsel %vm571_vm0, 0.0, %v572_v20  ;;  %v755_v35 = vrot.slane %v3269_v24, 1  ;;  %s3168_s19 = smov 32  }
  0x19   : > { %5533 = vst [vmem:[#allocation6_spill] sm:$0xff] %v3279_v28  ;;  %831 = vrot.lane.b32.xlu1 %v3276_v27, %s3161_s12  ;;  %v747_v31 = vrot.slane %v3282_v29, 1  ;;  %v748_v32 = vrot.slane %v3279_v28, 1  ;;  %v3293_v36 = vsel %vm571_vm0, %v573_v21, 0.0  ;;  %v581_v40 = vrot.slane %v507_v30, 7 }
  0x1a   : > { %5534 = vst [vmem:[#allocation7_spill] sm:$0xff] %v3282_v29  ;;  %v582_v41 = vrot.slane %v508_v34, 7  ;;  %v3298_v42 = vsel %vm746_vm1, %v758_v16, %v760_v33  ;;  %v750_v43 = vrot.slane %v3293_v36, 1  ;;  %v3302_v44 = vsel %vm746_vm1, %v753_v19, %v755_v35 }
  0x1b   : > { %v749_v39 = vsel %vm746_vm1, %v747_v31, %v748_v32  ;;  %5535 = vst [vmem:[#allocation8_spill] sm:$0xff] %v3298_v42  ;;  %v3305_v45 = vsel %vm571_vm0, %v584_v37, %v585_v38  ;;  %v3308_v46 = vsel %vm571_vm0, 0.0, %v584_v37  ;;  %v3326_v54 = vsel %vm571_vm0, 0.0, %v581_v40 }
  0x1c   : > { %827 = vrot.lane.b32.xlu0 %v749_v39, %s3161_s12  ;;  %v3311_v47 = vsel %vm571_vm0, %v581_v40, %v582_v41  ;;  %v3314_v48 = vsel %vm571_vm0, %v582_v41, 0.0  ;;  %v751_v51 = vsel %vm746_vm1, %v748_v32, %v750_v43  ;;  %v767_v52 = vrot.slane %v3308_v46, 1  ;;  %5537 = vst [vmem:[#allocation10_spill] sm:$0xff] %v3326_v54  ;;  %v518_v32 = vld [vmem:[%s3236_s8 + $0x78] sm:$0xff] }
  0x1d   : > { %5536 = vst [vmem:[#allocation9_spill] sm:$0xff] %v3311_v47  ;;  %v768_v53 = vrot.slane %v3305_v45, 1  ;;  %v763_v55 = vrot.slane %v3311_v47, 1  ;;  %v765_v56 = vrot.slane %v3314_v48, 1  ;;  %v587_v57 = vrot.slane %v511_v49, 7 }
  0x1e   : > { %v588_v58 = vrot.slane %v512_v50, 7  ;;  %v762_v60 = vrot.slane %v3326_v54, 1  ;;  %v3362_v9 = vsel %vm571_vm0, %v585_v38, 0.0  ;;  %v593_v10 = vrot.slane %v515_v1, 7 }
  0x1f   : > { %v3332_v59 = vsel %vm746_vm1, %v767_v52, %v768_v53  ;;  %v3336_v61 = vsel %vm746_vm1, %v763_v55, %v765_v56  ;;  %v3345_v0 = vsel %vm571_vm0, 0.0, %v587_v57  ;;  %v594_v11 = vrot.slane %v516_v2, 7  ;;  %v522_v56 = vld [vmem:[%s3236_s8 + $0x98] sm:$0xff] }
  0x20   : > { %837 = vrot.lane.b32.xlu2 %v3298_v42, %s3161_s12  ;;  %5538 = vst [vmem:[#allocation11_spill] sm:$0xff] %v3332_v59  ;;  %v3339_v62 = vsel %vm571_vm0, %v587_v57, %v588_v58  ;;  %v3342_v63 = vsel %vm571_vm0, %v588_v58, 0.0  ;;  %v3356_v5 = vsel %vm746_vm1, %v762_v60, %v763_v55  ;;  %v772_v8 = vrot.slane %v3345_v0, 1  ;;  %v521_v55 = vld [vmem:[%s3236_s8 + $0x90] sm:$0xff]  ;;  %v519_v57 = vld [vmem:[%s3236_s8 + $0x80] sm:$0xff]  ;;  %v520_v58 = vld [vmem:[%s3236_s8 + $0x88] sm:$0xff] }
  0x21   : > { %833 = vrot.lane.b32.xlu1 %v3302_v44, %s3161_s12  ;;  %5539 = vst [vmem:[#allocation12_spill] sm:$0xff] %v3339_v62  ;;  %v773_v6 = vrot.slane %v3339_v62, 1  ;;  %v775_v7 = vrot.slane %v3342_v63, 1  ;;  %v590_v15 = vrot.slane %v513_v3, 7  ;;  %v591_v16 = vrot.slane %v514_v4, 7 }
  0x22   : > { %5540 = vst [vmem:[#allocation13_spill] sm:$0xff] %v3345_v0  ;;  %v770_v19 = vrot.slane %v3362_v9, 1  ;;  %v3374_v21 = vsel %vm571_vm0, %v593_v10, %v594_v11  ;;  %v3377_v25 = vsel %vm571_vm0, 0.0, %v593_v10  ;;  %v596_v37 = vrot.slane %v517_v26, 7 }
  0x23   : > { %5541 = vst [vmem:[#allocation14_spill] sm:$0xff] %v3356_v5  ;;  %v3367_v18 = vsel %vm746_vm1, %v773_v6, %v775_v7  ;;  %v3371_v20 = vsel %vm746_vm1, %v772_v8, %v773_v6  ;;  %v3381_v30 = vsel %vm571_vm0, %v590_v15, %v591_v16  ;;  %v3384_v31 = vsel %vm571_vm0, %v591_v16, 0.0 }
  0x24   : > { %829 = vrot.lane.b32.xlu0 %v751_v51, %s3161_s12  ;;  %5542 = vst [vmem:[#allocation15_spill] sm:$0xff] %v3367_v18  ;;  %v3392_v33 = vsel %vm746_vm1, %v768_v53, %v770_v19  ;;  %v782_v34 = vrot.slane %v3377_v25, 1  ;;  %v783_v35 = vrot.slane %v3374_v21, 1  ;;  %v778_v38 = vrot.slane %v3381_v30, 1 }
  0x25   : > { %5543 = vst [vmem:[#allocation16_spill] sm:$0xff] %v3371_v20  ;;  %v780_v39 = vrot.slane %v3384_v31, 1  ;;  %v3399_v40 = vsel %vm571_vm0, 0.0, %v590_v15  ;;  %v597_v41 = vrot.slane %v518_v32, 7  ;;  %v3417_v53 = vsel %vm571_vm0, 0.0, %v596_v37 }
  0x26   : > { %5544 = vst [vmem:[#allocation17_spill] sm:$0xff] %v3392_v33  ;;  %v3404_v43 = vsel %vm746_vm1, %v782_v34, %v783_v35  ;;  %v777_v49 = vrot.slane %v3399_v40, 1  ;;  %v787_v3 = vrot.slane %v3417_v53, 1  ;;  %v3434_v4 = vsel %vm571_vm0, %v594_v11, 0.0 }
  0x27   : > { %5545 = vst [vmem:[#allocation18_spill] sm:$0xff] %v3399_v40  ;;  %v3408_v50 = vsel %vm746_vm1, %v778_v38, %v780_v39  ;;  %v3411_v51 = vsel %vm571_vm0, %v596_v37, %v597_v41  ;;  %v3414_v52 = vsel %vm571_vm0, %v597_v41, 0.0  ;;  %v602_v6 = vrot.slane %v521_v55, 7  ;;  %v523_v37 = vld [vmem:[%s3236_s8 + $0xa0] sm:$0xff] }
  0x28   : > { %843 = vrot.lane.b32.xlu2 %v3332_v59, %s3161_s12  ;;  %5546 = vst [vmem:[#allocation19_spill] sm:$0xff] %v3404_v43  ;;  %v3428_v60 = vsel %vm746_vm1, %v777_v49, %v778_v38  ;;  %v788_v1 = vrot.slane %v3411_v51, 1  ;;  %v790_v2 = vrot.slane %v3414_v52, 1  ;;  %v603_v7 = vrot.slane %v522_v56, 7  ;;  %v524_v38 = vld [vmem:[%s3236_s8 + $0xa8] sm:$0xff] }
  0x29   : > { %841 = vrot.lane.b32.xlu1 %v3336_v61, %s3161_s12  ;;  %5547 = vst [vmem:[#allocation20_spill] sm:$0xff] %v3408_v50  ;;  %v599_v8 = vrot.slane %v519_v57, 7  ;;  %v600_v10 = vrot.slane %v520_v58, 7  ;;  %v785_v16 = vrot.slane %v3434_v4, 1  ;;  %v3449_v11 = vsel %vm571_vm0, 0.0, %v602_v6 }
  0x2a   : > { %5548 = vst [vmem:[#allocation21_spill] sm:$0xff] %v3417_v53  ;;  %v3439_v15 = vsel %vm746_vm1, %v788_v1, %v790_v2  ;;  %v3443_v19 = vsel %vm746_vm1, %v787_v3, %v788_v1  ;;  %v3446_v26 = vsel %vm571_vm0, %v602_v6, %v603_v7  ;;  %v797_v41 = vrot.slane %v3449_v11, 1 }
  0x2b   : > { %5549 = vst [vmem:[#allocation22_spill] sm:$0xff] %v3428_v60  ;;  %v3452_v32 = vsel %vm571_vm0, %v599_v8, %v600_v10  ;;  %v3455_v34 = vsel %vm571_vm0, %v600_v10, 0.0  ;;  %v3464_v39 = vsel %vm746_vm1, %v783_v35, %v785_v16  ;;  %v798_v49 = vrot.slane %v3446_v26, 1  ;;  %v527_v16 = vld [vmem:[%s3236_s8 + $0xc0] sm:$0xff] }
  0x2c   : > { %839 = vrot.lane.b32.xlu0 %v3356_v5, %s3161_s12  ;;  %5550 = vst [vmem:[#allocation23_spill] sm:$0xff] %v3439_v15  ;;  %v3469_v55 = vsel %vm571_vm0, 0.0, %v599_v8  ;;  %v793_v56 = vrot.slane %v3452_v32, 1  ;;  %v795_v57 = vrot.slane %v3455_v34, 1  ;;  %v605_v58 = vrot.slane %v523_v37, 7  ;;  %v528_v37 = vld [vmem:[%s3236_s8 + $0xc8] sm:$0xff] }
  0x2d   : > { %5551 = vst [vmem:[#allocation24_spill] sm:$0xff] %v3443_v19  ;;  %v606_v1 = vrot.slane %v524_v38, 7  ;;  %v792_v35 = vrot.slane %v3469_v55, 1  ;;  %v3477_v2 = vsel %vm746_vm1, %v797_v41, %v798_v49  ;;  %v525_v38 = vld [vmem:[%s3236_s8 + $0xb0] sm:$0xff] }
  0x2e   : > { %5552 = vst [vmem:[#allocation25_spill] sm:$0xff] %v3452_v32  ;;  %v3480_v3 = vsel %vm746_vm1, %v793_v56, %v795_v57  ;;  %v3489_v10 = vsel %vm571_vm0, 0.0, %v605_v58 }
  0x2f   : > { %5553 = vst [vmem:[#allocation26_spill] sm:$0xff] %v3464_v39  ;;  %v3483_v6 = vsel %vm571_vm0, %v605_v58, %v606_v1  ;;  %v3486_v8 = vsel %vm571_vm0, %v606_v1, 0.0  ;;  %v3498_v41 = vsel %vm746_vm1, %v792_v35, %v793_v56  ;;  %v802_v58 = vrot.slane %v3489_v10, 1 }
  0x30   : > { %849 = vrot.lane.b32.xlu2 %v3367_v18, %s3161_s12  ;;  %5554 = vst [vmem:[#allocation27_spill] sm:$0xff] %v3477_v2  ;;  %v803_v57 = vrot.slane %v3483_v6, 1  ;;  %v805_v1 = vrot.slane %v3486_v8, 1 }
  0x31   : > { %847 = vrot.lane.b32.xlu1 %v3371_v20, %s3161_s12  ;;  %5555 = vst [vmem:[#allocation28_spill] sm:$0xff] %v3480_v3 }
  0x32   : > { %5556 = vst [vmem:[#allocation29_spill] sm:$0xff] %v3483_v6  ;;  %v3511_v56 = vsel %vm746_vm1, %v803_v57, %v805_v1 }
  0x33   : > { %5557 = vst [vmem:[#allocation30_spill] sm:$0xff] %v3489_v10 }
  0x34   : > { %845 = vrot.lane.b32.xlu0 %v3392_v33, %s3161_s12  ;;  %5558 = vst [vmem:[#allocation31_spill] sm:$0xff] %v3498_v41 }
  0x35   : > { %5559 = vst [vmem:[#allocation32_spill] sm:$0xff] %v3511_v56 }
  0x38   : > { %855 = vrot.lane.b32.xlu2 %v3404_v43, %s3161_s12  ;;  %v3506_v43 = vsel %vm571_vm0, %v603_v7, 0.0 }
  0x39   : > { %853 = vrot.lane.b32.xlu1 %v3408_v50, %s3161_s12  ;;  %v800_v35 = vrot.slane %v3506_v43, 1 }
  0x3c   : > { %851 = vrot.lane.b32.xlu0 %v3428_v60, %s3161_s12 }
  0x40   : > { %861 = vrot.lane.b32.xlu2 %v3439_v15, %s3161_s12  ;;  %v526_v15 = vld [vmem:[%s3236_s8 + $0xb8] sm:$0xff] }
  0x41   : > { %859 = vrot.lane.b32.xlu1 %v3443_v19, %s3161_s12  ;;  %v612_v19 = vrot.slane %v528_v37, 7  ;;  %v609_v18 = vrot.slane %v526_v15, 7  ;;  %v529_v37 = vld [vmem:[%s3236_s8 + $0xd0] sm:$0xff] }
  0x43   : > { %v3527_v15 = vsel %vm571_vm0, %v609_v18, 0.0 }
  0x44   : > { %857 = vrot.lane.b32.xlu0 %v3464_v39, %s3161_s12  ;;  %v611_v39 = vrot.slane %v527_v16, 7 }
  0x46   : > { %v3518_v60 = vsel %vm571_vm0, %v611_v39, %v612_v19  ;;  %v3521_v7 = vsel %vm571_vm0, 0.0, %v611_v39 }
  0x47   : > { %5561 = vst [vmem:[#allocation34_spill] sm:$0xff] %v3518_v60  ;;  %v812_v39 = vrot.slane %v3521_v7, 1  ;;  %v813_v1 = vrot.slane %v3518_v60, 1 }
  0x48   : > { %867 = vrot.lane.b32.xlu2 %v3477_v2, %s3161_s12  ;;  %v608_v2 = vrot.slane %v525_v38, 7  ;;  %5562 = vst [vmem:[#allocation35_spill] sm:$0xff] %v3521_v7  ;;  %v530_v38 = vld [vmem:[%s3236_s8 + $0xd8] sm:$0xff] }
  0x49   : > { %865 = vrot.lane.b32.xlu1 %v3480_v3, %s3161_s12  ;;  %v3515_v3 = vsel %vm746_vm1, %v802_v58, %v803_v57  ;;  %v3536_v57 = vsel %vm746_vm1, %v798_v49, %v800_v35  ;;  %v810_v58 = vrot.slane %v3527_v15, 1  ;;  %v615_v50 = vrot.slane %v530_v38, 7  ;;  %v532_v38 = vld [vmem:[%s3236_s8 + $0xe8] sm:$0xff] }
  0x4a   : > { %5560 = vst [vmem:[#allocation33_spill] sm:$0xff] %v3515_v3  ;;  %v3524_v16 = vsel %vm571_vm0, %v608_v2, %v609_v18  ;;  %v3548_v49 = vsel %vm746_vm1, %v812_v39, %v813_v1  ;;  %v618_v42 = vrot.slane %v532_v38, 7 }
  0x4b   : > { %5563 = vst [vmem:[#allocation36_spill] sm:$0xff] %v3524_v16  ;;  %v808_v18 = vrot.slane %v3524_v16, 1  ;;  %v3558_v33 = vsel %vm571_vm0, %v615_v50, 0.0 }
  0x4c   : > { %863 = vrot.lane.b32.xlu0 %v3498_v41, %s3161_s12  ;;  %5564 = vst [vmem:[#allocation37_spill] sm:$0xff] %v3536_v57  ;;  %v3543_v41 = vsel %vm571_vm0, 0.0, %v608_v2  ;;  %v3591_v5 = vsel %vm571_vm0, %v618_v42, 0.0 }
  0x4d   : > { %5565 = vst [vmem:[#allocation38_spill] sm:$0xff] %v3548_v49  ;;  %v807_v35 = vrot.slane %v3543_v41, 1 }
  0x4f   : > { %v3570_v39 = vsel %vm746_vm1, %v807_v35, %v808_v18 }
  0x50   : > { %873 = vrot.lane.b32.xlu2 %v3511_v56, %s3161_s12  ;;  %v614_v56 = vrot.slane %v529_v37, 7  ;;  %v531_v37 = vld [vmem:[%s3236_s8 + $0xe0] sm:$0xff]  ;;  %5569 = vst [vmem:[#allocation42_spill] sm:$0xff] %v3570_v39 }
  0x51   : > { %871 = vrot.lane.b32.xlu1 %v3515_v3, %s3161_s12  ;;  %v3552_v3 = vsel %vm746_vm1, %v808_v18, %v810_v58  ;;  %v617_v20 = vrot.slane %v531_v37, 7  ;;  %v925_v37 = vrot.slane %v3279_v28, 2 }
  0x52   : > { %5566 = vst [vmem:[#allocation39_spill] sm:$0xff] %v3552_v3  ;;  %v3555_v59 = vsel %vm571_vm0, %v614_v56, %v615_v50  ;;  %v3561_v2 = vsel %vm571_vm0, 0.0, %v614_v56  ;;  %v3576_v56 = vsel %vm571_vm0, %v612_v19, 0.0 }
  0x53   : > { %5567 = vst [vmem:[#allocation40_spill] sm:$0xff] %v3555_v59  ;;  %v818_v58 = vrot.slane %v3555_v59, 1  ;;  %v817_v50 = vrot.slane %v3561_v2, 1  ;;  %v815_v18 = vrot.slane %v3576_v56, 1 }
  0x54   : > { %869 = vrot.lane.b32.xlu0 %v3536_v57, %s3161_s12  ;;  %5568 = vst [vmem:[#allocation41_spill] sm:$0xff] %v3561_v2  ;;  %v820_v57 = vrot.slane %v3558_v33, 1 }
  0x55   : > { %v3585_v35 = vsel %vm746_vm1, %v817_v50, %v818_v58  ;;  %v3598_v19 = vsel %vm746_vm1, %v813_v1, %v815_v18 }
  0x56   : > { %5571 = vst [vmem:[#allocation44_spill] sm:$0xff] %v3585_v35 }
  0x57   : > { %5573 = vst [vmem:[#allocation46_spill] sm:$0xff] %v3598_v19 }
  0x58   : > { %879 = vrot.lane.b32.xlu2 %v3548_v49, %s3161_s12  ;;  %v3581_v49 = vsel %vm746_vm1, %v818_v58, %v820_v57  ;;  %v924_v57 = vrot.slane %v3282_v29, 2  ;;  %v825_v58 = vrot.slane %v3591_v5, 1  ;;  %v932_v29 = vrot.slane %v3269_v24, 2 }
  0x59   : > { %877 = vrot.lane.b32.xlu1 %v3552_v3, %s3161_s12  ;;  %5570 = vst [vmem:[#allocation43_spill] sm:$0xff] %v3581_v49  ;;  %v3588_v3 = vsel %vm571_vm0, %v617_v20, %v618_v42  ;;  %v3605_v42 = vsel %vm571_vm0, 0.0, %v617_v20  ;;  %v930_v20 = vrot.slane %v3258_v17, 2 }
  0x5a   : > { %5572 = vst [vmem:[#allocation45_spill] sm:$0xff] %v3588_v3  ;;  %v823_v38 = vrot.slane %v3588_v3, 1  ;;  %v926_v50 = vsel %vm923_vm2, %v924_v57, %v925_v37  ;;  %v822_v1 = vrot.slane %v3605_v42, 1  ;;  %v929_v57 = vrot.slane %v3253_v14, 2 }
  0x5b   : > { %5574 = vst [vmem:[#allocation47_spill] sm:$0xff] %v3605_v42 }
  0x5c   : > { %875 = vrot.lane.b32.xlu0 %v3570_v39, %s3161_s12  ;;  %v3612_v18 = vsel %vm746_vm1, %v823_v38, %v825_v58  ;;  %v3618_v28 = vsel %vm746_vm1, %v822_v1, %v823_v38  ;;  %v3626_v58 = vsel %vm923_vm2, %v930_v20, %v932_v29  ;;  %v939_v38 = vrot.slane %v3326_v54, 2 }
  0x5d   : > { %5575 = vst [vmem:[#allocation48_spill] sm:$0xff] %v3612_v18  ;;  %v940_v1 = vrot.slane %v3311_v47, 2  ;;  %v935_v29 = vrot.slane %v3247_v12, 2 }
  0x5e   : > { %5576 = vst [vmem:[#allocation49_spill] sm:$0xff] %v3618_v28 }
  0x5f   : > { %5577 = vst [vmem:[#allocation50_spill] sm:$0xff] %v3626_v58 }
  0x60   : > { %885 = vrot.lane.b32.xlu2 %v3581_v49, %s3161_s12  ;;  %v3630_v49 = vsel %vm923_vm2, %v929_v57, %v930_v20  ;;  %v3645_v20 = vsel %vm923_vm2, %v939_v38, %v940_v1  ;;  %v934_v57 = vrot.slane %v3250_v13, 2  ;;  %v944_v38 = vrot.slane %v3308_v46, 2 }
  0x61   : > { %883 = vrot.lane.b32.xlu1 %v3585_v35, %s3161_s12  ;;  %5579 = vst [vmem:[#allocation52_spill] sm:$0xff] %v3645_v20 }
  0x64   : > { %881 = vrot.lane.b32.xlu0 %v3598_v19, %s3161_s12 }
  0x68   : > { %1004 = vrot.lane.b32.xlu2 %v926_v50, %s3162_s13  ;;  %v927_v50 = vrot.slane %v3293_v36, 2  ;;  %v937_v36 = vrot.slane %v3263_v22, 2  ;;  %v945_v22 = vrot.slane %v3305_v45, 2 }
  0x69   : > { %889 = vrot.lane.b32.xlu1 %v3612_v18, %s3161_s12 }
  0x6a   : > { %v928_v24 = vsel %vm923_vm2, %v925_v37, %v927_v50  ;;  %v3656_v37 = vsel %vm923_vm2, %v934_v57, %v935_v29  ;;  %v947_v50 = vrot.slane %v3362_v9, 2  ;;  %v955_v57 = vrot.slane %v3381_v30, 2 }
  0x6c   : > { %887 = vrot.lane.b32.xlu0 %v3618_v28, %s3161_s12  ;;  %s3020_s12 = sadd.s32 240, %s3230_s28 }
  0x70   : > { %1010 = vrot.lane.b32.xlu2 %v3626_v58, %s3162_s13  ;;  %v3649_v58 = vsel %vm923_vm2, %v935_v29, %v937_v36  ;;  %v3666_v36 = vsel %vm923_vm2, %v945_v22, %v947_v50  ;;  %v954_v29 = vrot.slane %v3399_v40, 2 }
  0x71   : > { %1008 = vrot.lane.b32.xlu1 %v3630_v49, %s3162_s13  ;;  %5581 = vst [vmem:[#allocation54_spill] sm:$0xff] %v3666_v36 }
  0x72   : > { %v3639_v28 = vpop.permute.xlu2 %835 }
  0x73   : > { %5578 = vst [vmem:[#allocation51_spill] sm:$0xff] %v3639_v28  ;;  %v942_v28 = vrot.slane %v3314_v48, 2  ;;  %v950_v48 = vrot.slane %v3339_v62, 2 }
  0x74   : > { %1006 = vrot.lane.b32.xlu0 %v928_v24, %s3162_s13 }
  0x75   : > { %v3677_v9 = vsel %vm923_vm2, %v940_v1, %v942_v28 }
  0x76   : > { %5582 = vst [vmem:[#allocation55_spill] sm:$0xff] %v3677_v9 }
  0x78   : > { %1016 = vrot.lane.b32.xlu2 %v3645_v20, %s3162_s13  ;;  %v3670_v20 = vsel %vm923_vm2, %v944_v38, %v945_v22  ;;  %v952_v22 = vrot.slane %v3342_v63, 2  ;;  %v3688_v38 = vsel %vm923_vm2, %v954_v29, %v955_v57  ;;  %v960_v63 = vrot.slane %v3374_v21, 2 }
  0x79   : > { %1014 = vrot.lane.b32.xlu1 %v3649_v58, %s3162_s13  ;;  %5584 = vst [vmem:[#allocation57_spill] sm:$0xff] %v3688_v38 }
  0x7a   : > { %v3660_v24 = vpop.permute.xlu2 %837  ;;  %v3692_v28 = vsel %vm923_vm2, %v950_v48, %v952_v22 }
  0x7b   : > { %5580 = vst [vmem:[#allocation53_spill] sm:$0xff] %v3660_v24  ;;  %v949_v24 = vrot.slane %v3345_v0, 2 }
  0x7c   : > { %1012 = vrot.lane.b32.xlu0 %v3656_v37, %s3162_s13  ;;  %5585 = vst [vmem:[#allocation58_spill] sm:$0xff] %v3692_v28 }
  0x7d   : > { %v3699_v1 = vsel %vm923_vm2, %v949_v24, %v950_v48 }
  0x7e   : > { %5586 = vst [vmem:[#allocation59_spill] sm:$0xff] %v3699_v1 }
  0x80   : > { %1022 = vrot.lane.b32.xlu2 %v3666_v36, %s3162_s13  ;;  %v959_v36 = vrot.slane %v3377_v25, 2 }
  0x81   : > { %1020 = vrot.lane.b32.xlu1 %v3670_v20, %s3162_s13 }
  0x82   : > { %v3681_v50 = vpop.permute.xlu2 %843  ;;  %v3717_v48 = vsel %vm923_vm2, %v959_v36, %v960_v63  ;;  %v967_v36 = vrot.slane %v3414_v52, 2 }
  0x83   : > { %5583 = vst [vmem:[#allocation56_spill] sm:$0xff] %v3681_v50  ;;  %v962_v50 = vrot.slane %v3434_v4, 2 }
  0x84   : > { %1018 = vrot.lane.b32.xlu0 %v3677_v9, %s3162_s13 }
  0x85   : > { %v3711_v22 = vsel %vm923_vm2, %v960_v63, %v962_v50  ;;  %v970_v50 = vrot.slane %v3452_v32, 2 }
  0x86   : > { %5589 = vst [vmem:[#allocation62_spill] sm:$0xff] %v3711_v22 }
  0x88   : > { %1028 = vrot.lane.b32.xlu2 %v3688_v38, %s3162_s13  ;;  %v957_v38 = vrot.slane %v3384_v31, 2  ;;  %v965_v31 = vrot.slane %v3411_v51, 2 }
  0x89   : > { %1026 = vrot.lane.b32.xlu1 %v3692_v28, %s3162_s13 }
  0x8a   : > { %v3703_v29 = vpop.permute.xlu2 %849  ;;  %v3724_v4 = vsel %vm923_vm2, %v955_v57, %v957_v38  ;;  %v964_v57 = vrot.slane %v3417_v53, 2 }
  0x8b   : > { %5587 = vst [vmem:[#allocation60_spill] sm:$0xff] %v3703_v29  ;;  %v3706_v9 = vpop.permute.xlu1 %831  ;;  %v969_v29 = vrot.slane %v3469_v55, 2 }
  0x8c   : > { %5588 = vst [vmem:[#allocation61_spill] sm:$0xff] %v3706_v9  ;;  %1024 = vrot.lane.b32.xlu0 %v3699_v1, %s3162_s13  ;;  %v3750_v52 = vsel %vm923_vm2, %v964_v57, %v965_v31 }
  0x8d   : > { %5591 = vst [vmem:[#allocation64_spill] sm:$0xff] %v3724_v4 }
  0x8e   : > { %v3714_v24 = vpop.permute.xlu0 %827  ;;  %5597 = vst [vmem:[#allocation70_spill] sm:$0xff] %v3750_v52 }
  0x8f   : > { %5590 = vst [vmem:[#allocation63_spill] sm:$0xff] %v3714_v24  ;;  %v3737_v24 = vsel %vm923_vm2, %v969_v29, %v970_v50  ;;  %v977_v29 = vrot.slane %v3506_v43, 2 }
  0x90   : > { %1034 = vrot.lane.b32.xlu2 %v3711_v22, %s3162_s13  ;;  %5594 = vst [vmem:[#allocation67_spill] sm:$0xff] %v3737_v24  ;;  %v3743_v22 = vsel %vm923_vm2, %v965_v31, %v967_v36 }
  0x91   : > { %1032 = vrot.lane.b32.xlu1 %v3717_v48, %s3162_s13  ;;  %5596 = vst [vmem:[#allocation69_spill] sm:$0xff] %v3743_v22 }
  0x92   : > { %v3728_v9 = vpop.permute.xlu2 %855 }
  0x93   : > { %5592 = vst [vmem:[#allocation65_spill] sm:$0xff] %v3728_v9  ;;  %v3732_v63 = vpop.permute.xlu1 %833 }
  0x94   : > { %5593 = vst [vmem:[#allocation66_spill] sm:$0xff] %v3732_v63  ;;  %1030 = vrot.lane.b32.xlu0 %v3724_v4, %s3162_s13  ;;  %v975_v63 = vrot.slane %v3446_v26, 2 }
  0x96   : > { %v3740_v38 = vpop.permute.xlu0 %829  ;;  %v3762_v36 = vsel %vm923_vm2, %v975_v63, %v977_v29  ;;  %v985_v29 = vrot.slane %v3524_v16, 2 }
  0x97   : > { %5595 = vst [vmem:[#allocation68_spill] sm:$0xff] %v3740_v38  ;;  %v974_v38 = vrot.slane %v3449_v11, 2 }
  0x98   : > { %1040 = vrot.lane.b32.xlu2 %v3737_v24, %s3162_s13  ;;  %5600 = vst [vmem:[#allocation73_spill] sm:$0xff] %v3762_v36  ;;  %v972_v24 = vrot.slane %v3455_v34, 2  ;;  %v980_v34 = vrot.slane %v3483_v6, 2 }
  0x99   : > { %1038 = vrot.lane.b32.xlu1 %v3743_v22, %s3162_s13  ;;  %v3768_v57 = vsel %vm923_vm2, %v974_v38, %v975_v63  ;;  %v982_v63 = vrot.slane %v3486_v8, 2 }
  0x9a   : > { %v3754_v9 = vpop.permute.xlu2 %861  ;;  %v3775_v43 = vsel %vm923_vm2, %v970_v50, %v972_v24  ;;  %v979_v24 = vrot.slane %v3489_v10, 2 }
  0x9b   : > { %5598 = vst [vmem:[#allocation71_spill] sm:$0xff] %v3754_v9  ;;  %v3757_v4 = vpop.permute.xlu1 %841 }
  0x9c   : > { %5599 = vst [vmem:[#allocation72_spill] sm:$0xff] %v3757_v4  ;;  %1036 = vrot.lane.b32.xlu0 %v3750_v52, %s3162_s13  ;;  %v984_v4 = vrot.slane %v3543_v41, 2  ;;  %v3801_v8 = vsel %vm923_vm2, %v979_v24, %v980_v34 }
  0x9d   : > { %5602 = vst [vmem:[#allocation75_spill] sm:$0xff] %v3775_v43 }
  0x9e   : > { %v3765_v31 = vpop.permute.xlu0 %839 }
  0x9f   : > { %5601 = vst [vmem:[#allocation74_spill] sm:$0xff] %v3765_v31  ;;  %v3788_v31 = vsel %vm923_vm2, %v984_v4, %v985_v29  ;;  %v992_v4 = vrot.slane %v3576_v56, 2 }
  0xa0   : > { %1046 = vrot.lane.b32.xlu2 %v3762_v36, %s3162_s13  ;;  %5605 = vst [vmem:[#allocation78_spill] sm:$0xff] %v3788_v31  ;;  %v3794_v36 = vsel %vm923_vm2, %v980_v34, %v982_v63 }
  0xa1   : > { %1044 = vrot.lane.b32.xlu1 %v3768_v57, %s3162_s13  ;;  %5607 = vst [vmem:[#allocation80_spill] sm:$0xff] %v3794_v36 }
  0xa2   : > { %v3779_v9 = vpop.permute.xlu2 %867 }
  0xa3   : > { %5603 = vst [vmem:[#allocation76_spill] sm:$0xff] %v3779_v9  ;;  %v3783_v38 = vpop.permute.xlu1 %847 }
  0xa4   : > { %5604 = vst [vmem:[#allocation77_spill] sm:$0xff] %v3783_v38  ;;  %1042 = vrot.lane.b32.xlu0 %v3775_v43, %s3162_s13  ;;  %v990_v38 = vrot.slane %v3518_v60, 2 }
  0xa6   : > { %v3791_v50 = vpop.permute.xlu0 %845  ;;  %v3813_v63 = vsel %vm923_vm2, %v990_v38, %v992_v4  ;;  %v1000_v4 = vrot.slane %v3588_v3, 2 }
  0xa7   : > { %5606 = vst [vmem:[#allocation79_spill] sm:$0xff] %v3791_v50  ;;  %v989_v50 = vrot.slane %v3521_v7, 2 }
  0xa8   : > { %1052 = vrot.lane.b32.xlu2 %v3788_v31, %s3162_s13  ;;  %5610 = vst [vmem:[#allocation83_spill] sm:$0xff] %v3813_v63  ;;  %v987_v31 = vrot.slane %v3527_v15, 2  ;;  %v995_v15 = vrot.slane %v3555_v59, 2 }
  0xa9   : > { %1050 = vrot.lane.b32.xlu1 %v3794_v36, %s3162_s13  ;;  %v3819_v24 = vsel %vm923_vm2, %v989_v50, %v990_v38  ;;  %v997_v38 = vrot.slane %v3558_v33, 2 }
  0xaa   : > { %v3805_v9 = vpop.permute.xlu2 %873  ;;  %5612 = vst [vmem:[#allocation85_spill] sm:$0xff] %v3819_v24  ;;  %v3826_v56 = vsel %vm923_vm2, %v985_v29, %v987_v31  ;;  %v994_v31 = vrot.slane %v3561_v2, 2 }
  0xab   : > { %5608 = vst [vmem:[#allocation81_spill] sm:$0xff] %v3805_v9  ;;  %v3808_v43 = vpop.permute.xlu1 %853  ;;  %v999_v9 = vrot.slane %v3605_v42, 2 }
  0xac   : > { %5609 = vst [vmem:[#allocation82_spill] sm:$0xff] %v3808_v43  ;;  %1048 = vrot.lane.b32.xlu0 %v3801_v8, %s3162_s13  ;;  %v3852_v33 = vsel %vm923_vm2, %v994_v31, %v995_v15 }
  0xad   : > { %5613 = vst [vmem:[#allocation86_spill] sm:$0xff] %v3826_v56 }
  0xae   : > { %v3816_v34 = vpop.permute.xlu0 %851  ;;  %5618 = vst [vmem:[#allocation91_spill] sm:$0xff] %v3852_v33 }
  0xaf   : > { %5611 = vst [vmem:[#allocation84_spill] sm:$0xff] %v3816_v34  ;;  %v3839_v34 = vsel %vm923_vm2, %v999_v9, %v1000_v4 }
  0xb0   : > { %1058 = vrot.lane.b32.xlu2 %v3813_v63, %s3162_s13  ;;  %5616 = vst [vmem:[#allocation89_spill] sm:$0xff] %v3839_v34  ;;  %v3845_v63 = vsel %vm923_vm2, %v995_v15, %v997_v38 }
  0xb1   : > { %1056 = vrot.lane.b32.xlu1 %v3819_v24, %s3162_s13  ;;  %5617 = vst [vmem:[#allocation90_spill] sm:$0xff] %v3845_v63 }
  0xb2   : > { %v3830_v43 = vpop.permute.xlu2 %879 }
  0xb3   : > { %5614 = vst [vmem:[#allocation87_spill] sm:$0xff] %v3830_v43  ;;  %v3834_v50 = vpop.permute.xlu1 %859 }
  0xb4   : > { %5615 = vst [vmem:[#allocation88_spill] sm:$0xff] %v3834_v50  ;;  %1054 = vrot.lane.b32.xlu0 %v3826_v56, %s3162_s13  ;;  %v1002_v50 = vrot.slane %v3591_v5, 2 }
  0xb6   : > { %v3842_v29 = vpop.permute.xlu0 %857  ;;  %v3868_v15 = vsel %vm923_vm2, %v1000_v4, %v1002_v50 }
  0xb7   : > { %5621 = vst [vmem:[#allocation94_spill] sm:$0xff] %v3868_v15 }
  0xb8   : > { %1064 = vrot.lane.b32.xlu2 %v3839_v34, %s3162_s13 }
  0xb9   : > { %1062 = vrot.lane.b32.xlu1 %v3845_v63, %s3162_s13 }
  0xba   : > { %v3854_v43 = vpop.permute.xlu2 %885 }
  0xbb   : > { %5619 = vst [vmem:[#allocation92_spill] sm:$0xff] %v3854_v43  ;;  %v3856_v9 = vpop.permute.xlu1 %865 }
  0xbc   : > { %5620 = vst [vmem:[#allocation93_spill] sm:$0xff] %v3856_v9  ;;  %1060 = vrot.lane.b32.xlu0 %v3852_v33, %s3162_s13 }
  0xbe   : > { %v3861_v38 = vpop.permute.xlu0 %863 }
  0xc0   : > { %1103 = vrot.lane.b32.xlu2 %v3258_v17, %s3163_s14 }
  0xc1   : > { %1101 = vrot.lane.b32.xlu1 %v3253_v14, %s3163_s14 }
  0xc2   : > { %v3870_v31 = vpop.permute.xlu2 %1004 }
  0xc3   : > { %5622 = vst [vmem:[#allocation95_spill] sm:$0xff] %v3870_v31  ;;  %v3872_v43 = vpop.permute.xlu1 %871 }
  0xc4   : > { %5623 = vst [vmem:[#allocation96_spill] sm:$0xff] %v3872_v43  ;;  %1066 = vrot.lane.b32.xlu0 %v3868_v15, %s3162_s13 }
  0xc6   : > { %v3876_v5 = vpop.permute.xlu0 %869 }
  0xc8   : > { %1109 = vrot.lane.b32.xlu2 %v3326_v54, %s3163_s14 }
  0xc9   : > { %1107 = vrot.lane.b32.xlu1 %v3247_v12, %s3163_s14 }
  0xca   : > { %v3882_v34 = vpop.permute.xlu2 %1010 }
  0xcb   : > { %5624 = vst [vmem:[#allocation97_spill] sm:$0xff] %v3882_v34  ;;  %v3884_v17 = vpop.permute.xlu1 %877 }
  0xcc   : > { %5625 = vst [vmem:[#allocation98_spill] sm:$0xff] %v3884_v17  ;;  %1105 = vrot.lane.b32.xlu0 %v3250_v13, %s3163_s14  ;;  %v3976_v17 = vld [vmem:[%s3236_s8 + $0xf8] sm:$0xff] }
  0xce   : > { %v3888_v4 = vpop.permute.xlu0 %875 }
  0xd0   : > { %1115 = vrot.lane.b32.xlu2 %v3305_v45, %s3163_s14 }
  0xd1   : > { %1113 = vrot.lane.b32.xlu1 %v3308_v46, %s3163_s14 }
  0xd2   : > { %v3894_v50 = vpop.permute.xlu2 %1016 }
  0xd3   : > { %5626 = vst [vmem:[#allocation99_spill] sm:$0xff] %v3894_v50  ;;  %v3896_v15 = vpop.permute.xlu1 %883 }
  0xd4   : > { %5627 = vst [vmem:[#allocation100_spill] sm:$0xff] %v3896_v15  ;;  %1111 = vrot.lane.b32.xlu0 %v3311_v47, %s3163_s14 }
  0xd6   : > { %v3900_v34 = vpop.permute.xlu0 %881 }
  0xd7   : > { %5628 = vst [vmem:[#allocation101_spill] sm:$0xff] %v3900_v34 }
  0xd8   : > { %1121 = vrot.lane.b32.xlu2 %v3399_v40, %s3163_s14 }
  0xd9   : > { %1119 = vrot.lane.b32.xlu1 %v3339_v62, %s3163_s14 }
  0xda   : > { %v3906_v63 = vpop.permute.xlu2 %1022 }
  0xdb   : > { %5629 = vst [vmem:[#allocation102_spill] sm:$0xff] %v3906_v63  ;;  %v3908_v14 = vpop.permute.xlu1 %889 }
  0xdc   : > { %5630 = vst [vmem:[#allocation103_spill] sm:$0xff] %v3908_v14  ;;  %1117 = vrot.lane.b32.xlu0 %v3345_v0, %s3163_s14 }
  0xde   : > { %v3912_v50 = vpop.permute.xlu0 %887 }
  0xdf   : > { %5631 = vst [vmem:[#allocation104_spill] sm:$0xff] %v3912_v50 }
  0xe0   : > { %1127 = vrot.lane.b32.xlu2 %v3374_v21, %s3163_s14 }
  0xe1   : > { %1125 = vrot.lane.b32.xlu1 %v3377_v25, %s3163_s14 }
  0xe2   : > { %v3918_v15 = vpop.permute.xlu2 %1028 }
  0xe3   : > { %5632 = vst [vmem:[#allocation105_spill] sm:$0xff] %v3918_v15  ;;  %v3920_v34 = vpop.permute.xlu1 %1008 }
  0xe4   : > { %5633 = vst [vmem:[#allocation106_spill] sm:$0xff] %v3920_v34  ;;  %1123 = vrot.lane.b32.xlu0 %v3381_v30, %s3163_s14 }
  0xe6   : > { %v3924_v63 = vpop.permute.xlu0 %1006 }
  0xe7   : > { %5634 = vst [vmem:[#allocation107_spill] sm:$0xff] %v3924_v63 }
  0xe8   : > { %1133 = vrot.lane.b32.xlu2 %v3469_v55, %s3163_s14 }
  0xe9   : > { %1131 = vrot.lane.b32.xlu1 %v3411_v51, %s3163_s14 }
  0xea   : > { %v3930_v14 = vpop.permute.xlu2 %1034 }
  0xeb   : > { %v3932_v50 = vpop.permute.xlu1 %1014 }
  0xec   : > { %5635 = vst [vmem:[#allocation108_spill] sm:$0xff] %v3932_v50  ;;  %1129 = vrot.lane.b32.xlu0 %v3417_v53, %s3163_s14  ;;  %v5672_v53 = vld [vmem:[#allocation19_spill] sm:$0xff] }
  0xee   : > { %v3936_v15 = vpop.permute.xlu0 %1012 }
  0xef   : > { %5636 = vst [vmem:[#allocation109_spill] sm:$0xff] %v3936_v15 }
  0xf0   : > { %1139 = vrot.lane.b32.xlu2 %v3446_v26, %s3163_s14 }
  0xf1   : > { %1137 = vrot.lane.b32.xlu1 %v3449_v11, %s3163_s14 }
  0xf2   : > { %v3942_v62 = vpop.permute.xlu2 %1040 }
  0xf3   : > { %v3944_v34 = vpop.permute.xlu1 %1020 }
  0xf4   : > { %5637 = vst [vmem:[#allocation110_spill] sm:$0xff] %v3944_v34  ;;  %1135 = vrot.lane.b32.xlu0 %v3452_v32, %s3163_s14  ;;  %v5661_v32 = vld [vmem:[#allocation11_spill] sm:$0xff] }
  0xf6   : > { %v3948_v50 = vpop.permute.xlu0 %1018 }
  0xf7   : > { %5638 = vst [vmem:[#allocation111_spill] sm:$0xff] %v3948_v50 }
  0xf8   : > { %1145 = vrot.lane.b32.xlu2 %v3543_v41, %s3163_s14 }
  0xf9   : > { %1143 = vrot.lane.b32.xlu1 %v3483_v6, %s3163_s14 }
  0xfa   : > { %v3954_v15 = vpop.permute.xlu2 %1046 }
  0xfb   : > { %v3956_v63 = vpop.permute.xlu1 %1026 }
  0xfc   : > { %5639 = vst [vmem:[#allocation112_spill] sm:$0xff] %v3956_v63  ;;  %1141 = vrot.lane.b32.xlu0 %v3489_v10, %s3163_s14  ;;  %v533_v63 = vld [vmem:[%s3236_s8 + $0xf0] sm:$0xff]  ;;  %s2949_s8 = sshll.u32 %s5899_s24, 1 }
  0xfd   : > { %s486_s11 = scalar_lea.vmem %s5401_s7, %s2949_s8 }
  0xfe   : > { %v3960_v34 = vpop.permute.xlu0 %1024 }
  0xff   : > { %5640 = vst [vmem:[#allocation113_spill] sm:$0xff] %v3960_v34 }
 0x100   : > { %1151 = vrot.lane.b32.xlu2 %v3518_v60, %s3163_s14  ;;  %v620_v60 = vrot.slane %v533_v63, 7 }
 0x101   : > { %1149 = vrot.lane.b32.xlu1 %v3521_v7, %s3163_s14  ;;  %v5493_v7 = vrot.slane %v3976_v17, 7 }
 0x102   : > { %v3966_v50 = vpop.permute.xlu2 %1052 }
 0x103   : > { %v3968_v31 = vpop.permute.xlu1 %1032 }
 0x104   : > { %1147 = vrot.lane.b32.xlu0 %v3524_v16, %s3163_s14  ;;  %v3992_v16 = vsel %vm571_vm0, %v620_v60, %v5493_v7 }
 0x105   : > { %5643 = vst [vmem:[#allocation116_spill] sm:$0xff] %v3992_v16 }
 0x106   : > { %v3972_v33 = vpop.permute.xlu0 %1030 }
 0x108   : > { %1157 = vrot.lane.b32.xlu2 %v3605_v42, %s3163_s14  ;;  %v3997_v42 = vsel %vm571_vm0, 0.0, %v620_v60 }
 0x109   : > { %1155 = vrot.lane.b32.xlu1 %v3555_v59, %s3163_s14  ;;  %5645 = vst [vmem:[#allocation118_spill] sm:$0xff] %v3997_v42 }
 0x10a   : > { %v3983_v34 = vpop.permute.xlu2 %1058 }
 0x10b   : > { %5641 = vst [vmem:[#allocation114_spill] sm:$0xff] %v3983_v34  ;;  %v3985_v0 = vpop.permute.xlu1 %1038 }
 0x10c   : > { %5642 = vst [vmem:[#allocation115_spill] sm:$0xff] %v3985_v0  ;;  %1153 = vrot.lane.b32.xlu0 %v3561_v2, %s3163_s14 }
 0x10e   : > { %v3994_v43 = vpop.permute.xlu0 %1036 }
 0x10f   : > { %5644 = vst [vmem:[#allocation117_spill] sm:$0xff] %v3994_v43 }
 0x110   : > { %1163 = vrot.lane.b32.xlu2 %v3992_v16, %s3163_s14 }
 0x111   : > { %1161 = vrot.lane.b32.xlu1 %v3997_v42, %s3163_s14 }
 0x112   : > { %v4003_v63 = vpop.permute.xlu2 %1064 }
 0x113   : > { %5646 = vst [vmem:[#allocation119_spill] sm:$0xff] %v4003_v63  ;;  %v4005_v34 = vpop.permute.xlu1 %1044 }
 0x114   : > { %5647 = vst [vmem:[#allocation120_spill] sm:$0xff] %v4005_v34  ;;  %1159 = vrot.lane.b32.xlu0 %v3588_v3, %s3163_s14  ;;  %v5652_v3 = vld [vmem:[#allocation14_spill] sm:$0xff]  ;;  %v5667_v34 = vld [vmem:[#allocation15_spill] sm:$0xff]  ;;  %s455_s14 = scalar_lea.vmem %s5396_s2, %s3020_s12 }
 0x116   : > { %v4009_v7 = vpop.permute.xlu0 %1042 }
 0x117   : > { %5648 = vst [vmem:[#allocation121_spill] sm:$0xff] %v4009_v7 }
 0x118   : > { %1207 = vrot.lane.b32.xlu2 %v3266_v23, %s3164_s15 }
 0x119   : > { %1205 = vrot.lane.b32.xlu1 %v3302_v44, %s3164_s15  ;;  %v5655_v44 = vld [vmem:[#allocation8_spill] sm:$0xff] }
 0x11a   : > { %v4015_v60 = vpop.permute.xlu2 %1103 }
 0x11b   : > { %5649 = vst [vmem:[#allocation122_spill] sm:$0xff] %v4015_v60  ;;  %v4017_v59 = vpop.permute.xlu1 %1050 }
 0x11c   : > { %5650 = vst [vmem:[#allocation123_spill] sm:$0xff] %v4017_v59  ;;  %1203 = vrot.lane.b32.xlu0 %v3276_v27, %s3164_s15  ;;  %v5657_v59 = vld [vmem:[#allocation16_spill] sm:$0xff]  ;;  %v5658_v27 = vld [vmem:[#allocation17_spill] sm:$0xff] }
 0x11e   : > { %v4021_v63 = vpop.permute.xlu0 %1048 }
 0x11f   : > { %5651 = vst [vmem:[#allocation124_spill] sm:$0xff] %v4021_v63 }
 0x120   : > { %1213 = vrot.lane.b32.xlu2 %v3336_v61, %s3164_s15 }
 0x121   : > { %1211 = vrot.lane.b32.xlu1 %v5652_v3, %s3164_s15 }
 0x122   : > { %v4027_v6 = vpop.permute.xlu2 %1109 }
 0x123   : > { %5653 = vst [vmem:[#allocation14_spill] sm:$0xff] %v4027_v6  ;;  %v4029_v2 = vpop.permute.xlu1 %1056 }
 0x124   : > { %5654 = vst [vmem:[#allocation125_spill] sm:$0xff] %v4029_v2  ;;  %1209 = vrot.lane.b32.xlu0 %v5655_v44, %s3164_s15  ;;  %v5663_v2 = vld [vmem:[#allocation20_spill] sm:$0xff] }
 0x126   : > { %v4033_v60 = vpop.permute.xlu0 %1054 }
 0x127   : > { %5656 = vst [vmem:[#allocation8_spill] sm:$0xff] %v4033_v60  ;;  %v5664_v60 = vld [vmem:[#allocation22_spill] sm:$0xff] }
 0x128   : > { %1219 = vrot.lane.b32.xlu2 %v5657_v59, %s3164_s15 }
 0x129   : > { %1217 = vrot.lane.b32.xlu1 %v5658_v27, %s3164_s15 }
 0x12a   : > { %v4039_v63 = vpop.permute.xlu2 %1115 }
 0x12b   : > { %5659 = vst [vmem:[#allocation126_spill] sm:$0xff] %v4039_v63  ;;  %v4041_v7 = vpop.permute.xlu1 %1062 }
 0x12c   : > { %5660 = vst [vmem:[#allocation127_spill] sm:$0xff] %v4041_v7  ;;  %1215 = vrot.lane.b32.xlu0 %v5661_v32, %s3164_s15  ;;  %v5669_v7 = vld [vmem:[#allocation24_spill] sm:$0xff] }
 0x12e   : > { %v4045_v6 = vpop.permute.xlu0 %1060 }
 0x12f   : > { %5662 = vst [vmem:[#allocation11_spill] sm:$0xff] %v4045_v6  ;;  %v5670_v6 = vld [vmem:[#allocation26_spill] sm:$0xff] }
 0x130   : > { %1225 = vrot.lane.b32.xlu2 %v5663_v2, %s3164_s15 }
 0x131   : > { %1223 = vrot.lane.b32.xlu1 %v5664_v60, %s3164_s15 }
 0x132   : > { %v4051_v9 = vpop.permute.xlu2 %1121 }
 0x133   : > { %5665 = vst [vmem:[#allocation20_spill] sm:$0xff] %v4051_v9  ;;  %v4053_v59 = vpop.permute.xlu1 %1101 }
 0x134   : > { %5666 = vst [vmem:[#allocation22_spill] sm:$0xff] %v4053_v59  ;;  %1221 = vrot.lane.b32.xlu0 %v5667_v34, %s3164_s15  ;;  %v5674_v59 = vld [vmem:[#allocation28_spill] sm:$0xff] }
 0x136   : > { %v4057_v63 = vpop.permute.xlu0 %1066 }
 0x137   : > { %5668 = vst [vmem:[#allocation128_spill] sm:$0xff] %v4057_v63  ;;  %v5675_v63 = vld [vmem:[#allocation31_spill] sm:$0xff] }
 0x138   : > { %1231 = vrot.lane.b32.xlu2 %v5669_v7, %s3164_s15 }
 0x139   : > { %1229 = vrot.lane.b32.xlu1 %v5670_v6, %s3164_s15  ;;  %v5678_v6 = vld [vmem:[#allocation23_spill] sm:$0xff] }
 0x13a   : > { %v4063_v27 = vpop.permute.xlu2 %1127 }
 0x13b   : > { %v4065_v43 = vpop.permute.xlu1 %1107 }
 0x13c   : > { %5671 = vst [vmem:[#allocation129_spill] sm:$0xff] %v4065_v43  ;;  %1227 = vrot.lane.b32.xlu0 %v5672_v53, %s3164_s15  ;;  %v5680_v43 = vld [vmem:[#allocation33_spill] sm:$0xff] }
 0x13e   : > { %v4069_v9 = vpop.permute.xlu0 %1105 }
 0x13f   : > { %5673 = vst [vmem:[#allocation19_spill] sm:$0xff] %v4069_v9  ;;  %v5681_v9 = vld [vmem:[#allocation37_spill] sm:$0xff] }
 0x140   : > { %1237 = vrot.lane.b32.xlu2 %v5674_v59, %s3164_s15 }
 0x141   : > { %1235 = vrot.lane.b32.xlu1 %v5675_v63, %s3164_s15  ;;  %v5684_v63 = vld [vmem:[#allocation27_spill] sm:$0xff] }
 0x142   : > { %v4075_v34 = vpop.permute.xlu2 %1133 }
 0x143   : > { %5676 = vst [vmem:[#allocation130_spill] sm:$0xff] %v4075_v34  ;;  %v4077_v7 = vpop.permute.xlu1 %1113 }
 0x144   : > { %5677 = vst [vmem:[#allocation131_spill] sm:$0xff] %v4077_v7  ;;  %1233 = vrot.lane.b32.xlu0 %v5678_v6, %s3164_s15  ;;  %v5686_v7 = vld [vmem:[#allocation39_spill] sm:$0xff] }
 0x146   : > { %v4081_v0 = vpop.permute.xlu0 %1111 }
 0x147   : > { %5679 = vst [vmem:[#allocation132_spill] sm:$0xff] %v4081_v0 }
 0x148   : > { %1243 = vrot.lane.b32.xlu2 %v5680_v43, %s3164_s15  ;;  %v5689_v43 = vld [vmem:[#allocation32_spill] sm:$0xff] }
 0x149   : > { %1241 = vrot.lane.b32.xlu1 %v5681_v9, %s3164_s15 }
 0x14a   : > { %v4087_v10 = vpop.permute.xlu2 %1139 }
 0x14b   : > { %5682 = vst [vmem:[#allocation37_spill] sm:$0xff] %v4087_v10  ;;  %v4089_v59 = vpop.permute.xlu1 %1119 }
 0x14c   : > { %5683 = vst [vmem:[#allocation133_spill] sm:$0xff] %v4089_v59  ;;  %1239 = vrot.lane.b32.xlu0 %v5684_v63, %s3164_s15 }
 0x14e   : > { %v4093_v34 = vpop.permute.xlu0 %1117 }
 0x14f   : > { %5685 = vst [vmem:[#allocation27_spill] sm:$0xff] %v4093_v34 }
 0x150   : > { %1249 = vrot.lane.b32.xlu2 %v5686_v7, %s3164_s15 }
 0x151   : > { %1247 = vrot.lane.b32.xlu1 %v3570_v39, %s3164_s15  ;;  %v5692_v39 = vld [vmem:[#allocation38_spill] sm:$0xff] }
 0x152   : > { %v4099_v0 = vpop.permute.xlu2 %1145 }
 0x153   : > { %5687 = vst [vmem:[#allocation134_spill] sm:$0xff] %v4099_v0  ;;  %v4101_v6 = vpop.permute.xlu1 %1125 }
 0x154   : > { %5688 = vst [vmem:[#allocation135_spill] sm:$0xff] %v4101_v6  ;;  %1245 = vrot.lane.b32.xlu0 %v5689_v43, %s3164_s15  ;;  %v5693_v6 = vrot.slane %v3976_v17, 7  ;;  %v1198_v17 = vrot.slane %v3997_v42, 1 }
 0x156   : > { %v4105_v10 = vpop.permute.xlu0 %1123  ;;  %v4122_v43 = vsel %vm571_vm0, %v5693_v6, 0.0 }
 0x157   : > { %5690 = vst [vmem:[#allocation136_spill] sm:$0xff] %v4105_v10  ;;  %v5695_v10 = vld [vmem:[#allocation49_spill] sm:$0xff]  ;;  %v1201_v0 = vrot.slane %v4122_v43, 1 }
 0x158   : > { %1255 = vrot.lane.b32.xlu2 %v3585_v35, %s3164_s15  ;;  %5694 = vst [vmem:[#allocation138_spill] sm:$0xff] %v4122_v43  ;;  %v5697_v35 = vld [vmem:[#allocation43_spill] sm:$0xff] }
 0x159   : > { %1253 = vrot.lane.b32.xlu1 %v3598_v19, %s3164_s15 }
 0x15a   : > { %v4111_v59 = vpop.permute.xlu2 %1151 }
 0x15b   : > { %5691 = vst [vmem:[#allocation137_spill] sm:$0xff] %v4111_v59  ;;  %v4113_v7 = vpop.permute.xlu1 %1131  ;;  %v1199_v59 = vrot.slane %v3992_v16, 1 }
 0x15c   : > { %1251 = vrot.lane.b32.xlu0 %v5692_v39, %s3164_s15 }
 0x15e   : > { %v4117_v34 = vpop.permute.xlu0 %1129 }
 0x160   : > { %1261 = vrot.lane.b32.xlu2 %v3612_v18, %s3164_s15  ;;  %v4140_v18 = vsel %vm746_vm1, %v1199_v59, %v1201_v0 }
 0x161   : > { %1259 = vrot.lane.b32.xlu1 %v5695_v10, %s3164_s15  ;;  %5698 = vst [vmem:[#allocation140_spill] sm:$0xff] %v4140_v18  ;;  %v5708_v10 = vld [vmem:[#allocation52_spill] sm:$0xff] }
 0x162   : > { %v4128_v19 = vpop.permute.xlu2 %1157 }
 0x163   : > { %5696 = vst [vmem:[#allocation139_spill] sm:$0xff] %v4128_v19  ;;  %v4132_v39 = vpop.permute.xlu1 %1137  ;;  %v4147_v19 = vsel %vm746_vm1, %v1198_v17, %v1199_v59  ;;  %v5703_v59 = vld [vmem:[#allocation50_spill] sm:$0xff] }
 0x164   : > { %1257 = vrot.lane.b32.xlu0 %v5697_v35, %s3164_s15  ;;  %5699 = vst [vmem:[#allocation141_spill] sm:$0xff] %v4147_v19 }
 0x166   : > { %v4137_v6 = vpop.permute.xlu0 %1135 }
 0x168   : > { %1304 = vrot.lane.b32.xlu2 %v3630_v49, %s3165_s16 }
 0x169   : > { %1265 = vrot.lane.b32.xlu1 %v4140_v18, %s3164_s15 }
 0x16a   : > { %v4149_v43 = vpop.permute.xlu2 %1163 }
 0x16b   : > { %5700 = vst [vmem:[#allocation142_spill] sm:$0xff] %v4149_v43  ;;  %v4151_v16 = vpop.permute.xlu1 %1143  ;;  %v5705_v43 = vld [vmem:[#allocation55_spill] sm:$0xff] }
 0x16c   : > { %1263 = vrot.lane.b32.xlu0 %v4147_v19, %s3164_s15 }
 0x16e   : > { %v4155_v42 = vpop.permute.xlu0 %1141 }
 0x16f   : > { %5701 = vst [vmem:[#allocation143_spill] sm:$0xff] %v4155_v42  ;;  %v5720_v42 = vld [vmem:[#allocation62_spill] sm:$0xff] }
 0x170   : > { %1310 = vrot.lane.b32.xlu2 %v3649_v58, %s3165_s16 }
 0x171   : > { %1308 = vrot.lane.b32.xlu1 %v3656_v37, %s3165_s16 }
 0x172   : > { %v4161_v0 = vpop.permute.xlu2 %1207 }
 0x173   : > { %5702 = vst [vmem:[#allocation144_spill] sm:$0xff] %v4161_v0  ;;  %v4163_v49 = vpop.permute.xlu1 %1149 }
 0x174   : > { %1306 = vrot.lane.b32.xlu0 %v5703_v59, %s3165_s16 }
 0x176   : > { %v4167_v17 = vpop.permute.xlu0 %1147 }
 0x177   : > { %5704 = vst [vmem:[#allocation50_spill] sm:$0xff] %v4167_v17  ;;  %v5712_v17 = vld [vmem:[#allocation54_spill] sm:$0xff] }
 0x178   : > { %1316 = vrot.lane.b32.xlu2 %v3670_v20, %s3165_s16 }
 0x179   : > { %1314 = vrot.lane.b32.xlu1 %v5705_v43, %s3165_s16 }
 0x17a   : > { %v4173_v18 = vpop.permute.xlu2 %1213 }
 0x17b   : > { %5706 = vst [vmem:[#allocation55_spill] sm:$0xff] %v4173_v18  ;;  %v4175_v19 = vpop.permute.xlu1 %1155 }
 0x17c   : > { %5707 = vst [vmem:[#allocation145_spill] sm:$0xff] %v4175_v19  ;;  %1312 = vrot.lane.b32.xlu0 %v5708_v10, %s3165_s16  ;;  %v5714_v19 = vld [vmem:[#allocation64_spill] sm:$0xff] }
 0x17e   : > { %v4179_v0 = vpop.permute.xlu0 %1153 }
 0x17f   : > { %5709 = vst [vmem:[#allocation52_spill] sm:$0xff] %v4179_v0 }
 0x180   : > { %1322 = vrot.lane.b32.xlu2 %v3692_v28, %s3165_s16 }
 0x181   : > { %1320 = vrot.lane.b32.xlu1 %v3699_v1, %s3165_s16  ;;  %v5717_v1 = vld [vmem:[#allocation57_spill] sm:$0xff] }
 0x182   : > { %v4185_v59 = vpop.permute.xlu2 %1219 }
 0x183   : > { %5710 = vst [vmem:[#allocation146_spill] sm:$0xff] %v4185_v59  ;;  %v4187_v35 = vpop.permute.xlu1 %1161 }
 0x184   : > { %5711 = vst [vmem:[#allocation147_spill] sm:$0xff] %v4187_v35  ;;  %1318 = vrot.lane.b32.xlu0 %v5712_v17, %s3165_s16 }
 0x186   : > { %v4191_v18 = vpop.permute.xlu0 %1159 }
 0x187   : > { %5713 = vst [vmem:[#allocation148_spill] sm:$0xff] %v4191_v18 }
 0x188   : > { %1328 = vrot.lane.b32.xlu2 %v3717_v48, %s3165_s16 }
 0x189   : > { %1326 = vrot.lane.b32.xlu1 %v5714_v19, %s3165_s16 }
 0x18a   : > { %v4197_v0 = vpop.permute.xlu2 %1225 }
 0x18b   : > { %5715 = vst [vmem:[#allocation64_spill] sm:$0xff] %v4197_v0  ;;  %v4199_v28 = vpop.permute.xlu1 %1205 }
 0x18c   : > { %5716 = vst [vmem:[#allocation149_spill] sm:$0xff] %v4199_v28  ;;  %1324 = vrot.lane.b32.xlu0 %v5717_v1, %s3165_s16  ;;  %v5722_v28 = vld [vmem:[#allocation75_spill] sm:$0xff] }
 0x18e   : > { %v4203_v59 = vpop.permute.xlu0 %1203 }
 0x18f   : > { %5718 = vst [vmem:[#allocation57_spill] sm:$0xff] %v4203_v59 }
 0x190   : > { %1334 = vrot.lane.b32.xlu2 %v3743_v22, %s3165_s16 }
 0x191   : > { %1332 = vrot.lane.b32.xlu1 %v3750_v52, %s3165_s16  ;;  %v5724_v52 = vld [vmem:[#allocation67_spill] sm:$0xff] }
 0x192   : > { %v4209_v35 = vpop.permute.xlu2 %1231 }
 0x193   : > { %v4211_v18 = vpop.permute.xlu1 %1211 }
 0x194   : > { %5719 = vst [vmem:[#allocation150_spill] sm:$0xff] %v4211_v18  ;;  %1330 = vrot.lane.b32.xlu0 %v5720_v42, %s3165_s16 }
 0x196   : > { %v4215_v0 = vpop.permute.xlu0 %1209 }
 0x197   : > { %5721 = vst [vmem:[#allocation151_spill] sm:$0xff] %v4215_v0 }
 0x198   : > { %1340 = vrot.lane.b32.xlu2 %v3768_v57, %s3165_s16 }
 0x199   : > { %1338 = vrot.lane.b32.xlu1 %v5722_v28, %s3165_s16  ;;  %v5727_v28 = vld [vmem:[#allocation73_spill] sm:$0xff] }
 0x19a   : > { %v4221_v59 = vpop.permute.xlu2 %1237 }
 0x19b   : > { %v4223_v22 = vpop.permute.xlu1 %1217 }
 0x19c   : > { %5723 = vst [vmem:[#allocation152_spill] sm:$0xff] %v4223_v22  ;;  %1336 = vrot.lane.b32.xlu0 %v5724_v52, %s3165_s16  ;;  %v5729_v52 = vld [vmem:[#allocation78_spill] sm:$0xff] }
 0x19e   : > { %v4227_v17 = vpop.permute.xlu0 %1215 }
 0x19f   : > { %5725 = vst [vmem:[#allocation153_spill] sm:$0xff] %v4227_v17 }
 0x1a0   : > { %1346 = vrot.lane.b32.xlu2 %v3794_v36, %s3165_s16 }
 0x1a1   : > { %1344 = vrot.lane.b32.xlu1 %v3801_v8, %s3165_s16 }
 0x1a2   : > { %v4233_v18 = vpop.permute.xlu2 %1243 }
 0x1a3   : > { %v4235_v0 = vpop.permute.xlu1 %1223 }
 0x1a4   : > { %5726 = vst [vmem:[#allocation154_spill] sm:$0xff] %v4235_v0  ;;  %1342 = vrot.lane.b32.xlu0 %v5727_v28, %s3165_s16  ;;  %v5732_v0 = vld [vmem:[#allocation83_spill] sm:$0xff] }
 0x1a6   : > { %v4239_v42 = vpop.permute.xlu0 %1221 }
 0x1a7   : > { %5728 = vst [vmem:[#allocation73_spill] sm:$0xff] %v4239_v42 }
 0x1a8   : > { %1352 = vrot.lane.b32.xlu2 %v3819_v24, %s3165_s16 }
 0x1a9   : > { %1350 = vrot.lane.b32.xlu1 %v3826_v56, %s3165_s16 }
 0x1aa   : > { %v4245_v22 = vpop.permute.xlu2 %1249 }
 0x1ab   : > { %v4247_v17 = vpop.permute.xlu1 %1229 }
 0x1ac   : > { %1348 = vrot.lane.b32.xlu0 %v5729_v52, %s3165_s16 }
 0x1ae   : > { %v4251_v36 = vpop.permute.xlu0 %1227 }
 0x1af   : > { %5730 = vst [vmem:[#allocation78_spill] sm:$0xff] %v4251_v36 }
 0x1b0   : > { %1503 = vrot.lane.b32.xlu2 %v3266_v23, %s3166_s17 }
 0x1b1   : > { %1401 = vrot.lane.b32.xlu1 %v3250_v13, %s3167_s18 }
 0x1b2   : > { %v4257_v24 = vpop.permute.xlu2 %1255 }
 0x1b3   : > { %5731 = vst [vmem:[#allocation155_spill] sm:$0xff] %v4257_v24  ;;  %v4259_v56 = vpop.permute.xlu1 %1235 }
 0x1b4   : > { %1354 = vrot.lane.b32.xlu0 %v5732_v0, %s3165_s16 }
 0x1b6   : > { %v1234_v42 = vpop.permute.xlu0 %1233 }
 0x1b8   : > { %1505 = vrot.lane.b32.xlu2 %v5655_v44, %s3166_s17 }
 0x1b9   : > { %1403 = vrot.lane.b32.xlu1 %v3247_v12, %s3167_s18 }
 0x1ba   : > { %v4267_v36 = vpop.permute.xlu2 %1261 }
 0x1bb   : > { %5733 = vst [vmem:[#allocation156_spill] sm:$0xff] %v4267_v36  ;;  %v4269_v23 = vpop.permute.xlu1 %1241 }
 0x1bc   : > { %1604 = vrot.lane.b32.xlu0 %v3656_v37, %s3168_s19 }
 0x1be   : > { %v1240_v24 = vpop.permute.xlu0 %1239 }
 0x1c0   : > { %1417 = vrot.lane.b32.xlu2 %v3399_v40, %s3167_s18 }
 0x1c1   : > { %1405 = vrot.lane.b32.xlu1 %v3326_v54, %s3167_s18 }
 0x1c2   : > { %v4277_v0 = vpop.permute.xlu2 %1304 }
 0x1c3   : > { %v4279_v44 = vpop.permute.xlu1 %1247 }
 0x1c4   : > { %1606 = vrot.lane.b32.xlu0 %v3649_v58, %s3168_s19 }
 0x1c6   : > { %v1246_v36 = vpop.permute.xlu0 %1245 }
 0x1c8   : > { %1608 = vrot.lane.b32.xlu2 %v5708_v10, %s3168_s19 }
 0x1c9   : > { %1519 = vrot.lane.b32.xlu1 %v5664_v60, %s3166_s17 }
 0x1ca   : > { %v4287_v37 = vpop.permute.xlu2 %1310 }
 0x1cb   : > { %v4289_v40 = vpop.permute.xlu1 %1253 }
 0x1cc   : > { %1507 = vrot.lane.b32.xlu0 %v5652_v3, %s3166_s17 }
 0x1ce   : > { %v4293_v54 = vpop.permute.xlu0 %1251 }
 0x1d0   : > { %1419 = vrot.lane.b32.xlu2 %v3381_v30, %s3167_s18 }
 0x1d1   : > { %1407 = vrot.lane.b32.xlu1 %v3311_v47, %s3167_s18 }
 0x1d2   : > { %v4299_v58 = vpop.permute.xlu2 %1316 }
 0x1d3   : > { %v4301_v10 = vpop.permute.xlu1 %1259 }
 0x1d4   : > { %5734 = vst [vmem:[#allocation157_spill] sm:$0xff] %v4301_v10  ;;  %1620 = vrot.lane.b32.xlu0 %v5717_v1, %s3168_s19 }
 0x1d6   : > { %v4305_v60 = vpop.permute.xlu0 %1257 }
 0x1d8   : > { %1433 = vrot.lane.b32.xlu2 %v3449_v11, %s3167_s18 }
 0x1d9   : > { %1521 = vrot.lane.b32.xlu1 %v5663_v2, %s3166_s17 }
 0x1da   : > { %v4311_v3 = vpop.permute.xlu2 %1322 }
 0x1db   : > { %v4313_v12 = vpop.permute.xlu1 %1265 }
 0x1dc   : > { %5735 = vst [vmem:[#allocation158_spill] sm:$0xff] %v4313_v12  ;;  %1509 = vrot.lane.b32.xlu0 %v3336_v61, %s3166_s17  ;;  %v1716_v61 = vsel %vm1700_vm3, %v3374_v21, %v3842_v29 }
 0x1de   : > { %v4317_v47 = vpop.permute.xlu0 %1263 }
 0x1df   : > { %5736 = vst [vmem:[#allocation159_spill] sm:$0xff] %v4317_v47 }
 0x1e0   : > { %1535 = vrot.lane.b32.xlu2 %v5684_v63, %s3166_s17  ;;  %v1749_v63 = vsel %vm1733_vm4, %v1716_v61, %v3930_v14 }
 0x1e1   : > { %1622 = vrot.lane.b32.xlu1 %v5714_v19, %s3168_s19  ;;  %v1782_v19 = vsel %vm1766_vm5, %v1749_v63, %v4113_v7  ;;  %v1719_v7 = vsel %vm1700_vm3, %v3469_v55, %v3861_v38 }
 0x1e2   : > { %v4323_v1 = vpop.permute.xlu2 %1328  ;;  %v1752_v61 = vsel %vm1733_vm4, %v1719_v7, %v3942_v62 }
 0x1e3   : > { %v4325_v10 = vpop.permute.xlu1 %1308 }
 0x1e4   : > { %1610 = vrot.lane.b32.xlu0 %v5705_v43, %s3168_s19  ;;  %v1815_v43 = vsel %vm1799_vm6, %v1782_v19, %v1234_v42  ;;  %v1785_v42 = vsel %vm1766_vm5, %v1752_v61, %v4132_v39  ;;  %v1722_v39 = vsel %vm1700_vm3, %v3446_v26, %v3876_v5 }
 0x1e6   : > { %v4329_v2 = vpop.permute.xlu0 %1306 }
 0x1e8   : > { %1421 = vrot.lane.b32.xlu2 %v3377_v25, %s3167_s18 }
 0x1e9   : > { %1409 = vrot.lane.b32.xlu1 %v3308_v46, %s3167_s18 }
 0x1ea   : > { %v1335_v12 = vpop.permute.xlu2 %1334 }
 0x1eb   : > { %v4343_v29 = vpop.permute.xlu1 %1314  ;;  %v4346_v47 = vsel %vm1832_vm7, %v1815_v43, %v1335_v12  ;;  %v1818_v12 = vsel %vm1799_vm6, %v1785_v42, %v1240_v24 }
 0x1ec   : > { %1636 = vrot.lane.b32.xlu0 %v3768_v57, %s3168_s19 }
 0x1ee   : > { %v4350_v14 = vpop.permute.xlu0 %1312 }
 0x1f0   : > { %1435 = vrot.lane.b32.xlu2 %v3446_v26, %s3167_s18 }
 0x1f1   : > { %1523 = vrot.lane.b32.xlu1 %v5672_v53, %s3166_s17  ;;  %v1755_v53 = vsel %vm1733_vm4, %v1722_v39, %v3954_v15  ;;  %v5741_v39 = vld [vmem:[#allocation115_spill] sm:$0xff] }
 0x1f2   : > { %v1341_v57 = vpop.permute.xlu2 %1340  ;;  %v1788_v24 = vsel %vm1766_vm5, %v1755_v53, %v4151_v16  ;;  %v1725_v16 = vsel %vm1700_vm3, %v3543_v41, %v3888_v4 }
 0x1f3   : > { %v4364_v63 = vpop.permute.xlu1 %1320  ;;  %v4367_v19 = vsel %vm1832_vm7, %v1818_v12, %v1341_v57  ;;  %v1968_v12 = vld [vmem:[%s5397_s3 + $0x20] sm:$0xf]  ;;  %v5740_v57 = vld [vmem:[#allocation30_spill] sm:$0xff] }
 0x1f4   : > { %1511 = vrot.lane.b32.xlu0 %v5661_v32, %s3166_s17  ;;  %v1821_v32 = vsel %vm1799_vm6, %v1788_v24, %v1246_v36  ;;  %v1758_v36 = vsel %vm1733_vm4, %v1725_v16, %v3966_v50  ;;  %v5738_v50 = vld [vmem:[#allocation82_spill] sm:$0xff]  ;;  %2950 = vmatpush.msk.msra.mxu0 %vm2070_vm8, %v1968_v12 }
 0x1f5   : > { %3024 = vmatpush.msk.msra.mxu1 %vm2070_vm8, %v1968_v12  ;;  %3025 = vmatpush.msk.msra.mxu2 %vm2070_vm8, %v1968_v12  ;;  %v5742_v24 = vld [vmem:[#allocation26_spill] sm:$0xff] }
 0x1f6   : > { %v4371_v62 = vpop.permute.xlu0 %1318  ;;  %3026 = vmatpush.msk.msra.mxu3 %vm2070_vm8, %v1968_v12  ;;  %v5749_v12 = vld [vmem:[#allocation62_spill] sm:$0xff] }
 0x1f8   : > { %1537 = vrot.lane.b32.xlu2 %v5681_v9, %s3166_s17  ;;  %v5737_v9 = vld [vmem:[#allocation65_spill] sm:$0xff] }
 0x1f9   : > { %1624 = vrot.lane.b32.xlu1 %v3717_v48, %s3168_s19  ;;  %v1715_v48 = vsel %vm1700_vm3, %v3377_v25, %v5737_v9  ;;  %v5743_v9 = vld [vmem:[#allocation88_spill] sm:$0xff] }
 0x1fa   : > { %v1347_v38 = vpop.permute.xlu2 %1346  ;;  %v1748_v15 = vsel %vm1733_vm4, %v1715_v48, %v3968_v31  ;;  %v5744_v48 = vld [vmem:[#allocation21_spill] sm:$0xff] }
 0x1fb   : > { %v4385_v43 = vpop.permute.xlu1 %1326  ;;  %v4388_v7 = vsel %vm1832_vm7, %v1821_v32, %v1347_v38  ;;  %v1781_v5 = vsel %vm1766_vm5, %v1748_v15, %v4117_v34  ;;  %v1966_v32 = vld [vmem:[%s5397_s3 + $0x10] sm:$0xff] }
 0x1fc   : > { %1612 = vrot.lane.b32.xlu0 %v3670_v20, %s3168_s19  ;;  %v1791_v20 = vsel %vm1766_vm5, %v1758_v36, %v4163_v49  ;;  %v1814_v31 = vsel %vm1799_vm6, %v1781_v5, %v4209_v35  ;;  %v1717_v36 = vsel %vm1700_vm3, %v5744_v48, %v5743_v9  ;;  %v5745_v5 = vld [vmem:[#allocation117_spill] sm:$0xff] }
 0x1fd   : > { %v1824_v25 = vsel %vm1799_vm6, %v1791_v20, %v4293_v54 }
 0x1fe   : > { %v4392_v26 = vpop.permute.xlu0 %1324 }
 0x200   : > { %1423 = vrot.lane.b32.xlu2 %v3374_v21, %s3167_s18  ;;  %v1714_v21 = vsel %vm1700_vm3, %v3381_v30, %v5738_v50  ;;  %v1965_v50 = vld [vmem:[%s5397_s3 + $0x8] sm:$0xff] }
 0x201   : > { %1411 = vrot.lane.b32.xlu1 %v3305_v45, %s3167_s18  ;;  %v1747_v42 = vsel %vm1733_vm4, %v1714_v21, %v3972_v33  ;;  %v5747_v21 = vld [vmem:[#allocation130_spill] sm:$0xff] }
 0x202   : > { %v1353_v4 = vpop.permute.xlu2 %1352  ;;  %v1780_v54 = vsel %vm1766_vm5, %v1747_v42, %v4063_v27  ;;  %v5739_v27 = vld [vmem:[#allocation71_spill] sm:$0xff] }
 0x203   : > { %v1333_v61 = vpop.permute.xlu1 %1332  ;;  %v4420_v49 = vsel %vm1832_vm7, %v1824_v25, %v1353_v4  ;;  %v1813_v30 = vsel %vm1799_vm6, %v1780_v54, %v4247_v17  ;;  %v1718_v17 = vsel %vm1700_vm3, %v3411_v51, %v5739_v27  ;;  %v1750_v25 = vsel %vm1733_vm4, %v1717_v36, %v5745_v5  ;;  %v5746_v4 = vld [vmem:[#allocation17_spill] sm:$0xff]  ;;  %v1964_v42 = vld [vmem:[%s5397_s3] sm:$0xff] }
 0x204   : > { %v4425_v34 = vsel %vm1832_vm7, %v1814_v31, %v1333_v61  ;;  %1638 = vrot.lane.b32.xlu0 %v5727_v28, %s3168_s19  ;;  %v1967_v28 = vld [vmem:[%s5397_s3 + $0x18] sm:$0xff]  ;;  %v1751_v53 = vsel %vm1733_vm4, %v1718_v17, %v5741_v39 }
 0x205   : > { %2086 = vmatpush.msra.mxu0 %v1967_v28  ;;  %v1784_v38 = vsel %vm1766_vm5, %v1751_v53, %v4137_v6  ;;  %3027 = vmatpush.msra.mxu1 %v1967_v28  ;;  %v5751_v17 = vld [vmem:[#allocation54_spill] sm:$0xff] }
 0x206   : > { %v1331_v35 = vpop.permute.xlu0 %1330  ;;  %3028 = vmatpush.msra.mxu2 %v1967_v28  ;;  %v1817_v15 = vsel %vm1799_vm6, %v1784_v38, %v4221_v59  ;;  %v1783_v59 = vsel %vm1766_vm5, %v1750_v25, %v5747_v21  ;;  %3029 = vmatpush.msra.mxu3 %v1967_v28  ;;  %v5752_v28 = vld [vmem:[#allocation143_spill] sm:$0xff]  ;;  %v5754_v38 = vld [vmem:[#allocation25_spill] sm:$0xff] }
 0x207   : > { %v4437_v33 = vsel %vm1832_vm7, %v1813_v30, %v1331_v35  ;;  %2087 = vmatpush.msra.mxu0 %v1966_v32  ;;  %3030 = vmatpush.msra.mxu1 %v1966_v32  ;;  %v1816_v31 = vsel %vm1799_vm6, %v1783_v59, %v4259_v56  ;;  %v5748_v30 = vld [vmem:[#allocation76_spill] sm:$0xff]  ;;  %v5756_v25 = vld [vmem:[#allocation41_spill] sm:$0xff] }
 0x208   : > { %1437 = vrot.lane.b32.xlu2 %v5740_v57, %s3167_s18  ;;  %3031 = vmatpush.msra.mxu2 %v1966_v32  ;;  %v1721_v35 = vsel %vm1700_vm3, %v3449_v11, %v5748_v30  ;;  %v5750_v56 = vld [vmem:[#allocation120_spill] sm:$0xff] }
 0x209   : > { %1525 = vrot.lane.b32.xlu1 %v5742_v24, %s3166_s17  ;;  %2088 = vmatpush.msra.mxu0 %v1965_v50  ;;  %v1754_v27 = vsel %vm1733_vm4, %v1721_v35, %v5750_v56  ;;  %v5753_v24 = vld [vmem:[#allocation93_spill] sm:$0xff]  ;;  %v5760_v35 = vld [vmem:[#allocation123_spill] sm:$0xff]  ;;  %v5762_v56 = vld [vmem:[#allocation50_spill] sm:$0xff] }
 0x20a   : > { %v4459_v16 = vpop.permute.xlu2 %1503  ;;  %3033 = vmatpush.msra.mxu1 %v1965_v50  ;;  %3034 = vmatpush.msra.mxu2 %v1965_v50  ;;  %v1787_v39 = vsel %vm1766_vm5, %v1754_v27, %v5752_v28  ;;  %v1720_v11 = vsel %vm1700_vm3, %v5754_v38, %v5753_v24  ;;  %v5763_v27 = vld [vmem:[#allocation96_spill] sm:$0xff] }
 0x20b   : > { %v1339_v20 = vpop.permute.xlu1 %1338  ;;  %2089 = vmatpush.msra.mxu0 %v1964_v42  ;;  %3032 = vmatpush.msra.mxu3 %v1966_v32  ;;  %v1820_v9 = vsel %vm1799_vm6, %v1787_v39, %v4233_v18 }
 0x20c   : > { %v4470_v6 = vsel %vm1832_vm7, %v1817_v15, %v1339_v20  ;;  %1513 = vrot.lane.b32.xlu0 %v5746_v4, %s3166_s17  ;;  %3036 = vmatpush.msra.mxu1 %v1964_v42  ;;  %v5755_v15 = vld [vmem:[#allocation121_spill] sm:$0xff] }
 0x20d   : > { %3037 = vmatpush.msra.mxu2 %v1964_v42  ;;  %v1753_v20 = vsel %vm1733_vm4, %v1720_v11, %v5755_v15  ;;  %3035 = vmatpush.msra.mxu3 %v1965_v50  ;;  %v5757_v4 = vld [vmem:[#allocation37_spill] sm:$0xff] }
 0x20e   : > { %v1337_v61 = vpop.permute.xlu0 %1336  ;;  %v1786_v32 = vsel %vm1766_vm5, %v1753_v20, %v5757_v4 }
 0x20f   : > { %v4485_v54 = vsel %vm1832_vm7, %v1816_v31, %v1337_v61  ;;  %v1819_v21 = vsel %vm1799_vm6, %v1786_v32, %v4269_v23  ;;  %3038 = vmatpush.msra.mxu3 %v1964_v42  ;;  %v5758_v31 = vld [vmem:[#allocation81_spill] sm:$0xff] }
 0x210   : > { %1626 = vrot.lane.b32.xlu2 %v5749_v12, %s3168_s19  ;;  %v5759_v61 = vld [vmem:[#allocation29_spill] sm:$0xff]  ;;  %v5761_v12 = vld [vmem:[#allocation44_spill] sm:$0xff] }
 0x211   : > { %1614 = vrot.lane.b32.xlu1 %v5751_v17, %s3168_s19  ;;  %v1724_v30 = vsel %vm1700_vm3, %v5759_v61, %v5758_v31  ;;  %v1723_v17 = vsel %vm1700_vm3, %v5740_v57, %v5763_v27 }
 0x212   : > { %v4498_v53 = vpop.permute.xlu2 %1505  ;;  %v1757_v50 = vsel %vm1733_vm4, %v1724_v30, %v5760_v35  ;;  %v5770_v35 = vld [vmem:[#allocation8_spill] sm:$0xff] }
 0x213   : > { %v1345_v36 = vpop.permute.xlu1 %1344  ;;  %v1790_v23 = vsel %vm1766_vm5, %v1757_v50, %v5762_v56 }
 0x214   : > { %v4508_v5 = vsel %vm1832_vm7, %v1820_v9, %v1345_v36  ;;  %1449 = vrot.lane.b32.xlu0 %v5756_v25, %s3167_s18  ;;  %v1823_v28 = vsel %vm1799_vm6, %v1790_v23, %v4245_v22  ;;  %v5765_v9 = vld [vmem:[#allocation33_spill] sm:$0xff]  ;;  %v5766_v36 = vld [vmem:[#allocation134_spill] sm:$0xff]  ;;  %v5773_v23 = vld [vmem:[#allocation63_spill] sm:$0xff] }
 0x215   : > { %v5767_v22 = vld [vmem:[#allocation13_spill] sm:$0xff] }
 0x216   : > { %v1343_v59 = vpop.permute.xlu0 %1342 }
 0x217   : > { %v4517_v18 = vsel %vm1832_vm7, %v1819_v21, %v1343_v59  ;;  %v5768_v21 = vld [vmem:[#allocation98_spill] sm:$0xff]  ;;  %v5769_v59 = vld [vmem:[#allocation36_spill] sm:$0xff] }
 0x218   : > { %1640 = vrot.lane.b32.xlu2 %v3801_v8, %s3168_s19  ;;  %v5764_v8 = vld [vmem:[#allocation124_spill] sm:$0xff]  ;;  %v1726_v31 = vsel %vm1700_vm3, %v5769_v59, %v5768_v21 }
 0x219   : > { %1551 = vrot.lane.b32.xlu1 %v5761_v12, %s3166_s17  ;;  %v1756_v24 = vsel %vm1733_vm4, %v1723_v17, %v5764_v8  ;;  %v1759_v50 = vsel %vm1733_vm4, %v1726_v31, %v5770_v35  ;;  %v5772_v12 = vld [vmem:[#allocation137_spill] sm:$0xff] }
 0x21a   : > { %v4530_v42 = vpop.permute.xlu2 %1417  ;;  %v1789_v15 = vsel %vm1766_vm5, %v1756_v24, %v5766_v36  ;;  %v1792_v56 = vsel %vm1766_vm5, %v1759_v50, %v5772_v12  ;;  %v5779_v50 = vld [vmem:[#allocation16_spill] sm:$0xff]  ;;  %v5781_v12 = vld [vmem:[#allocation6_spill] sm:$0xff] }
 0x21b   : > { %v1351_v39 = vpop.permute.xlu1 %1350  ;;  %v1822_v20 = vsel %vm1799_vm6, %v1789_v15, %v4279_v44  ;;  %v5771_v44 = vld [vmem:[#allocation91_spill] sm:$0xff]  ;;  %v1825_v17 = vsel %vm1799_vm6, %v1792_v56, %v4289_v40  ;;  %v5777_v15 = vld [vmem:[#allocation57_spill] sm:$0xff] }
 0x21c   : > { %v4540_v11 = vsel %vm1832_vm7, %v1823_v28, %v1351_v39  ;;  %1539 = vrot.lane.b32.xlu0 %v5765_v9, %s3166_s17  ;;  %v5775_v39 = vld [vmem:[#allocation95_spill] sm:$0xff]  ;;  %v5776_v9 = vld [vmem:[#allocation22_spill] sm:$0xff] }
 0x21e   : > { %v1349_v57 = vpop.permute.xlu0 %1348 }
 0x21f   : > { %v4549_v4 = vsel %vm1832_vm7, %v1822_v20, %v1349_v57  ;;  %v5778_v57 = vld [vmem:[#allocation24_spill] sm:$0xff] }
 0x220   : > { %1425 = vrot.lane.b32.xlu2 %v5744_v48, %s3167_s18  ;;  %v5774_v48 = vld [vmem:[#allocation7_spill] sm:$0xff] }
 0x221   : > { %1413 = vrot.lane.b32.xlu1 %v5767_v22, %s3167_s18  ;;  %v1701_v27 = vsel %vm1700_vm3, %v5774_v48, %v5773_v23  ;;  %v5782_v48 = vld [vmem:[#allocation107_spill] sm:$0xff] }
 0x222   : > { %v1609_v32 = vpop.permute.xlu2 %1608  ;;  %v1734_v8 = vsel %vm1733_vm4, %v1701_v27, %v5775_v39  ;;  %v5784_v39 = vld [vmem:[#allocation70_spill] sm:$0xff] }
 0x223   : > { %v1402_v30 = vpop.permute.xlu1 %1401  ;;  %v1767_v36 = vsel %vm1766_vm5, %v1734_v8, %v5776_v9  ;;  %v5785_v8 = vld [vmem:[#allocation149_spill] sm:$0xff] }
 0x224   : > { %1652 = vrot.lane.b32.xlu0 %v5771_v44, %s3168_s19  ;;  %v1800_v20 = vsel %vm1799_vm6, %v1767_v36, %v5777_v15  ;;  %v5786_v36 = vld [vmem:[#allocation59_spill] sm:$0xff] }
 0x225   : > { %v1833_v40 = vsel %vm1832_vm7, %v1800_v20, %v4277_v0 }
 0x226   : > { %v1355_v28 = vpop.permute.xlu0 %1354  ;;  %v1866_v31 = vsel %vm1865_vm9, %v1833_v40, %v1402_v30  ;;  %v5787_v40 = vld [vmem:[#allocation40_spill] sm:$0xff] }
 0x227   : > { %v4572_v24 = vsel %vm1832_vm7, %v1825_v17, %v1355_v28  ;;  %v1899_v0 = vsel %vm1898_vm10, %v1866_v31, %v4459_v16  ;;  %v5783_v17 = vld [vmem:[#allocation122_spill] sm:$0xff] }
 0x228   : > { %1439 = vrot.lane.b32.xlu2 %v5759_v61, %s3167_s18  ;;  %v5780_v61 = vld [vmem:[#allocation68_spill] sm:$0xff] }
 0x229   : > { %1527 = vrot.lane.b32.xlu1 %v5778_v57, %s3166_s17  ;;  %v1702_v56 = vsel %vm1700_vm3, %v5781_v12, %v5780_v61  ;;  %v5788_v12 = vld [vmem:[#allocation80_spill] sm:$0xff] }
 0x22a   : > { %v4584_v21 = vpop.permute.xlu2 %1419  ;;  %v1735_v27 = vsel %vm1733_vm4, %v1702_v56, %v5782_v48  ;;  %v5790_v56 = vld [vmem:[#allocation4_spill] sm:$0xff] }
 0x22b   : > { %v1404_v35 = vpop.permute.xlu1 %1403  ;;  %v1768_v28 = vsel %vm1766_vm5, %v1735_v27, %v5783_v17 }
 0x22c   : > { %1515 = vrot.lane.b32.xlu0 %v5779_v50, %s3166_s17  ;;  %v1801_v9 = vsel %vm1799_vm6, %v1768_v28, %v5785_v8  ;;  %v5794_v28 = vld [vmem:[#allocation144_spill] sm:$0xff] }
 0x22d   : > { %v1834_v16 = vsel %vm1832_vm7, %v1801_v9, %v4329_v2  ;;  %v5789_v2 = vld [vmem:[#allocation61_spill] sm:$0xff]  ;;  %v5795_v8 = vld [vmem:[#allocation32_spill] sm:$0xff] }
 0x22e   : > { %v1605_v23 = vpop.permute.xlu0 %1604  ;;  %v1867_v20 = vsel %vm1865_vm9, %v1834_v16, %v1404_v35  ;;  %v5791_v35 = vld [vmem:[#allocation43_spill] sm:$0xff] }
 0x22f   : > { %v1932_v30 = vsel %vm1931_vm11, %v1899_v0, %v1605_v23  ;;  %v1900_v50 = vsel %vm1898_vm10, %v1867_v20, %v4498_v53  ;;  %v1703_v23 = vsel %vm1700_vm3, %v5790_v56, %v5789_v2  ;;  %v5792_v0 = vld [vmem:[#allocation106_spill] sm:$0xff]  ;;  %v5793_v53 = vld [vmem:[#allocation19_spill] sm:$0xff] }
 0x230   : > { %2951 = vmatmul.msk.f32.vlgmr.msra.gmra.mxu0 %vm1973_vm12, %v1932_v30  ;;  %1628 = vrot.lane.b32.xlu2 %v5784_v39, %s3168_s19  ;;  %v1736_v48 = vsel %vm1733_vm4, %v1703_v23, %v5792_v0  ;;  %v5801_v0 = vld [vmem:[#allocation90_spill] sm:$0xff] }
 0x231   : > { %1616 = vrot.lane.b32.xlu1 %v5786_v36, %s3168_s19  ;;  %v1769_v30 = vsel %vm1766_vm5, %v1736_v48, %v5793_v53 }
 0x232   : > { %v4608_v15 = vpop.permute.xlu2 %1433  ;;  %v1802_v39 = vsel %vm1799_vm6, %v1769_v30, %v5794_v28 }
 0x233   : > { %v1406_v57 = vpop.permute.xlu1 %1405  ;;  %v1835_v9 = vsel %vm1832_vm7, %v1802_v39, %v4325_v10  ;;  %v5798_v10 = vld [vmem:[#allocation12_spill] sm:$0xff]  ;;  %v5802_v39 = vld [vmem:[#allocation23_spill] sm:$0xff] }
 0x234   : > { %1451 = vrot.lane.b32.xlu0 %v5787_v40, %s3167_s18  ;;  %v1868_v36 = vsel %vm1865_vm9, %v1835_v9, %v1406_v57  ;;  %v5799_v57 = vld [vmem:[#allocation27_spill] sm:$0xff] }
 0x236   : > { %v1607_v31 = vpop.permute.xlu0 %1606 }
 0x237   : > { %v1933_v61 = vsel %vm1931_vm11, %v1900_v50, %v1607_v31  ;;  %v5796_v31 = vld [vmem:[#allocation56_spill] sm:$0xff] }
 0x238   : > { %2952 = vmatmul.msk.f32.gmra.mxu0 %vm1973_vm12, %v1933_v61  ;;  %1642 = vrot.lane.b32.xlu2 %v5788_v12, %s3168_s19  ;;  %v1709_v50 = vsel %vm1700_vm3, %v3308_v46, %v5796_v31  ;;  %v5797_v12 = vld [vmem:[#allocation110_spill] sm:$0xff]  ;;  %v5806_v31 = vld [vmem:[#allocation133_spill] sm:$0xff] }
 0x239   : > { %1553 = vrot.lane.b32.xlu1 %v5791_v35, %s3166_s17  ;;  %v1742_v2 = vsel %vm1733_vm4, %v1709_v50, %v5797_v12  ;;  %v5800_v35 = vld [vmem:[#allocation146_spill] sm:$0xff]  ;;  %v5808_v12 = vld [vmem:[#allocation5_spill] sm:$0xff] }
 0x23a   : > { %v4626_v27 = vpop.permute.xlu2 %1535  ;;  %v1775_v56 = vsel %vm1766_vm5, %v1742_v2, %v5799_v57  ;;  %v5809_v57 = vld [vmem:[#allocation73_spill] sm:$0xff] }
 0x23b   : > { %v1520_v17 = vpop.permute.xlu1 %1519  ;;  %v1808_v46 = vsel %vm1799_vm6, %v1775_v56, %v5800_v35  ;;  %v5811_v35 = vld [vmem:[#allocation97_spill] sm:$0xff] }
 0x23c   : > { %1541 = vrot.lane.b32.xlu0 %v5795_v8, %s3166_s17  ;;  %v5803_v8 = vld [vmem:[#allocation15_spill] sm:$0xff] }
 0x23e   : > { %v1508_v16 = vpop.permute.xlu0 %1507 }
 0x23f   : > { %v1901_v20 = vsel %vm1898_vm10, %v1868_v36, %v1508_v16  ;;  %v5805_v36 = vld [vmem:[#allocation102_spill] sm:$0xff] }
 0x240   : > { %v1934_v61 = vsel %vm1931_vm11, %v1901_v20, %v1609_v32  ;;  %1427 = vrot.lane.b32.xlu2 %v3411_v51, %s3167_s18  ;;  %v1841_v51 = vsel %vm1832_vm7, %v1808_v46, %v4364_v63 }
 0x241   : > { %2953 = vmatmul.msk.f32.gmra.mxu0 %vm1973_vm12, %v1934_v61  ;;  %1415 = vrot.lane.b32.xlu1 %v5798_v10, %s3167_s18  ;;  %v1874_v48 = vsel %vm1865_vm9, %v1841_v51, %v4530_v42  ;;  %v5804_v42 = vld [vmem:[#allocation79_spill] sm:$0xff]  ;;  %v5807_v61 = vld [vmem:[#allocation66_spill] sm:$0xff] }
 0x242   : > { %v4651_v23 = vpop.permute.xlu2 %1421  ;;  %v1907_v53 = vsel %vm1898_vm10, %v1874_v48, %v1520_v17  ;;  %v1710_v17 = vsel %vm1700_vm3, %v3305_v45, %v5804_v42  ;;  %v1704_v2 = vsel %vm1700_vm3, %v5808_v12, %v5807_v61  ;;  %v5812_v51 = vld [vmem:[#allocation47_spill] sm:$0xff]  ;;  %v5813_v48 = vld [vmem:[#allocation129_spill] sm:$0xff] }
 0x243   : > { %v1408_v32 = vpop.permute.xlu1 %1407  ;;  %v1743_v16 = vsel %vm1733_vm4, %v1710_v17, %v5805_v36  ;;  %v1737_v45 = vsel %vm1733_vm4, %v1704_v2, %v5811_v35  ;;  %v5817_v12 = vld [vmem:[#allocation69_spill] sm:$0xff] }
 0x244   : > { %1654 = vrot.lane.b32.xlu0 %v5801_v0, %s3168_s19  ;;  %v1776_v50 = vsel %vm1766_vm5, %v1743_v16, %v5806_v31 }
 0x245   : > { %v1809_v56 = vsel %vm1799_vm6, %v1776_v50, %v5809_v57 }
 0x246   : > { %v1621_v30 = vpop.permute.xlu0 %1620  ;;  %v1842_v46 = vsel %vm1832_vm7, %v1809_v56, %v4311_v3  ;;  %v5818_v56 = vld [vmem:[#allocation89_spill] sm:$0xff] }
 0x247   : > { %v1940_v28 = vsel %vm1931_vm11, %v1907_v53, %v1621_v30  ;;  %v1770_v53 = vsel %vm1766_vm5, %v1737_v45, %v5813_v48  ;;  %v1875_v30 = vsel %vm1865_vm9, %v1842_v46, %v4584_v21  ;;  %v5821_v48 = vld [vmem:[#allocation20_spill] sm:$0xff] }
 0x248   : > { %2959 = vmatmul.msk.f32.vlgmr.msra.gmra.mxu1 %vm1973_vm12, %v1940_v28  ;;  %1529 = vrot.lane.b32.xlu2 %v5802_v39, %s3166_s17  ;;  %v5814_v39 = vld [vmem:[#allocation151_spill] sm:$0xff] }
 0x249   : > { %1517 = vrot.lane.b32.xlu1 %v5803_v8, %s3166_s17  ;;  %v1803_v8 = vsel %vm1799_vm6, %v1770_v53, %v5814_v39  ;;  %v5822_v53 = vld [vmem:[#allocation51_spill] sm:$0xff]  ;;  %v5823_v39 = vld [vmem:[#allocation154_spill] sm:$0xff] }
 0x24a   : > { %v4668_v63 = vpop.permute.xlu2 %1435  ;;  %v1836_v36 = vsel %vm1832_vm7, %v1803_v8, %v4287_v37  ;;  %v5816_v37 = vld [vmem:[#allocation42_spill] sm:$0xff] }
 0x24b   : > { %v1522_v9 = vpop.permute.xlu1 %1521  ;;  %v1869_v16 = vsel %vm1865_vm9, %v1836_v36, %v1408_v32  ;;  %v1882_v32 = vsel %vm1865_vm9, %v4485_v54, %v4608_v15  ;;  %v5819_v54 = vld [vmem:[#allocation77_spill] sm:$0xff]  ;;  %v5826_v36 = vld [vmem:[#allocation14_spill] sm:$0xff] }
 0x24c   : > { %1356 = vrot.lane.b32.xlu0 %v5771_v44, %s3165_s16  ;;  %v5810_v44 = vld [vmem:[#allocation58_spill] sm:$0xff]  ;;  %v1908_v42 = vsel %vm1898_vm10, %v1875_v30, %v1522_v9  ;;  %v5815_v9 = vld [vmem:[#allocation49_spill] sm:$0xff]  ;;  %v1711_v15 = vsel %vm1700_vm3, %v5767_v22, %v5819_v54  ;;  %v1705_v30 = vsel %vm1700_vm3, %v3250_v13, %v5822_v53 }
 0x24e   : > { %v1510_v20 = vpop.permute.xlu0 %1509 }
 0x24f   : > { %v1902_v21 = vsel %vm1898_vm10, %v1869_v16, %v1510_v20  ;;  %v1915_v20 = vsel %vm1898_vm10, %v1882_v32, %v4626_v27  ;;  %v5820_v27 = vld [vmem:[#allocation113_spill] sm:$0xff] }
 0x250   : > { %1618 = vrot.lane.b32.xlu2 %v5810_v44, %s3168_s19  ;;  %v1744_v45 = vsel %vm1733_vm4, %v1711_v15, %v5820_v27 }
 0x251   : > { %1453 = vrot.lane.b32.xlu1 %v5812_v51, %s3167_s18 }
 0x252   : > { %v1538_v28 = vpop.permute.xlu2 %1537 }
 0x253   : > { %v1623_v17 = vpop.permute.xlu1 %1622 }
 0x254   : > { %1441 = vrot.lane.b32.xlu0 %v3543_v41, %s3167_s18  ;;  %v1941_v3 = vsel %vm1931_vm11, %v1908_v42, %v1623_v17  ;;  %v5825_v17 = vld [vmem:[#allocation31_spill] sm:$0xff] }
 0x255   : > { %2960 = vmatmul.msk.f32.gmra.mxu1 %vm1973_vm12, %v1941_v3 }
 0x256   : > { %v1611_v31 = vpop.permute.xlu0 %1610 }
 0x257   : > { %v1935_v50 = vsel %vm1931_vm11, %v1902_v21, %v1611_v31  ;;  %v5827_v21 = vld [vmem:[#allocation150_spill] sm:$0xff] }
 0x258   : > { %2954 = vmatmul.msk.f32.gmra.mxu0 %vm1973_vm12, %v1935_v50  ;;  %1555 = vrot.lane.b32.xlu2 %v5815_v9, %s3166_s17 }
 0x259   : > { %1543 = vrot.lane.b32.xlu1 %v5816_v37, %s3166_s17 }
 0x25a   : > { %v1424_v41 = vpop.permute.xlu2 %1423 }
 0x25b   : > { %v1410_v61 = vpop.permute.xlu1 %1409 }
 0x25c   : > { %1630 = vrot.lane.b32.xlu0 %v5817_v12, %s3168_s19 }
 0x25e   : > { %v1637_v2 = vpop.permute.xlu0 %1636 }
 0x25f   : > { %v1948_v57 = vsel %vm1931_vm11, %v1915_v20, %v1637_v2  ;;  %v5828_v20 = vld [vmem:[#allocation39_spill] sm:$0xff] }
 0x260   : > { %2967 = vmatmul.msk.f32.vlgmr.msra.gmra.mxu2 %vm1973_vm12, %v1948_v57  ;;  %1429 = vrot.lane.b32.xlu2 %v3469_v55, %s3167_s18  ;;  %v1777_v55 = vsel %vm1766_vm5, %v1744_v45, %v5821_v48  ;;  %v5830_v57 = vld [vmem:[#allocation45_spill] sm:$0xff]  ;;  %v5832_v45 = vld [vmem:[#allocation112_spill] sm:$0xff] }
 0x261   : > { %1656 = vrot.lane.b32.xlu1 %v5818_v56, %s3168_s19  ;;  %v1810_v8 = vsel %vm1799_vm6, %v1777_v55, %v5823_v39  ;;  %v5833_v55 = vld [vmem:[#allocation136_spill] sm:$0xff] }
 0x262   : > { %v4726_v44 = vpop.permute.xlu2 %1437  ;;  %v1843_v42 = vsel %vm1832_vm7, %v1810_v8, %v4392_v26 }
 0x263   : > { %v1524_v35 = vpop.permute.xlu1 %1523  ;;  %v1876_v13 = vsel %vm1865_vm9, %v1843_v42, %v4651_v23  ;;  %v5837_v42 = vld [vmem:[#allocation48_spill] sm:$0xff] }
 0x264   : > { %1644 = vrot.lane.b32.xlu0 %v5729_v52, %s3168_s19  ;;  %v5824_v52 = vld [vmem:[#allocation109_spill] sm:$0xff] }
 0x265   : > { %v1738_v22 = vsel %vm1733_vm4, %v1705_v30, %v5824_v52  ;;  %v5834_v30 = vld [vmem:[#allocation94_spill] sm:$0xff] }
 0x266   : > { %v1512_v46 = vpop.permute.xlu0 %1511  ;;  %v1771_v3 = vsel %vm1766_vm5, %v1738_v22, %v5826_v36  ;;  %v5839_v36 = vld [vmem:[#allocation3_spill] sm:$0xff] }
 0x267   : > { %v1804_v31 = vsel %vm1799_vm6, %v1771_v3, %v5827_v21  ;;  %v5840_v21 = vld [vmem:[#allocation108_spill] sm:$0xff] }
 0x268   : > { %1443 = vrot.lane.b32.xlu2 %v5769_v59, %s3167_s18  ;;  %v1909_v59 = vsel %vm1898_vm10, %v1876_v13, %v1524_v35  ;;  %v1837_v9 = vsel %vm1832_vm7, %v1804_v31, %v4350_v14  ;;  %v5829_v14 = vld [vmem:[#allocation67_spill] sm:$0xff]  ;;  %v5831_v35 = vld [vmem:[#allocation60_spill] sm:$0xff] }
 0x269   : > { %1531 = vrot.lane.b32.xlu1 %v5825_v17, %s3166_s17  ;;  %v1870_v37 = vsel %vm1865_vm9, %v1837_v9, %v1410_v61  ;;  %v1883_v61 = vsel %vm1865_vm9, %v4470_v6, %v4668_v63  ;;  %v1712_v54 = vsel %vm1700_vm3, %v5798_v10, %v5831_v35  ;;  %v5835_v6 = vld [vmem:[#allocation64_spill] sm:$0xff]  ;;  %v5836_v10 = vld [vmem:[#allocation86_spill] sm:$0xff]  ;;  %v5838_v17 = vld [vmem:[#allocation53_spill] sm:$0xff] }
 0x26a   : > { %v1627_v16 = vpop.permute.xlu2 %1626  ;;  %v1903_v23 = vsel %vm1898_vm10, %v1870_v37, %v1512_v46  ;;  %v1916_v15 = vsel %vm1898_vm10, %v1883_v61, %v1538_v28  ;;  %v1745_v46 = vsel %vm1733_vm4, %v1712_v54, %v5832_v45  ;;  %v1706_v3 = vsel %vm1700_vm3, %v5839_v36, %v5838_v17  ;;  %v5846_v35 = vld [vmem:[#allocation35_spill] sm:$0xff]  ;;  %v5847_v45 = vld [vmem:[#allocation85_spill] sm:$0xff] }
 0x26b   : > { %v1625_v50 = vpop.permute.xlu1 %1624  ;;  %v1778_v53 = vsel %vm1766_vm5, %v1745_v46, %v5833_v55  ;;  %v1739_v31 = vsel %vm1733_vm4, %v1706_v3, %v5840_v21  ;;  %v5848_v46 = vld [vmem:[#allocation141_spill] sm:$0xff]  ;;  %v5854_v36 = vld [vmem:[#allocation135_spill] sm:$0xff] }
 0x26c   : > { %1358 = vrot.lane.b32.xlu0 %v5801_v0, %s3165_s16  ;;  %v1942_v26 = vsel %vm1931_vm11, %v1909_v59, %v1625_v50  ;;  %v1811_v63 = vsel %vm1799_vm6, %v1778_v53, %v5835_v6  ;;  %v5842_v50 = vld [vmem:[#allocation55_spill] sm:$0xff]  ;;  %v5849_v53 = vld [vmem:[#allocation38_spill] sm:$0xff] }
 0x26d   : > { %2961 = vmatmul.msk.f32.gmra.mxu1 %vm1973_vm12, %v1942_v26  ;;  %v1844_v28 = vsel %vm1832_vm7, %v1811_v63, %v4385_v43  ;;  %v5841_v43 = vld [vmem:[#allocation132_spill] sm:$0xff] }
 0x26e   : > { %v1613_v12 = vpop.permute.xlu0 %1612  ;;  %v1877_v8 = vsel %vm1865_vm9, %v1844_v28, %v1424_v41  ;;  %v1772_v41 = vsel %vm1766_vm5, %v1739_v31, %v5841_v43  ;;  %v5843_v26 = vld [vmem:[#allocation28_spill] sm:$0xff] }
 0x26f   : > { %v1936_v32 = vsel %vm1931_vm11, %v1903_v23, %v1613_v12  ;;  %v1805_v9 = vsel %vm1799_vm6, %v1772_v41, %v5842_v50  ;;  %v5851_v63 = vld [vmem:[#allocation84_spill] sm:$0xff] }
 0x270   : > { %2955 = vmatmul.msk.f32.gmra.mxu0 %vm1973_vm12, %v1936_v32  ;;  %1545 = vrot.lane.b32.xlu2 %v5828_v20, %s3166_s17  ;;  %v1838_v37 = vsel %vm1832_vm7, %v1805_v9, %v4343_v29  ;;  %v5844_v29 = vld [vmem:[#allocation75_spill] sm:$0xff] }
 0x271   : > { %1632 = vrot.lane.b32.xlu1 %v5829_v14, %s3168_s19 }
 0x272   : > { %v1641_v0 = vpop.permute.xlu2 %1640 }
 0x273   : > { %v1412_v2 = vpop.permute.xlu1 %1411 }
 0x274   : > { %1455 = vrot.lane.b32.xlu0 %v5830_v57, %s3167_s18 }
 0x276   : > { %v1639_v27 = vpop.permute.xlu0 %1638 }
 0x277   : > { %v1949_v48 = vsel %vm1931_vm11, %v1916_v15, %v1639_v27 }
 0x278   : > { %2968 = vmatmul.msk.f32.gmra.mxu2 %vm1973_vm12, %v1949_v48  ;;  %1658 = vrot.lane.b32.xlu2 %v5834_v30, %s3168_s19 }
 0x279   : > { %1646 = vrot.lane.b32.xlu1 %v5836_v10, %s3168_s19  ;;  %v5852_v10 = vld [vmem:[#allocation18_spill] sm:$0xff] }
 0x27a   : > { %v1426_v39 = vpop.permute.xlu2 %1425  ;;  %v1713_v28 = vsel %vm1700_vm3, %v5852_v10, %v5851_v63 }
 0x27b   : > { %v1526_v52 = vpop.permute.xlu1 %1525 }
 0x27c   : > { %v1910_v22 = vsel %vm1898_vm10, %v1877_v8, %v1526_v52  ;;  %1557 = vrot.lane.b32.xlu0 %v5837_v42, %s3166_s17 }
 0x27d   : > { %v1943_v13 = vsel %vm1931_vm11, %v1910_v22, %v1627_v16  ;;  %v1871_v16 = vsel %vm1865_vm9, %v1838_v37, %v1412_v2  ;;  %v5853_v22 = vld [vmem:[#allocation105_spill] sm:$0xff]  ;;  %v5857_v37 = vld [vmem:[#allocation74_spill] sm:$0xff] }
 0x27e   : > { %v1514_v59 = vpop.permute.xlu0 %1513  ;;  %2962 = vmatmul.msk.f32.gmra.mxu1 %vm1973_vm12, %v1943_v13  ;;  %v1746_v42 = vsel %vm1733_vm4, %v1713_v28, %v5853_v22  ;;  %v5856_v13 = vld [vmem:[#allocation78_spill] sm:$0xff] }
 0x27f   : > { %v1904_v12 = vsel %vm1898_vm10, %v1871_v16, %v1514_v59  ;;  %v1779_v3 = vsel %vm1766_vm5, %v1746_v42, %v5854_v36  ;;  %v5858_v16 = vld [vmem:[#allocation10_spill] sm:$0xff] }
 0x280   : > { %1533 = vrot.lane.b32.xlu2 %v5843_v26, %s3166_s17  ;;  %v1812_v21 = vsel %vm1799_vm6, %v1779_v3, %v5856_v13  ;;  %v495_v26 = vld [vmem:[%s455_s14] sm:$0xff] }
 0x281   : > { %1360 = vrot.lane.b32.xlu1 %v5818_v56, %s3165_s16  ;;  %v5845_v56 = vld [vmem:[#allocation118_spill] sm:$0xff]  ;;  %v1845_v59 = vsel %vm1832_vm7, %v1812_v21, %v4323_v1  ;;  %v5865_v13 = vld [vmem:[#allocation83_spill] sm:$0xff] }
 0x282   : > { %v4816_v23 = vpop.permute.xlu2 %1439  ;;  %v1878_v43 = vsel %vm1865_vm9, %v1845_v59, %v1426_v39  ;;  %v5860_v39 = vld [vmem:[#allocation131_spill] sm:$0xff] }
 0x283   : > { %v1615_v32 = vpop.permute.xlu1 %1614  ;;  %v1885_v59 = vsel %vm1865_vm9, %v4517_v18, %v4816_v23 }
 0x284   : > { %1431 = vrot.lane.b32.xlu0 %v5754_v38, %s3167_s18  ;;  %v1937_v20 = vsel %vm1931_vm11, %v1904_v12, %v1615_v32  ;;  %v1884_v38 = vsel %vm1865_vm9, %v4367_v19, %v4726_v44  ;;  %v1299_v19 = vrot.slane %v5845_v56, 2  ;;  %v5850_v44 = vld [vmem:[#allocation116_spill] sm:$0xff]  ;;  %v1707_v12 = vsel %vm1700_vm3, %v5858_v16, %v5857_v37 }
 0x285   : > { %2956 = vmatmul.msk.f32.gmra.mxu0 %vm1973_vm12, %v1937_v20  ;;  %v1300_v6 = vrot.slane %v5850_v44, 2  ;;  %v5859_v20 = vld [vmem:[#allocation99_spill] sm:$0xff] }
 0x286   : > { %v1450_v14 = vpop.permute.xlu0 %1449  ;;  %v1740_v1 = vsel %vm1733_vm4, %v1707_v12, %v5859_v20 }
 0x287   : > { %v1301_v31 = vsel %vm923_vm2, %v1299_v19, %v1300_v6 }
 0x288   : > { %1634 = vrot.lane.b32.xlu2 %v5844_v29, %s3168_s19  ;;  %v1773_v29 = vsel %vm1766_vm5, %v1740_v1, %v5860_v39 }
 0x289   : > { %1457 = vrot.lane.b32.xlu1 %v5845_v56, %s3167_s18  ;;  %v501_v56 = vmul.f32 0.0, %v495_v26 }
 0x28a   : > { %v1629_v2 = vpop.permute.xlu2 %1628 }
 0x28b   : > { %v1552_v61 = vpop.permute.xlu1 %1551  ;;  %v623_v63 = vrot.slane %v501_v56, 7 }
 0x28c   : > { %1445 = vrot.lane.b32.xlu0 %v5846_v35, %s3167_s18 }
 0x28d   : > { %v695_v22 = vsel %vm571_vm0, 0.0, %v623_v63 }
 0x28e   : > { %v1540_v54 = vpop.permute.xlu0 %1539  ;;  %v1599_v42 = vrot.slane %v695_v22, 2 }
 0x28f   : > { %v1917_v15 = vsel %vm1898_vm10, %v1884_v38, %v1540_v54  ;;  %v5861_v38 = vld [vmem:[#allocation153_spill] sm:$0xff] }
 0x290   : > { %v1950_v27 = vsel %vm1931_vm11, %v1917_v15, %v1641_v0  ;;  %1648 = vrot.lane.b32.xlu2 %v5847_v45, %s3168_s19  ;;  %v1890_v0 = vsel %vm1865_vm9, %v4420_v49, %v1450_v14  ;;  %v5855_v49 = vld [vmem:[#allocation34_spill] sm:$0xff]  ;;  %v1806_v54 = vsel %vm1799_vm6, %v1773_v29, %v5861_v38  ;;  %v5862_v15 = vld [vmem:[#allocation140_spill] sm:$0xff] }
 0x291   : > { %2969 = vmatmul.msk.f32.gmra.mxu2 %vm1973_vm12, %v1950_v27  ;;  %1559 = vrot.lane.b32.xlu1 %v5848_v46, %s3166_s17  ;;  %v1923_v8 = vsel %vm1898_vm10, %v1890_v0, %v1552_v61  ;;  %v5863_v27 = vld [vmem:[#allocation46_spill] sm:$0xff] }
 0x292   : > { %v4839_v48 = vpop.permute.xlu2 %1642  ;;  %v5864_v46 = vld [vmem:[#allocation138_spill] sm:$0xff] }
 0x293   : > { %v1414_v55 = vpop.permute.xlu1 %1413 }
 0x294   : > { %1547 = vrot.lane.b32.xlu0 %v5849_v53, %s3166_s17  ;;  %v1302_v53 = vrot.slane %v5864_v46, 2  ;;  %v5870_v46 = vld [vmem:[#allocation152_spill] sm:$0xff] }
 0x296   : > { %v1653_v52 = vpop.permute.xlu0 %1652 }
 0x297   : > { %v1956_v17 = vsel %vm1931_vm11, %v1923_v8, %v1653_v52  ;;  %v1303_v52 = vsel %vm923_vm2, %v1300_v6, %v1302_v53 }
 0x298   : > { %2975 = vmatmul.msk.f32.vlgmr.msra.gmra.mxu3 %vm1973_vm12, %v1956_v17  ;;  %1447 = vrot.lane.b32.xlu2 %v5855_v49, %s3167_s18  ;;  %v1498_v17 = vrot.slane %v695_v22, 1 }
 0x299   : > { %1362 = vrot.lane.b32.xlu1 %v5834_v30, %s3165_s16  ;;  %v496_v30 = vld [vmem:[%s455_s14 + $0x8] sm:$0xff] }
 0x29a   : > { %v4872_v9 = vpop.permute.xlu2 %1427  ;;  %v502_v61 = vmul.f32 0.0, %v496_v30 }
 0x29b   : > { %v1528_v41 = vpop.permute.xlu1 %1527 }
 0x29c   : > { %v1911_v50 = vsel %vm1898_vm10, %v1878_v43, %v1528_v41  ;;  %1660 = vrot.lane.b32.xlu0 %v1301_v31, %s3168_s19  ;;  %v624_v10 = vrot.slane %v502_v61, 7 }
 0x29d   : > { %v1944_v32 = vsel %vm1931_vm11, %v1911_v50, %v1629_v2  ;;  %v1839_v2 = vsel %vm1832_vm7, %v1806_v54, %v4299_v58  ;;  %v5868_v54 = vld [vmem:[#allocation111_spill] sm:$0xff] }
 0x29e   : > { %v1516_v14 = vpop.permute.xlu0 %1515  ;;  %2963 = vmatmul.msk.f32.gmra.mxu1 %vm1973_vm12, %v1944_v32  ;;  %v1872_v45 = vsel %vm1865_vm9, %v1839_v2, %v1414_v55  ;;  %v4903_v55 = vsel %vm571_vm0, %v623_v63, %v624_v10  ;;  %v713_v23 = vsel %vm571_vm0, %v624_v10, 0.0 }
 0x29f   : > { %v1905_v19 = vsel %vm1898_vm10, %v1872_v45, %v1516_v14  ;;  %v1499_v36 = vrot.slane %v4903_v55, 1  ;;  %v1600_v6 = vrot.slane %v4903_v55, 2  ;;  %v1501_v32 = vrot.slane %v713_v23, 1  ;;  %v5866_v14 = vld [vmem:[#allocation72_spill] sm:$0xff] }
 0x2a0   : > { %1561 = vrot.lane.b32.xlu2 %v5862_v15, %s3166_s17 }
 0x2a1   : > { %1549 = vrot.lane.b32.xlu1 %v5863_v27, %s3166_s17  ;;  %v1500_v50 = vsel %vm746_vm1, %v1498_v17, %v1499_v36  ;;  %v1502_v38 = vsel %vm746_vm1, %v1499_v36, %v1501_v32  ;;  %v5869_v27 = vld [vmem:[#allocation126_spill] sm:$0xff]  ;;  %v1602_v36 = vrot.slane %v713_v23, 2 }
 0x2a2   : > { %v4899_v58 = vpop.permute.xlu2 %1529 }
 0x2a3   : > { %v1617_v0 = vpop.permute.xlu1 %1616 }
 0x2a4   : > { %1459 = vrot.lane.b32.xlu0 %v5850_v44, %s3167_s18  ;;  %v1938_v28 = vsel %vm1931_vm11, %v1905_v19, %v1617_v0  ;;  %v4911_v44 = vld [vmem:[%s5398_s4] ss:$0 sm:$0xff] }
 0x2a5   : > { %2957 = vmatmul.msk.f32.gmra.mxu0 %vm1973_vm12, %v1938_v28 }
 0x2a6   : > { %v1452_v8 = vpop.permute.xlu0 %1451 }
 0x2a7   : > { %v1891_v20 = vsel %vm1865_vm9, %v4572_v24, %v1452_v8 }
 0x2a8   : > { %1364 = vrot.lane.b32.xlu2 %v1301_v31, %s3165_s16  ;;  %v1601_v31 = vsel %vm923_vm2, %v1599_v42, %v1600_v6 }
 0x2a9   : > { %1662 = vrot.lane.b32.xlu1 %v1303_v52, %s3168_s19 }
 0x2aa   : > { %v1619_v30 = vpop.permute.xlu2 %1618 }
 0x2ab   : > { %v1554_v3 = vpop.permute.xlu1 %1553 }
 0x2ac   : > { %1650 = vrot.lane.b32.xlu0 %v5865_v13, %s3168_s19  ;;  %v1924_v29 = vsel %vm1898_vm10, %v1891_v20, %v1554_v3 }
 0x2ad   : > { %v2091_v21 = vpop.f32.mrf.mxu0 }
 0x2ae   : > { %v2092_v43 = vadd.f32 %v4911_v44, %v2091_v21  ;;  %v1542_v41 = vpop.permute.xlu0 %1541 }
 0x2af   : > { %v1918_v26 = vsel %vm1898_vm10, %v1885_v59, %v1542_v41 }
 0x2b0   : > { %v2219_v37 = vmin.f32 %v2092_v43, 0.0  ;;  %v1951_v16 = vsel %vm1931_vm11, %v1918_v26, %v4839_v48  ;;  %1664 = vrot.lane.b32.xlu2 %v1601_v31, %s3168_s19  ;;  %v5867_v48 = vld [vmem:[#allocation9_spill] sm:$0xff]  ;;  %vm2187_vm13 = vcmp.gt.f32.partialorder %v2092_v43, 0.0  ;;  %v1603_v31 = vsel %vm923_vm2, %v1600_v6, %v1602_v36 }
 0x2b1   : > { %2970 = vmatmul.msk.f32.gmra.mxu2 %vm1973_vm12, %v1951_v16  ;;  %1563 = vrot.lane.b32.xlu1 %v1500_v50, %s3166_s17  ;;  %v1708_v39 = vsel %vm1700_vm3, %v5867_v48, %v5866_v14 }
 0x2b2   : > { %v2251_v12 = vmul.f32 1.442695, %v2219_v37  ;;  %v1741_v15 = vsel %vm1733_vm4, %v1708_v39, %v5868_v54  ;;  %v4952_v63 = vpop.permute.xlu2 %1555  ;;  %v5872_v54 = vld [vmem:[#allocation125_spill] sm:$0xff] }
 0x2b3   : > { %v1416_v18 = vpop.permute.xlu1 %1415  ;;  %v1774_v24 = vsel %vm1766_vm5, %v1741_v15, %v5869_v27  ;;  %v5873_v27 = vld [vmem:[#allocation52_spill] sm:$0xff] }
 0x2b4   : > { %3072 = vpow2.f32 %v2251_v12  ;;  %1461 = vrot.lane.b32.xlu0 %v695_v22, %s3167_s18  ;;  %v1807_v53 = vsel %vm1799_vm6, %v1774_v24, %v5870_v46  ;;  %v5874_v46 = vld [vmem:[#allocation155_spill] sm:$0xff] }
 0x2b5   : > { %v2094_v1 = vpop.f32.mrf.mxu0  ;;  %v1840_v0 = vsel %vm1832_vm7, %v1807_v53, %v4371_v62 }
 0x2b6   : > { %v2095_v56 = vadd.f32 %v4911_v44, %v2094_v1  ;;  %v1655_v61 = vpop.permute.xlu0 %1654  ;;  %v1873_v8 = vsel %vm1865_vm9, %v1840_v0, %v1416_v18 }
 0x2b7   : > { %v1957_v2 = vsel %vm1931_vm11, %v1924_v29, %v1655_v61 }
 0x2b8   : > { %v2220_v45 = vmin.f32 %v2095_v56, 0.0  ;;  %2976 = vmatmul.msk.f32.gmra.mxu3 %vm1973_vm12, %v1957_v2  ;;  %1565 = vrot.lane.b32.xlu2 %v1502_v38, %s3166_s17  ;;  %vm2188_vm14 = vcmp.gt.f32.partialorder %v2095_v56, 0.0 }
 0x2b9   : > { %1463 = vrot.lane.b32.xlu1 %v4903_v55, %s3167_s18 }
 0x2ba   : > { %v3073_v19 = vpop.eup %3072  ;;  %v2253_v10 = vmul.f32 1.442695, %v2220_v45  ;;  %v1879_v45 = vsel %vm1865_vm9, %v4437_v33, %v4872_v9 }
 0x2bb   : > { %v2983_v28 = vadd.f32 -1.0, %v3073_v19  ;;  %v1518_v22 = vpop.permute.xlu1 %1517 }
 0x2bc   : > { %3074 = vpow2.f32 %v2253_v10  ;;  %v1906_v42 = vsel %vm1898_vm10, %v1873_v8, %v1518_v22  ;;  %1366 = vrot.lane.b32.xlu0 %v1303_v52, %s3165_s16  ;;  %s3021_s16 = sshll.u32 %s5899_s24, 6 }
 0x2bd   : > { %v2347_v17 = vsel %vm2187_vm13, %v2092_v43, %v2983_v28  ;;  %v1939_v55 = vsel %vm1931_vm11, %v1906_v42, %v1619_v30  ;;  %v4962_v43 = vpop.permute.xlu2 %1429  ;;  %s5056_s23 = scalar_lea.vmem %s5400_s6, %s3021_s16 }
 0x2be   : > { %2552 = vst.msk [vmem:[#allocation2] sm:$0xff] %vm1733_vm4, %v2347_v17  ;;  %v2097_v62 = vpop.f32.mrf.mxu0  ;;  %v1357_v3 = vpop.permute.xlu0 %1356  ;;  %2958 = vmatmul.msk.f32.gmra.mxu0 %vm1973_vm12, %v1939_v55  ;;  %v2448_v52 = vmul.f32 %v2347_v17, %v2347_v17  ;;  %v2379_v16 = vsel %vm1733_vm4, %v2347_v17, 0.0 }
 0x2bf   : > { %v2098_v13 = vadd.f32 %v4911_v44, %v2097_v62 }
 0x2c0   : > { %v2480_v20 = vsel %vm1733_vm4, %v2448_v52, 0.0 }
 0x2c1   : > { %v2221_v21 = vmin.f32 %v2098_v13, 0.0  ;;  %vm2189_vm15 = vcmp.gt.f32.partialorder %v2098_v13, 0.0 }
 0x2c2   : > { %v3075_v59 = vpop.eup %3074 }
 0x2c3   : > { %v2984_v41 = vadd.f32 -1.0, %v3075_v59  ;;  %v2255_v50 = vmul.f32 1.442695, %v2221_v21  ;;  %v1454_v26 = vpop.permute.xlu1 %1453 }
 0x2c4   : > { %1666 = vrot.lane.b32.xlu0 %v1603_v31, %s3168_s19  ;;  %s5050_s19 = scalar_lea.vmem %s5399_s5, %s3021_s16 }
 0x2c5   : > { %v2348_v30 = vsel %vm2188_vm14, %v2095_v56, %v2984_v41  ;;  %3076 = vpow2.f32 %v2255_v50  ;;  %v2115_v37 = vpop.f32.mrf.mxu1  ;;  %v5871_v56 = vld [vmem:[#allocation87_spill] sm:$0xff]  ;;  %v4985_v0 = vpop.permute.xlu2 %1443 }
 0x2c6   : > { %v2380_v12 = vsel %vm1733_vm4, %v2348_v30, 0.0  ;;  %v2449_v18 = vmul.f32 %v2348_v30, %v2348_v30  ;;  %2553 = vst.msk [vmem:[#allocation2 + $0x8] sm:$0xff] %vm1733_vm4, %v2348_v30  ;;  %v2116_v6 = vadd.f32 %v4911_v44, %v2115_v37  ;;  %v1442_v23 = vpop.permute.xlu0 %1441  ;;  %v1727_v61 = vsel %vm1700_vm3, %v5846_v35, %v5871_v56 }
 0x2c7   : > { %v2381_v32 = vadd.f32 %v2380_v12, %v2379_v16  ;;  %v1760_v15 = vsel %vm1733_vm4, %v1727_v61, %v5872_v54  ;;  %v1912_v35 = vsel %vm1898_vm10, %v1879_v45, %v4899_v58  ;;  %v1886_v41 = vsel %vm1865_vm9, %v4508_v5, %v1442_v23 }
 0x2c8   : > { %v2481_v1 = vsel %vm1733_vm4, %v2449_v18, 0.0  ;;  %v2227_v14 = vmin.f32 %v2116_v6, 0.0  ;;  %v1793_v24 = vsel %vm1766_vm5, %v1760_v15, %v5873_v27  ;;  %vm2195_vm1 = vcmp.gt.f32.partialorder %v2116_v6, 0.0 }
 0x2c9   : > { %v2482_v48 = vadd.f32 %v2481_v1, %v2480_v20  ;;  %v1826_v53 = vsel %vm1799_vm6, %v1793_v24, %v5874_v46 }
 0x2ca   : > { %v2267_v39 = vmul.f32 1.442695, %v2227_v14  ;;  %v1859_v22 = vsel %vm1832_vm7, %v1826_v53, %v1357_v3  ;;  %v1880_v14 = vsel %vm1865_vm9, %v4425_v34, %v4962_v43 }
 0x2cb   : > { %v3077_v29 = vpop.eup %3076  ;;  %v1544_v38 = vpop.permute.xlu1 %1543  ;;  %v1892_v42 = vsel %vm1865_vm9, %v1859_v22, %v1454_v26 }
 0x2cc   : > { %v2985_v2 = vadd.f32 -1.0, %v3077_v29  ;;  %3078 = vpow2.f32 %v2267_v39  ;;  %v1925_v31 = vsel %vm1898_vm10, %v1892_v42, %v4952_v63  ;;  %v1919_v52 = vsel %vm1898_vm10, %v1886_v41, %v1544_v38 }
 0x2cd   : > { %v1546_v12 = vpop.permute.xlu2 %1545  ;;  %v2584_v22 = vld [vmem:[#allocation2] ss:$2 sm:$0xff] }
 0x2ce   : > { %v2349_v19 = vsel %vm2189_vm15, %v2098_v13, %v2985_v2  ;;  %v1631_v10 = vpop.permute.xlu0 %1630 }
 0x2cf   : > { %v2382_v28 = vsel %vm1733_vm4, %v2349_v19, 0.0  ;;  %v2450_v8 = vmul.f32 %v2349_v19, %v2349_v19  ;;  %2554 = vst.msk [vmem:[#allocation2 + $0x10] sm:$0xff] %vm1733_vm4, %v2349_v19  ;;  %v1945_v33 = vsel %vm1931_vm11, %v1912_v35, %v1631_v10  ;;  %v5875_v35 = vld [vmem:[#allocation101_spill] sm:$0xff] }
 0x2d0   : > { %v2383_v9 = vadd.f32 %v2382_v28, %v2381_v32  ;;  %2964 = vmatmul.msk.f32.gmra.mxu1 %vm1973_vm12, %v1945_v33  ;;  %v1728_v19 = vsel %vm1700_vm3, %v5855_v49, %v5875_v35  ;;  %v5876_v28 = vld [vmem:[#allocation114_spill] sm:$0xff]  ;;  %v2616_v33 = vld [vmem:[#allocation2 + $0x1] ss:$2 sm:$0xff] }
 0x2d1   : > { %v2483_v58 = vsel %vm1733_vm4, %v2450_v8, 0.0  ;;  %v1761_v8 = vsel %vm1733_vm4, %v1728_v19, %v5876_v28 }
 0x2d2   : > { %v3079_v17 = vpop.eup %3078  ;;  %v2484_v55 = vadd.f32 %v2483_v58, %v2482_v48  ;;  %v2118_v36 = vpop.f32.mrf.mxu1  ;;  %v5877_v58 = vld [vmem:[#allocation145_spill] sm:$0xff] }
 0x2d3   : > { %v2991_v62 = vadd.f32 -1.0, %v3079_v17  ;;  %v2119_v13 = vadd.f32 %v4911_v44, %v2118_v36  ;;  %v1657_v21 = vpop.permute.xlu1 %1656  ;;  %v1794_v17 = vsel %vm1766_vm5, %v1761_v8, %v5877_v58 }
 0x2d4   : > { %v1958_v3 = vsel %vm1931_vm11, %v1925_v31, %v1657_v21  ;;  %v2647_v31 = vmax.f32 %v2584_v22, %v2616_v33 }
 0x2d5   : > { %v4998_v59 = vsel %vm2195_vm1, %v2116_v6, %v2991_v62  ;;  %v2228_v50 = vmin.f32 %v2119_v13, 0.0  ;;  %v2100_v26 = vpop.f32.mrf.mxu0  ;;  %2977 = vmatmul.msk.f32.gmra.mxu3 %vm1973_vm12, %v1958_v3  ;;  %vm2196_vm2 = vcmp.gt.f32.partialorder %v2119_v13, 0.0  ;;  %v1659_v39 = vpop.permute.xlu2 %1658  ;;  %v1827_v62 = vsel %vm1799_vm6, %v1794_v17, %v4305_v60 }
 0x2d6   : > { %2560 = vst.msk [vmem:[#allocation2 + $0x40] sm:$0xff] %vm1733_vm4, %v4998_v59  ;;  %v2101_v30 = vadd.f32 %v4911_v44, %v2100_v26  ;;  %v1645_v63 = vpop.permute.xlu0 %1644  ;;  %v2663_v3 = vmin.f32 %v2584_v22, %v2616_v33 }
 0x2d7   : > { %v2269_v37 = vmul.f32 1.442695, %v2228_v50  ;;  %v1952_v16 = vsel %vm1931_vm11, %v1919_v52, %v1645_v63 }
 0x2d8   : > { %v2222_v18 = vmin.f32 %v2101_v30, 0.0  ;;  %2971 = vmatmul.msk.f32.gmra.mxu2 %vm1973_vm12, %v1952_v16  ;;  %vm2190_vm8 = vcmp.gt.f32.partialorder %v2101_v30, 0.0 }
 0x2d9   : > { %3080 = vpow2.f32 %v2269_v37 }
 0x2da   : > { %v2257_v5 = vmul.f32 1.442695, %v2222_v18 }
 0x2db   : > { %v1532_v6 = vpop.permute.xlu1 %1531 }
 0x2dc   : > { %3082 = vpow2.f32 %v2257_v5  ;;  %v1913_v56 = vsel %vm1898_vm10, %v1880_v14, %v1532_v6 }
 0x2de   : > { %v1359_v23 = vpop.permute.xlu0 %1358 }
 0x2df   : > { %v3081_v32 = vpop.eup %3080  ;;  %v1860_v41 = vsel %vm1832_vm7, %v1827_v62, %v1359_v23 }
 0x2e0   : > { %v2992_v20 = vadd.f32 -1.0, %v3081_v32 }
 0x2e2   : > { %v3083_v1 = vpop.eup %3082  ;;  %v5012_v48 = vsel %vm2196_vm2, %v2119_v13, %v2992_v20  ;;  %v1534_v13 = vpop.permute.xlu2 %1533 }
 0x2e3   : > { %2561 = vst.msk [vmem:[#allocation2 + $0x48] sm:$0xff] %vm1733_vm4, %v5012_v48  ;;  %v2986_v29 = vadd.f32 -1.0, %v3083_v1  ;;  %v2139_v61 = vpop.f32.mrf.mxu2  ;;  %v1633_v38 = vpop.permute.xlu1 %1632 }
 0x2e4   : > { %v2140_v54 = vadd.f32 %v4911_v44, %v2139_v61  ;;  %v1946_v15 = vsel %vm1931_vm11, %v1913_v56, %v1633_v38 }
 0x2e5   : > { %v2350_v2 = vsel %vm2190_vm8, %v2101_v30, %v2986_v29  ;;  %2965 = vmatmul.msk.f32.gmra.mxu1 %vm1973_vm12, %v1946_v15 }
 0x2e6   : > { %v2384_v34 = vsel %vm1733_vm4, %v2350_v2, 0.0  ;;  %v2451_v43 = vmul.f32 %v2350_v2, %v2350_v2  ;;  %2555 = vst.msk [vmem:[#allocation2 + $0x18] sm:$0xff] %vm1733_vm4, %v2350_v2  ;;  %v2235_v27 = vmin.f32 %v2140_v54, 0.0  ;;  %v1456_v24 = vpop.permute.xlu0 %1455  ;;  %vm2203_vm13 = vcmp.gt.f32.partialorder %v2140_v54, 0.0 }
 0x2e7   : > { %v5022_v45 = vadd.f32 %v2384_v34, %v2383_v9  ;;  %v1887_v9 = vsel %vm1865_vm9, %v4388_v7, %v4985_v0  ;;  %v1893_v63 = vsel %vm1865_vm9, %v1860_v41, %v1456_v24 }
 0x2e8   : > { %v2485_v46 = vsel %vm1733_vm4, %v2451_v43, 0.0  ;;  %v2283_v53 = vmul.f32 1.442695, %v2235_v27  ;;  %v1920_v36 = vsel %vm1898_vm10, %v1887_v9, %v1546_v12 }
 0x2e9   : > { %v5028_v10 = vadd.f32 %v2485_v46, %v2484_v55 }
 0x2ea   : > { %3084 = vpow2.f32 %v2283_v53  ;;  %v2121_v42 = vpop.f32.mrf.mxu1  ;;  %v1635_v56 = vpop.permute.xlu2 %1634 }
 0x2eb   : > { %v2122_v49 = vadd.f32 %v4911_v44, %v2121_v42  ;;  %v1647_v55 = vpop.permute.xlu1 %1646 }
 0x2ec   : > { %v1953_v21 = vsel %vm1931_vm11, %v1920_v36, %v1647_v55 }
 0x2ed   : > { %v2586_v7 = vld [vmem:[#allocation2 + $0x10] ss:$2 sm:$0xff]  ;;  %v2618_v0 = vld [vmem:[#allocation2 + $0x11] ss:$2 sm:$0xff]  ;;  %v2229_v50 = vmin.f32 %v2122_v49, 0.0  ;;  %v2103_v26 = vpop.f32.mrf.mxu0  ;;  %2972 = vmatmul.msk.f32.gmra.mxu2 %vm1973_vm12, %v1953_v21  ;;  %vm2197_vm14 = vcmp.gt.f32.partialorder %v2122_v49, 0.0 }
 0x2ee   : > { %v2648_v52 = vmax.f32 %v2586_v7, %v2618_v0  ;;  %v2664_v30 = vmin.f32 %v2586_v7, %v2618_v0  ;;  %v2104_v60 = vadd.f32 %v4911_v44, %v2103_v26  ;;  %v1558_v37 = vpop.permute.xlu0 %1557 }
 0x2ef   : > { %v2271_v16 = vmul.f32 1.442695, %v2229_v50  ;;  %v1926_v12 = vsel %vm1898_vm10, %v1893_v63, %v1558_v37  ;;  %v5878_v50 = vld [vmem:[#allocation100_spill] sm:$0xff] }
 0x2f0   : > { %v3085_v18 = vpop.eup %3084  ;;  %v2679_v5 = vmax.f32 %v2647_v31, %v2648_v52  ;;  %v2695_v6 = vmin.f32 %v2663_v3, %v2664_v30  ;;  %v2223_v23 = vmin.f32 %v2104_v60, 0.0  ;;  %v1959_v20 = vsel %vm1931_vm11, %v1926_v12, %v1659_v39  ;;  %v5879_v30 = vld [vmem:[#allocation11_spill] sm:$0xff] }
 0x2f1   : > { %v2999_v32 = vadd.f32 -1.0, %v3085_v18  ;;  %3086 = vpow2.f32 %v2271_v16  ;;  %2978 = vmatmul.msk.f32.gmra.mxu3 %vm1973_vm12, %v1959_v20  ;;  %vm2191_vm15 = vcmp.gt.f32.partialorder %v2104_v60, 0.0  ;;  %v5881_v18 = vld [vmem:[#allocation157_spill] sm:$0xff] }
 0x2f2   : > { %2687 = vst.msk [vmem:[%s5050_s19] sm:$0xff] %vm1733_vm4, %v2679_v5  ;;  %v2259_v1 = vmul.f32 1.442695, %v2223_v23  ;;  %v1649_v58 = vpop.permute.xlu2 %1648 }
 0x2f3   : > { %2703 = vst.msk [vmem:[%s5056_s23] sm:$0xff] %vm1733_vm4, %v2695_v6  ;;  %v5064_v14 = vsel %vm2203_vm13, %v2140_v54, %v2999_v32  ;;  %v1361_v29 = vpop.permute.xlu1 %1360 }
 0x2f4   : > { %2568 = vst.msk [vmem:[#allocation2 + $0x80] sm:$0xff] %vm1733_vm4, %v5064_v14  ;;  %3088 = vpow2.f32 %v2259_v1 }
 0x2f6   : > { %v1432_v61 = vpop.permute.xlu0 %1431 }
 0x2f7   : > { %v3087_v38 = vpop.eup %3086  ;;  %v1881_v39 = vsel %vm1865_vm9, %v4346_v47, %v1432_v61 }
 0x2f8   : > { %v2993_v15 = vadd.f32 -1.0, %v3087_v38  ;;  %v1914_v2 = vsel %vm1898_vm10, %v1881_v39, %v1534_v13 }
 0x2f9   : > { %v1947_v34 = vsel %vm1931_vm11, %v1914_v2, %v1635_v56  ;;  %v5882_v2 = vld [vmem:[#allocation92_spill] sm:$0xff] }
 0x2fa   : > { %v3089_v43 = vpop.eup %3088  ;;  %v5072_v54 = vsel %vm2197_vm14, %v2122_v49, %v2993_v15  ;;  %2966 = vmatmul.msk.f32.gmra.mxu1 %vm1973_vm12, %v1947_v34  ;;  %v1448_v16 = vpop.permute.xlu2 %1447  ;;  %v2624_v15 = vld [vmem:[#allocation2 + $0x41] ss:$2 sm:$0xff]  ;;  %v1730_v34 = vsel %vm1700_vm3, %v5787_v40, %v5882_v2 }
 0x2fb   : > { %2562 = vst.msk [vmem:[#allocation2 + $0x50] sm:$0xff] %vm1733_vm4, %v5072_v54  ;;  %v2987_v27 = vadd.f32 -1.0, %v3089_v43  ;;  %v2142_v24 = vpop.f32.mrf.mxu2  ;;  %v1458_v46 = vpop.permute.xlu1 %1457  ;;  %v5888_v2 = vld [vmem:[#allocation147_spill] sm:$0xff] }
 0x2fc   : > { %v2143_v47 = vadd.f32 %v4911_v44, %v2142_v24  ;;  %v2124_v53 = vpop.f32.mrf.mxu1 }
 0x2fd   : > { %v2351_v35 = vsel %vm2191_vm15, %v2104_v60, %v2987_v27  ;;  %v2125_v19 = vadd.f32 %v4911_v44, %v2124_v53  ;;  %v5883_v27 = vld [vmem:[#allocation127_spill] sm:$0xff] }
 0x2fe   : > { %v2386_v28 = vsel %vm1733_vm4, %v2351_v35, 0.0  ;;  %v2452_v8 = vmul.f32 %v2351_v35, %v2351_v35  ;;  %2556 = vst.msk [vmem:[#allocation2 + $0x20] sm:$0xff] %vm1733_vm4, %v2351_v35  ;;  %v2236_v22 = vmin.f32 %v2143_v47, 0.0  ;;  %v1446_v33 = vpop.permute.xlu0 %1445  ;;  %vm2204_vm1 = vcmp.gt.f32.partialorder %v2143_v47, 0.0  ;;  %v5884_v35 = vld [vmem:[#allocation148_spill] sm:$0xff] }
 0x2ff   : > { %v2387_v9 = vadd.f32 %v2386_v28, %v5022_v45  ;;  %v2230_v42 = vmin.f32 %v2125_v19, 0.0  ;;  %v1888_v3 = vsel %vm1865_vm9, %v4549_v4, %v1446_v33  ;;  %v5880_v4 = vld [vmem:[#allocation139_spill] sm:$0xff]  ;;  %vm2198_vm2 = vcmp.gt.f32.partialorder %v2125_v19, 0.0 }
 0x300   : > { %v2487_v17 = vsel %vm1733_vm4, %v2452_v8, 0.0  ;;  %v2285_v36 = vmul.f32 1.442695, %v2236_v22  ;;  %v1763_v24 = vsel %vm1733_vm4, %v1730_v34, %v5883_v27  ;;  %v5889_v27 = vld [vmem:[#allocation159_spill] sm:$0xff] }
 0x301   : > { %v5084_v49 = vadd.f32 %v2487_v17, %v5028_v10  ;;  %v2273_v55 = vmul.f32 1.442695, %v2230_v42  ;;  %v1729_v10 = vsel %vm1700_vm3, %v5756_v25, %v5878_v50 }
 0x302   : > { %3090 = vpow2.f32 %v2285_v36  ;;  %v2106_v62 = vpop.f32.mrf.mxu0  ;;  %v1762_v63 = vsel %vm1733_vm4, %v1729_v10, %v5879_v30  ;;  %v1562_v22 = vpop.permute.xlu2 %1561 }
 0x303   : > { %3092 = vpow2.f32 %v2273_v55  ;;  %v2107_v13 = vadd.f32 %v4911_v44, %v2106_v62  ;;  %v1560_v21 = vpop.permute.xlu1 %1559  ;;  %v1795_v37 = vsel %vm1766_vm5, %v1762_v63, %v5880_v4 }
 0x304   : > { %v1828_v5 = vsel %vm1799_vm6, %v1795_v37, %v5881_v18 }
 0x305   : > { %v2224_v31 = vmin.f32 %v2107_v13, 0.0  ;;  %v1861_v23 = vsel %vm1832_vm7, %v1828_v5, %v1361_v29  ;;  %v2592_v29 = vld [vmem:[#allocation2 + $0x40] ss:$2 sm:$0xff]  ;;  %vm2192_vm8 = vcmp.gt.f32.partialorder %v2107_v13, 0.0 }
 0x306   : > { %v1548_v45 = vpop.permute.xlu0 %1547  ;;  %v1894_v20 = vsel %vm1865_vm9, %v1861_v23, %v1458_v46  ;;  %v2651_v28 = vmax.f32 %v2592_v29, %v2624_v15  ;;  %v2667_v8 = vmin.f32 %v2592_v29, %v2624_v15 }
 0x307   : > { %v2261_v7 = vmul.f32 1.442695, %v2224_v31  ;;  %v1921_v0 = vsel %vm1898_vm10, %v1888_v3, %v1548_v45  ;;  %v1927_v1 = vsel %vm1898_vm10, %v1894_v20, %v1560_v21 }
 0x308   : > { %v3091_v41 = vpop.eup %3090  ;;  %v1954_v26 = vsel %vm1931_vm11, %v1921_v0, %v1649_v58 }
 0x309   : > { %v3093_v52 = vpop.eup %3092  ;;  %v3000_v60 = vadd.f32 -1.0, %v3091_v41  ;;  %3094 = vpow2.f32 %v2261_v7  ;;  %2973 = vmatmul.msk.f32.gmra.mxu2 %vm1973_vm12, %v1954_v26 }
 0x30a   : > { %v2994_v12 = vadd.f32 -1.0, %v3093_v52  ;;  %v1365_v37 = vpop.permute.xlu2 %1364 }
 0x30b   : > { %v5101_v25 = vsel %vm2204_vm1, %v2143_v47, %v3000_v60  ;;  %v1363_v6 = vpop.permute.xlu1 %1362  ;;  %v1889_v60 = vsel %vm1865_vm9, %v4540_v11, %v1448_v16 }
 0x30c   : > { %2569 = vst.msk [vmem:[#allocation2 + $0x88] sm:$0xff] %vm1733_vm4, %v5101_v25  ;;  %v5106_v32 = vsel %vm2198_vm2, %v2125_v19, %v2994_v12  ;;  %v1796_v19 = vsel %vm1766_vm5, %v1763_v24, %v5884_v35 }
 0x30d   : > { %2563 = vst.msk [vmem:[#allocation2 + $0x58] sm:$0xff] %vm1733_vm4, %v5106_v32 }
 0x30e   : > { %v1661_v56 = vpop.permute.xlu0 %1660 }
 0x30f   : > { %v3095_v61 = vpop.eup %3094  ;;  %v1960_v38 = vsel %vm1931_vm11, %v1927_v1, %v1661_v56 }
 0x310   : > { %v2988_v39 = vadd.f32 -1.0, %v3095_v61  ;;  %2979 = vmatmul.msk.f32.gmra.mxu3 %vm1973_vm12, %v1960_v38  ;;  %v5886_v61 = vld [vmem:[#allocation104_spill] sm:$0xff] }
 0x311   : > { %v1731_v11 = vsel %vm1700_vm3, %v5812_v51, %v5886_v61 }
 0x312   : > { %v2352_v43 = vsel %vm2192_vm8, %v2107_v13, %v2988_v39  ;;  %v5885_v13 = vld [vmem:[#allocation156_spill] sm:$0xff]  ;;  %v5887_v39 = vld [vmem:[#allocation119_spill] sm:$0xff]  ;;  %v1665_v35 = vpop.permute.xlu2 %1664 }
 0x313   : > { %v2388_v46 = vsel %vm1733_vm4, %v2352_v43, 0.0  ;;  %v2453_v47 = vmul.f32 %v2352_v43, %v2352_v43  ;;  %2557 = vst.msk [vmem:[#allocation2 + $0x28] sm:$0xff] %vm1733_vm4, %v2352_v43  ;;  %v1550_v53 = vpop.permute.xlu1 %1549  ;;  %v1829_v21 = vsel %vm1799_vm6, %v1796_v19, %v5885_v13  ;;  %v1764_v29 = vsel %vm1733_vm4, %v1731_v11, %v5887_v39 }
 0x314   : > { %v2594_v33 = vld [vmem:[#allocation2 + $0x50] ss:$2 sm:$0xff]  ;;  %v2626_v42 = vld [vmem:[#allocation2 + $0x51] ss:$2 sm:$0xff]  ;;  %v5123_v40 = vadd.f32 %v2388_v46, %v2387_v9  ;;  %v2145_v58 = vpop.f32.mrf.mxu2  ;;  %v1862_v9 = vsel %vm1832_vm7, %v1829_v21, %v1363_v6  ;;  %v1922_v12 = vsel %vm1898_vm10, %v1889_v60, %v1550_v53  ;;  %v1797_v34 = vsel %vm1766_vm5, %v1764_v29, %v5888_v2  ;;  %v5891_v21 = vld [vmem:[#allocation128_spill] sm:$0xff] }
 0x315   : > { %v2652_v17 = vmax.f32 %v2594_v33, %v2626_v42  ;;  %v2668_v36 = vmin.f32 %v2594_v33, %v2626_v42  ;;  %v2489_v55 = vsel %vm1733_vm4, %v2453_v47, 0.0  ;;  %v2146_v62 = vadd.f32 %v4911_v44, %v2145_v58 }
 0x316   : > { %v5130_v31 = vadd.f32 %v2489_v55, %v5084_v49  ;;  %v1460_v3 = vpop.permute.xlu0 %1459  ;;  %v1830_v24 = vsel %vm1799_vm6, %v1797_v34, %v5889_v27  ;;  %v5890_v55 = vld [vmem:[#allocation103_spill] sm:$0xff] }
 0x317   : > { %v2681_v45 = vmax.f32 %v2651_v28, %v2652_v17  ;;  %v2697_v7 = vmin.f32 %v2667_v8, %v2668_v36  ;;  %v2237_v0 = vmin.f32 %v2146_v62, 0.0  ;;  %v1895_v41 = vsel %vm1865_vm9, %v1862_v9, %v1460_v3 }
 0x318   : > { %v1928_v52 = vsel %vm1898_vm10, %v1895_v41, %v1562_v22  ;;  %vm2205_vm13 = vcmp.gt.f32.partialorder %v2146_v62, 0.0  ;;  %v1863_v47 = vsel %vm1832_vm7, %v1830_v24, %v1365_v37  ;;  %v5893_v41 = vld [vmem:[#allocation158_spill] sm:$0xff] }
 0x319   : > { %2689 = vst.msk [vmem:[%s5050_s19 + $0x10] sm:$0xff] %vm1733_vm4, %v2681_v45  ;;  %v2287_v50 = vmul.f32 1.442695, %v2237_v0  ;;  %v5892_v45 = vld [vmem:[#allocation142_spill] sm:$0xff] }
 0x31a   : > { %2705 = vst.msk [vmem:[%s5056_s23 + $0x10] sm:$0xff] %vm1733_vm4, %v2697_v7  ;;  %v1566_v60 = vpop.permute.xlu2 %1565 }
 0x31b   : > { %3096 = vpow2.f32 %v2287_v50  ;;  %v2163_v10 = vpop.f32.mrf.mxu3  ;;  %v1663_v26 = vpop.permute.xlu1 %1662 }
 0x31c   : > { %v2164_v49 = vadd.f32 %v4911_v44, %v2163_v10  ;;  %v2127_v30 = vpop.f32.mrf.mxu1  ;;  %v1961_v63 = vsel %vm1931_vm11, %v1928_v52, %v1663_v26 }
 0x31d   : > { %v2128_v4 = vadd.f32 %v4911_v44, %v2127_v30  ;;  %2980 = vmatmul.msk.f32.gmra.mxu3 %vm1973_vm12, %v1961_v63 }
 0x31e   : > { %v2243_v18 = vmin.f32 %v2164_v49, 0.0  ;;  %v1651_v5 = vpop.permute.xlu0 %1650  ;;  %vm2211_vm14 = vcmp.gt.f32.partialorder %v2164_v49, 0.0 }
 0x31f   : > { %v2231_v6 = vmin.f32 %v2128_v4, 0.0  ;;  %v1955_v23 = vsel %vm1931_vm11, %v1922_v12, %v1651_v5  ;;  %vm2199_vm15 = vcmp.gt.f32.partialorder %v2128_v4, 0.0 }
 0x320   : > { %v2299_v20 = vmul.f32 1.442695, %v2243_v18  ;;  %2974 = vmatmul.msk.f32.gmra.mxu2 %vm1973_vm12, %v1955_v23 }
 0x321   : > { %v3097_v1 = vpop.eup %3096  ;;  %v2275_v56 = vmul.f32 1.442695, %v2231_v6 }
 0x322   : > { %v3001_v16 = vadd.f32 -1.0, %v3097_v1  ;;  %3098 = vpow2.f32 %v2299_v20  ;;  %v2109_v38 = vpop.f32.mrf.mxu0 }
 0x323   : > { %3100 = vpow2.f32 %v2275_v56  ;;  %v2110_v15 = vadd.f32 %v4911_v44, %v2109_v38  ;;  %v1564_v46 = vpop.permute.xlu1 %1563 }
 0x324   : > { %v5156_v43 = vsel %vm2205_vm13, %v2146_v62, %v3001_v16  ;;  %v1732_v62 = vsel %vm1700_vm3, %v5830_v57, %v5890_v55 }
 0x325   : > { %2570 = vst.msk [vmem:[#allocation2 + $0x90] sm:$0xff] %vm1733_vm4, %v5156_v43  ;;  %v2225_v51 = vmin.f32 %v2110_v15, 0.0  ;;  %v1765_v3 = vsel %vm1733_vm4, %v1732_v62, %v5891_v21  ;;  %vm2193_vm3 = vcmp.gt.f32.partialorder %v2110_v15, 0.0 }
 0x326   : > { %v1462_v53 = vpop.permute.xlu0 %1461  ;;  %v1798_v7 = vsel %vm1766_vm5, %v1765_v3, %v5892_v45  ;;  %v2394_v3 = vsel %vm1733_vm4, %v4998_v59, 0.0  ;;  %v2457_v45 = vmul.f32 %v5012_v48, %v5012_v48 }
 0x327   : > { %v2263_v19 = vmul.f32 1.442695, %v2225_v51  ;;  %v1896_v28 = vsel %vm1865_vm9, %v1863_v47, %v1462_v53  ;;  %v1831_v50 = vsel %vm1799_vm6, %v1798_v7, %v5893_v41  ;;  %v2600_v51 = vld [vmem:[#allocation2 + $0x80] ss:$2 sm:$0xff] }
 0x328   : > { %v3099_v8 = vpop.eup %3098  ;;  %v1929_v22 = vsel %vm1898_vm10, %v1896_v28, %v1564_v46  ;;  %v2632_v46 = vld [vmem:[#allocation2 + $0x81] ss:$2 sm:$0xff] }
 0x329   : > { %v3101_v33 = vpop.eup %3100  ;;  %v3007_v42 = vadd.f32 -1.0, %v3099_v8  ;;  %3102 = vpow2.f32 %v2263_v19  ;;  %v1962_v58 = vsel %vm1931_vm11, %v1929_v22, %v1665_v35  ;;  %v2456_v19 = vmul.f32 %v4998_v59, %v4998_v59 }
 0x32a   : > { %v2995_v17 = vadd.f32 -1.0, %v3101_v33  ;;  %2981 = vmatmul.msk.f32.gmra.mxu3 %vm1973_vm12, %v1962_v58  ;;  %v2655_v28 = vmax.f32 %v2600_v51, %v2632_v46  ;;  %v2671_v8 = vmin.f32 %v2600_v51, %v2632_v46  ;;  %v2396_v59 = vsel %vm1733_vm4, %v5012_v48, 0.0 }
 0x32b   : > { %v5167_v36 = vsel %vm2211_vm14, %v2164_v49, %v3007_v42  ;;  %v1464_v26 = vpop.permute.xlu1 %1463 }
 0x32c   : > { %2576 = vst.msk [vmem:[#allocation2 + $0xc0] sm:$0xff] %vm1733_vm4, %v5167_v36  ;;  %v5174_v13 = vsel %vm2199_vm15, %v2128_v4, %v2995_v17 }
 0x32d   : > { %2564 = vst.msk [vmem:[#allocation2 + $0x60] sm:$0xff] %vm1733_vm4, %v5174_v13 }
 0x32e   : > { %v1367_v9 = vpop.permute.xlu0 %1366 }
 0x32f   : > { %v3103_v0 = vpop.eup %3102  ;;  %v1864_v10 = vsel %vm1832_vm7, %v1831_v50, %v1367_v9 }
 0x330   : > { %v2989_v57 = vadd.f32 -1.0, %v3103_v0  ;;  %v1897_v63 = vsel %vm1865_vm9, %v1864_v10, %v1464_v26  ;;  %v2458_v0 = vmul.f32 %v5072_v54, %v5072_v54  ;;  %v2495_v10 = vsel %vm1733_vm4, %v2456_v19, 0.0 }
 0x331   : > { %v1930_v6 = vsel %vm1898_vm10, %v1897_v63, %v1566_v60  ;;  %v2620_v63 = vld [vmem:[#allocation2 + $0x21] ss:$2 sm:$0xff] }
 0x332   : > { %v2353_v52 = vsel %vm2193_vm3, %v2110_v15, %v2989_v57 }
 0x333   : > { %v2390_v49 = vsel %vm1733_vm4, %v2353_v52, 0.0  ;;  %v2454_v30 = vmul.f32 %v2353_v52, %v2353_v52  ;;  %2558 = vst.msk [vmem:[#allocation2 + $0x30] sm:$0xff] %vm1733_vm4, %v2353_v52 }
 0x334   : > { %v2391_v4 = vadd.f32 %v2390_v49, %v5123_v40  ;;  %v2148_v37 = vpop.f32.mrf.mxu2 }
 0x335   : > { %v2491_v12 = vsel %vm1733_vm4, %v2454_v30, 0.0  ;;  %v2149_v18 = vadd.f32 %v4911_v44, %v2148_v37  ;;  %v2588_v30 = vld [vmem:[#allocation2 + $0x20] ss:$2 sm:$0xff] }
 0x336   : > { %v2492_v5 = vadd.f32 %v2491_v12, %v5130_v31  ;;  %v1667_v23 = vpop.permute.xlu0 %1666  ;;  %v2497_v12 = vsel %vm1733_vm4, %v2457_v45, 0.0  ;;  %v2649_v48 = vmax.f32 %v2588_v30, %v2620_v63 }
 0x337   : > { %v2238_v20 = vmin.f32 %v2149_v18, 0.0  ;;  %v1963_v1 = vsel %vm1931_vm11, %v1930_v6, %v1667_v23  ;;  %vm2206_vm5 = vcmp.gt.f32.partialorder %v2149_v18, 0.0  ;;  %v2459_v6 = vmul.f32 %v5106_v32, %v5106_v32 }
 0x338   : > { %2982 = vmatmul.msk.f32.gmra.mxu3 %vm1973_vm12, %v1963_v1  ;;  %v2665_v23 = vmin.f32 %v2588_v30, %v2620_v63  ;;  %v5259_v30 = vld [vmem:[%s5398_s4] ss:$0 sm:$0xff] }
 0x339   : > { %v2289_v56 = vmul.f32 1.442695, %v2238_v20 }
 0x33b   : > { %3104 = vpow2.f32 %v2289_v56  ;;  %v2166_v61 = vpop.f32.mrf.mxu3  ;;  %v2112_v11 = vpop.f32.mrf.mxu0 }
 0x33c   : > { %v2167_v40 = vadd.f32 %v4911_v44, %v2166_v61  ;;  %v2113_v16 = vadd.f32 %v4911_v44, %v2112_v11  ;;  %v2460_v61 = vmul.f32 %v5174_v13, %v5174_v13 }
 0x33e   : > { %v2244_v38 = vmin.f32 %v2167_v40, 0.0  ;;  %v2226_v39 = vmin.f32 %v2113_v16, 0.0  ;;  %vm2212_vm6 = vcmp.gt.f32.partialorder %v2167_v40, 0.0  ;;  %vm2194_vm7 = vcmp.gt.f32.partialorder %v2113_v16, 0.0 }
 0x33f   : > { %v2503_v51 = vsel %vm1733_vm4, %v2460_v61, 0.0 }
 0x340   : > { %v2301_v29 = vmul.f32 1.442695, %v2244_v38  ;;  %v2265_v31 = vmul.f32 1.442695, %v2226_v39  ;;  %v2501_v39 = vsel %vm1733_vm4, %v2459_v6, 0.0 }
 0x341   : > { %v3105_v15 = vpop.eup %3104 }
 0x342   : > { %v3002_v2 = vadd.f32 -1.0, %v3105_v15  ;;  %3106 = vpow2.f32 %v2301_v29 }
 0x343   : > { %3108 = vpow2.f32 %v2265_v31 }
 0x344   : > { %v5197_v34 = vsel %vm2206_vm5, %v2149_v18, %v3002_v2  ;;  %v2398_v18 = vsel %vm1733_vm4, %v5072_v54, 0.0  ;;  %v2400_v54 = vsel %vm1733_vm4, %v5106_v32, 0.0  ;;  %v2402_v2 = vsel %vm1733_vm4, %v5174_v13, 0.0 }
 0x345   : > { %2571 = vst.msk [vmem:[#allocation2 + $0x98] sm:$0xff] %vm1733_vm4, %v5197_v34 }
 0x348   : > { %v3107_v27 = vpop.eup %3106 }
 0x349   : > { %v3109_v24 = vpop.eup %3108  ;;  %v3008_v47 = vadd.f32 -1.0, %v3107_v27 }
 0x34a   : > { %v2990_v53 = vadd.f32 -1.0, %v3109_v24 }
 0x34b   : > { %v5201_v35 = vsel %vm2212_vm6, %v2167_v40, %v3008_v47 }
 0x34c   : > { %v2602_v22 = vld [vmem:[#allocation2 + $0x90] ss:$2 sm:$0xff]  ;;  %v2634_v33 = vld [vmem:[#allocation2 + $0x91] ss:$2 sm:$0xff]  ;;  %2577 = vst.msk [vmem:[#allocation2 + $0xc8] sm:$0xff] %vm1733_vm4, %v5201_v35  ;;  %v2354_v42 = vsel %vm2194_vm7, %v2113_v16, %v2990_v53  ;;  %vm2550_vm7 = vcmask 58368  }
 0x34d   : > { %v2656_v58 = vmax.f32 %v2602_v22, %v2634_v33  ;;  %v2672_v17 = vmin.f32 %v2602_v22, %v2634_v33  ;;  %v2392_v55 = vsel %vm1733_vm4, %v2354_v42, 0.0  ;;  %v2455_v62 = vmul.f32 %v2354_v42, %v2354_v42  ;;  %2559 = vst.msk [vmem:[#allocation2 + $0x38] sm:$0xff] %vm1733_vm4, %v2354_v42  ;;  %v2130_v21 = vpop.f32.mrf.mxu1 }
 0x34e   : > { %v2393_v7 = vadd.f32 %v2392_v55, %v2391_v4  ;;  %v2131_v9 = vadd.f32 %v4911_v44, %v2130_v21 }
 0x34f   : > { %v2683_v41 = vmax.f32 %v2655_v28, %v2656_v58  ;;  %v2699_v50 = vmin.f32 %v2671_v8, %v2672_v17  ;;  %v2493_v57 = vsel %vm1733_vm4, %v2455_v62, 0.0 }
 0x350   : > { %v2395_v26 = vadd.f32 %v2394_v3, %v2393_v7  ;;  %v2494_v52 = vadd.f32 %v2493_v57, %v2492_v5  ;;  %v2232_v49 = vmin.f32 %v2131_v9, 0.0  ;;  %v2499_v5 = vsel %vm1733_vm4, %v2458_v0, 0.0 }
 0x351   : > { %2691 = vst.msk [vmem:[%s5050_s19 + $0x20] sm:$0xff] %vm1733_vm4, %v2683_v41  ;;  %vm2200_vm9 = vcmp.gt.f32.partialorder %v2131_v9, 0.0 }
 0x352   : > { %2707 = vst.msk [vmem:[%s5056_s23 + $0x20] sm:$0xff] %vm1733_vm4, %v2699_v50  ;;  %v2397_v60 = vadd.f32 %v2396_v59, %v2395_v26  ;;  %v2496_v4 = vadd.f32 %v2495_v10, %v2494_v52  ;;  %v2277_v37 = vmul.f32 1.442695, %v2232_v49 }
 0x354   : > { %v2498_v20 = vadd.f32 %v2497_v12, %v2496_v4  ;;  %v2590_v1 = vld [vmem:[#allocation2 + $0x30] ss:$2 sm:$0xff]  ;;  %v2622_v56 = vld [vmem:[#allocation2 + $0x31] ss:$2 sm:$0xff]  ;;  %3110 = vpow2.f32 %v2277_v37  ;;  %v2399_v16 = vadd.f32 %v2398_v18, %v2397_v60 }
 0x355   : > { %v2650_v11 = vmax.f32 %v2590_v1, %v2622_v56  ;;  %v2666_v40 = vmin.f32 %v2590_v1, %v2622_v56 }
 0x356   : > { %v2500_v38 = vadd.f32 %v2499_v5, %v2498_v20  ;;  %v2401_v15 = vadd.f32 %v2400_v54, %v2399_v16 }
 0x357   : > { %v2680_v29 = vmax.f32 %v2649_v48, %v2650_v11  ;;  %v2696_v31 = vmin.f32 %v2665_v23, %v2666_v40 }
 0x358   : > { %v2502_v27 = vadd.f32 %v2501_v39, %v2500_v38  ;;  %v2169_v24 = vpop.f32.mrf.mxu3  ;;  %v2403_v46 = vadd.f32 %v2402_v2, %v2401_v15  ;;  %v2464_v15 = vmul.f32 %v5064_v14, %v5064_v14 }
 0x359   : > { %2688 = vst.msk [vmem:[%s5050_s19 + $0x8] sm:$0xff] %vm1733_vm4, %v2680_v29  ;;  %v2170_v47 = vadd.f32 %v4911_v44, %v2169_v24 }
 0x35a   : > { %v3111_v53 = vpop.eup %3110  ;;  %2704 = vst.msk [vmem:[%s5056_s23 + $0x8] sm:$0xff] %vm1733_vm4, %v2696_v31  ;;  %v2504_v32 = vadd.f32 %v2503_v51, %v2502_v27  ;;  %v2465_v27 = vmul.f32 %v5101_v25, %v5101_v25 }
 0x35b   : > { %v2996_v19 = vadd.f32 -1.0, %v3111_v53  ;;  %v2245_v28 = vmin.f32 %v2170_v47, 0.0  ;;  %v2151_v8 = vpop.f32.mrf.mxu2  ;;  %vm2213_vm10 = vcmp.gt.f32.partialorder %v2170_v47, 0.0 }
 0x35c   : > { %v2152_v22 = vadd.f32 %v4911_v44, %v2151_v8  ;;  %v2511_v8 = vsel %vm1733_vm4, %v2464_v15, 0.0 }
 0x35d   : > { %v2360_v13 = vsel %vm2200_vm9, %v2131_v9, %v2996_v19  ;;  %v2303_v33 = vmul.f32 1.442695, %v2245_v28  ;;  %v2410_v28 = vsel %vm1733_vm4, %v5064_v14, 0.0  ;;  %v2416_v14 = vsel %vm1733_vm4, %v5197_v34, 0.0 }
 0x35e   : > { %v2404_v42 = vsel %vm1733_vm4, %v2360_v13, 0.0  ;;  %v2461_v58 = vmul.f32 %v2360_v13, %v2360_v13  ;;  %2565 = vst.msk [vmem:[#allocation2 + $0x68] sm:$0xff] %vm1733_vm4, %v2360_v13  ;;  %v2239_v17 = vmin.f32 %v2152_v22, 0.0  ;;  %vm2207_vm11 = vcmp.gt.f32.partialorder %v2152_v22, 0.0 }
 0x35f   : > { %v2405_v55 = vadd.f32 %v2404_v42, %v2403_v46  ;;  %3112 = vpow2.f32 %v2303_v33  ;;  %v2466_v46 = vmul.f32 %v5156_v43, %v5156_v43  ;;  %v2513_v33 = vsel %vm1733_vm4, %v2465_v27, 0.0 }
 0x360   : > { %v2505_v62 = vsel %vm1733_vm4, %v2461_v58, 0.0  ;;  %v2291_v21 = vmul.f32 1.442695, %v2239_v17  ;;  %v2414_v42 = vsel %vm1733_vm4, %v5156_v43, 0.0  ;;  %v2608_v58 = vld [vmem:[#allocation2 + $0xc0] ss:$2 sm:$0xff] }
 0x361   : > { %v2506_v3 = vadd.f32 %v2505_v62, %v2504_v32  ;;  %v2640_v17 = vld [vmem:[#allocation2 + $0xc1] ss:$2 sm:$0xff] }
 0x362   : > { %3114 = vpow2.f32 %v2291_v21  ;;  %v2133_v45 = vpop.f32.mrf.mxu1  ;;  %v2515_v21 = vsel %vm1733_vm4, %v2466_v46, 0.0 }
 0x363   : > { %v2134_v7 = vadd.f32 %v4911_v44, %v2133_v45 }
 0x365   : > { %v3113_v0 = vpop.eup %3112  ;;  %v2233_v41 = vmin.f32 %v2134_v7, 0.0  ;;  %vm2201_vm12 = vcmp.gt.f32.partialorder %v2134_v7, 0.0  ;;  %v2628_v45 = vld [vmem:[#allocation2 + $0x61] ss:$2 sm:$0xff] }
 0x366   : > { %v3009_v9 = vadd.f32 -1.0, %v3113_v0 }
 0x367   : > { %v2279_v50 = vmul.f32 1.442695, %v2233_v41 }
 0x368   : > { %v3115_v57 = vpop.eup %3114  ;;  %v5248_v10 = vsel %vm2213_vm10, %v2170_v47, %v3009_v9 }
 0x369   : > { %2578 = vst.msk [vmem:[#allocation2 + $0xd0] sm:$0xff] %vm1733_vm4, %v5248_v10  ;;  %v3003_v26 = vadd.f32 -1.0, %v3115_v57  ;;  %3116 = vpow2.f32 %v2279_v50  ;;  %v2659_v57 = vmax.f32 %v2608_v58, %v2640_v17 }
 0x36b   : > { %v5252_v52 = vsel %vm2207_vm11, %v2152_v22, %v3003_v26  ;;  %v2412_v22 = vsel %vm1733_vm4, %v5101_v25, 0.0  ;;  %v2467_v25 = vmul.f32 %v5197_v34, %v5197_v34  ;;  %v2675_v26 = vmin.f32 %v2608_v58, %v2640_v17 }
 0x36c   : > { %2572 = vst.msk [vmem:[#allocation2 + $0xa0] sm:$0xff] %vm1733_vm4, %v5252_v52  ;;  %v2468_v34 = vmul.f32 %v5252_v52, %v5252_v52 }
 0x36f   : > { %v3117_v44 = vpop.eup %3116 }
 0x370   : > { %v2997_v49 = vadd.f32 -1.0, %v3117_v44  ;;  %v2154_v59 = vpop.f32.mrf.mxu2 }
 0x371   : > { %v2155_v63 = vadd.f32 %v5259_v30, %v2154_v59 }
 0x372   : > { %v2361_v60 = vsel %vm2201_vm12, %v2134_v7, %v2997_v49 }
 0x373   : > { %2566 = vst.msk [vmem:[#allocation2 + $0x70] sm:$0xff] %vm1733_vm4, %v2361_v60  ;;  %v2240_v4 = vmin.f32 %v2155_v63, 0.0  ;;  %vm2208_vm1 = vcmp.gt.f32.partialorder %v2155_v63, 0.0  ;;  %v2462_v16 = vmul.f32 %v2361_v60, %v2361_v60  ;;  %v2406_v39 = vsel %vm1733_vm4, %v2361_v60, 0.0 }
 0x374   : > { %v2172_v12 = vpop.f32.mrf.mxu3  ;;  %v2407_v24 = vadd.f32 %v2406_v39, %v2405_v55 }
 0x375   : > { %v2293_v37 = vmul.f32 1.442695, %v2240_v4  ;;  %v2173_v18 = vadd.f32 %v5259_v30, %v2172_v12  ;;  %v2507_v2 = vsel %vm1733_vm4, %v2462_v16, 0.0 }
 0x376   : > { %v2508_v32 = vadd.f32 %v2507_v2, %v2506_v3  ;;  %v2596_v3 = vld [vmem:[#allocation2 + $0x60] ss:$2 sm:$0xff] }
 0x377   : > { %3118 = vpow2.f32 %v2293_v37  ;;  %v2136_v5 = vpop.f32.mrf.mxu1  ;;  %v2246_v6 = vmin.f32 %v2173_v18, 0.0  ;;  %vm2214_vm2 = vcmp.gt.f32.partialorder %v2173_v18, 0.0  ;;  %v2653_v59 = vmax.f32 %v2596_v3, %v2628_v45 }
 0x378   : > { %v2137_v48 = vadd.f32 %v5259_v30, %v2136_v5  ;;  %v2669_v37 = vmin.f32 %v2596_v3, %v2628_v45 }
 0x379   : > { %v2305_v23 = vmul.f32 1.442695, %v2246_v6 }
 0x37a   : > { %v2234_v20 = vmin.f32 %v2137_v48, 0.0  ;;  %vm2202_vm8 = vcmp.gt.f32.partialorder %v2137_v48, 0.0 }
 0x37b   : > { %3120 = vpow2.f32 %v2305_v23 }
 0x37c   : > { %v2281_v1 = vmul.f32 1.442695, %v2234_v20 }
 0x37d   : > { %v3119_v56 = vpop.eup %3118 }
 0x37e   : > { %v3004_v61 = vadd.f32 -1.0, %v3119_v56  ;;  %3122 = vpow2.f32 %v2281_v1  ;;  %v2517_v56 = vsel %vm1733_vm4, %v2467_v25, 0.0 }
 0x380   : > { %v5265_v11 = vsel %vm2208_vm1, %v2155_v63, %v3004_v61  ;;  %v2418_v61 = vsel %vm1733_vm4, %v5252_v52, 0.0 }
 0x381   : > { %2573 = vst.msk [vmem:[#allocation2 + $0xa8] sm:$0xff] %vm1733_vm4, %v5265_v11  ;;  %v3121_v40 = vpop.eup %3120  ;;  %v2420_v25 = vsel %vm1733_vm4, %v5265_v11, 0.0 }
 0x382   : > { %v3010_v54 = vadd.f32 -1.0, %v3121_v40 }
 0x384   : > { %v3123_v38 = vpop.eup %3122  ;;  %v5270_v29 = vsel %vm2214_vm2, %v2173_v18, %v3010_v54 }
 0x385   : > { %v2998_v31 = vadd.f32 -1.0, %v3123_v38  ;;  %2579 = vst.msk [vmem:[#allocation2 + $0xd8] sm:$0xff] %vm1733_vm4, %v5270_v29 }
 0x387   : > { %v2362_v51 = vsel %vm2202_vm8, %v2137_v48, %v2998_v31  ;;  %v2519_v31 = vsel %vm1733_vm4, %v2468_v34, 0.0 }
 0x388   : > { %v2408_v47 = vsel %vm1733_vm4, %v2362_v51, 0.0  ;;  %v2463_v53 = vmul.f32 %v2362_v51, %v2362_v51  ;;  %2567 = vst.msk [vmem:[#allocation2 + $0x78] sm:$0xff] %vm1733_vm4, %v2362_v51 }
 0x389   : > { %v2409_v19 = vadd.f32 %v2408_v47, %v2407_v24 }
 0x38a   : > { %v2509_v13 = vsel %vm1733_vm4, %v2463_v53, 0.0 }
 0x38b   : > { %v2411_v55 = vadd.f32 %v2410_v28, %v2409_v19  ;;  %v2510_v62 = vadd.f32 %v2509_v13, %v2508_v32 }
 0x38c   : > { %v2157_v7 = vpop.f32.mrf.mxu2  ;;  %v2610_v0 = vld [vmem:[#allocation2 + $0xd0] ss:$2 sm:$0xff]  ;;  %v2642_v41 = vld [vmem:[#allocation2 + $0xd1] ss:$2 sm:$0xff] }
 0x38d   : > { %v2413_v9 = vadd.f32 %v2412_v22, %v2411_v55  ;;  %v2512_v50 = vadd.f32 %v2511_v8, %v2510_v62  ;;  %v2158_v43 = vadd.f32 %v5259_v30, %v2157_v7  ;;  %v2660_v44 = vmax.f32 %v2610_v0, %v2642_v41 }
 0x38e   : > { %v2676_v49 = vmin.f32 %v2610_v0, %v2642_v41 }
 0x38f   : > { %v2415_v63 = vadd.f32 %v2414_v42, %v2413_v9  ;;  %v2514_v60 = vadd.f32 %v2513_v33, %v2512_v50  ;;  %v2241_v4 = vmin.f32 %v2158_v43, 0.0  ;;  %v2685_v12 = vmax.f32 %v2659_v57, %v2660_v44  ;;  %v2598_v5 = vld [vmem:[#allocation2 + $0x70] ss:$2 sm:$0xff]  ;;  %v2630_v6 = vld [vmem:[#allocation2 + $0x71] ss:$2 sm:$0xff] }
 0x390   : > { %v2701_v18 = vmin.f32 %v2675_v26, %v2676_v49  ;;  %v2654_v23 = vmax.f32 %v2598_v5, %v2630_v6  ;;  %v2670_v20 = vmin.f32 %v2598_v5, %v2630_v6  ;;  %vm2209_vm13 = vcmp.gt.f32.partialorder %v2158_v43, 0.0 }
 0x391   : > { %v2516_v48 = vadd.f32 %v2515_v21, %v2514_v60  ;;  %v2295_v1 = vmul.f32 1.442695, %v2241_v4  ;;  %2693 = vst.msk [vmem:[%s5050_s19 + $0x30] sm:$0xff] %vm1733_vm4, %v2685_v12  ;;  %v2417_v40 = vadd.f32 %v2416_v14, %v2415_v63  ;;  %v2469_v21 = vmul.f32 %v5265_v11, %v5265_v11 }
 0x392   : > { %2709 = vst.msk [vmem:[%s5056_s23 + $0x30] sm:$0xff] %vm1733_vm4, %v2701_v18  ;;  %v2682_v16 = vmax.f32 %v2653_v59, %v2654_v23  ;;  %v2698_v54 = vmin.f32 %v2669_v37, %v2670_v20  ;;  %v2472_v11 = vmul.f32 %v5167_v36, %v5167_v36  ;;  %v2473_v37 = vmul.f32 %v5201_v35, %v5201_v35  ;;  %v2636_v23 = vld [vmem:[#allocation2 + $0xa1] ss:$2 sm:$0xff] }
 0x393   : > { %3124 = vpow2.f32 %v2295_v1  ;;  %v2518_v38 = vadd.f32 %v2517_v56, %v2516_v48  ;;  %v2175_v39 = vpop.f32.mrf.mxu3  ;;  %v2419_v15 = vadd.f32 %v2418_v61, %v2417_v40  ;;  %v2521_v57 = vsel %vm1733_vm4, %v2469_v21, 0.0  ;;  %v2604_v48 = vld [vmem:[#allocation2 + $0xa0] ss:$2 sm:$0xff] }
 0x394   : > { %v2176_v2 = vadd.f32 %v5259_v30, %v2175_v39  ;;  %2690 = vst.msk [vmem:[%s5050_s19 + $0x18] sm:$0xff] %vm1733_vm4, %v2682_v16  ;;  %v2426_v18 = vsel %vm1733_vm4, %v5167_v36, 0.0  ;;  %v2474_v5 = vmul.f32 %v5248_v10, %v5248_v10  ;;  %v2527_v56 = vsel %vm1733_vm4, %v2472_v11, 0.0 }
 0x395   : > { %v2520_v27 = vadd.f32 %v2519_v31, %v2518_v38  ;;  %2706 = vst.msk [vmem:[%s5056_s23 + $0x18] sm:$0xff] %vm1733_vm4, %v2698_v54  ;;  %v2421_v50 = vadd.f32 %v2420_v25, %v2419_v15  ;;  %v2428_v61 = vsel %vm1733_vm4, %v5201_v35, 0.0  ;;  %v2529_v40 = vsel %vm1733_vm4, %v2473_v37, 0.0 }
 0x396   : > { %v2247_v52 = vmin.f32 %v2176_v2, 0.0  ;;  %vm2215_vm14 = vcmp.gt.f32.partialorder %v2176_v2, 0.0  ;;  %v2430_v36 = vsel %vm1733_vm4, %v5248_v10, 0.0  ;;  %v2531_v39 = vsel %vm1733_vm4, %v2474_v5, 0.0 }
 0x397   : > { %v2522_v59 = vadd.f32 %v2521_v57, %v2520_v27  ;;  %v2657_v31 = vmax.f32 %v2604_v48, %v2636_v23  ;;  %v2432_v15 = vsel %vm1733_vm4, %v5270_v29, 0.0 }
 0x398   : > { %v2307_v24 = vmul.f32 1.442695, %v2247_v52 }
 0x399   : > { %v3125_v51 = vpop.eup %3124 }
 0x39a   : > { %v3005_v46 = vadd.f32 -1.0, %v3125_v51  ;;  %3126 = vpow2.f32 %v2307_v24 }
 0x39c   : > { %v2369_v47 = vsel %vm2209_vm13, %v2158_v43, %v3005_v46 }
 0x39d   : > { %2574 = vst.msk [vmem:[#allocation2 + $0xb0] sm:$0xff] %vm1733_vm4, %v2369_v47  ;;  %v2470_v14 = vmul.f32 %v2369_v47, %v2369_v47  ;;  %v2422_v0 = vsel %vm1733_vm4, %v2369_v47, 0.0 }
 0x39e   : > { %v2423_v49 = vadd.f32 %v2422_v0, %v2421_v50 }
 0x39f   : > { %v2523_v26 = vsel %vm1733_vm4, %v2470_v14, 0.0 }
 0x3a0   : > { %v3127_v53 = vpop.eup %3126  ;;  %v2178_v32 = vpop.f32.mrf.mxu3  ;;  %v2524_v34 = vadd.f32 %v2523_v26, %v2522_v59 }
 0x3a1   : > { %v3011_v19 = vadd.f32 -1.0, %v3127_v53  ;;  %v2179_v28 = vadd.f32 %v5259_v30, %v2178_v32  ;;  %v2475_v32 = vmul.f32 %v5270_v29, %v5270_v29 }
 0x3a3   : > { %v5315_v8 = vsel %vm2215_vm14, %v2176_v2, %v3011_v19  ;;  %v2248_v22 = vmin.f32 %v2179_v28, 0.0  ;;  %v2160_v13 = vpop.f32.mrf.mxu2  ;;  %vm2216_vm15 = vcmp.gt.f32.partialorder %v2179_v28, 0.0  ;;  %v2673_v2 = vmin.f32 %v2604_v48, %v2636_v23 }
 0x3a4   : > { %2580 = vst.msk [vmem:[#allocation2 + $0xe0] sm:$0xff] %vm1733_vm4, %v5315_v8  ;;  %v2161_v33 = vadd.f32 %v5259_v30, %v2160_v13  ;;  %v2434_v29 = vsel %vm1733_vm4, %v5315_v8, 0.0 }
 0x3a5   : > { %v2309_v42 = vmul.f32 1.442695, %v2248_v22 }
 0x3a6   : > { %v2242_v58 = vmin.f32 %v2161_v33, 0.0  ;;  %vm2210_vm3 = vcmp.gt.f32.partialorder %v2161_v33, 0.0 }
 0x3a7   : > { %3128 = vpow2.f32 %v2309_v42 }
 0x3a8   : > { %v2297_v17 = vmul.f32 1.442695, %v2242_v58  ;;  %v2533_v58 = vsel %vm1733_vm4, %v2475_v32, 0.0 }
 0x3aa   : > { %3130 = vpow2.f32 %v2297_v17  ;;  %v2476_v17 = vmul.f32 %v5315_v8, %v5315_v8 }
 0x3ac   : > { %v2535_v21 = vsel %vm1733_vm4, %v2476_v17, 0.0 }
 0x3ad   : > { %v3129_v55 = vpop.eup %3128  ;;  %v2181_v62 = vpop.f32.mrf.mxu3 }
 0x3ae   : > { %v3012_v3 = vadd.f32 -1.0, %v3129_v55  ;;  %v2182_v45 = vadd.f32 %v5259_v30, %v2181_v62 }
 0x3b0   : > { %v3131_v7 = vpop.eup %3130  ;;  %v5326_v41 = vsel %vm2216_vm15, %v2179_v28, %v3012_v3  ;;  %v2249_v9 = vmin.f32 %v2182_v45, 0.0  ;;  %vm2217_vm5 = vcmp.gt.f32.partialorder %v2182_v45, 0.0 }
 0x3b1   : > { %2581 = vst.msk [vmem:[#allocation2 + $0xe8] sm:$0xff] %vm1733_vm4, %v5326_v41  ;;  %v3006_v43 = vadd.f32 -1.0, %v3131_v7  ;;  %v2477_v14 = vmul.f32 %v5326_v41, %v5326_v41 }
 0x3b2   : > { %v2311_v44 = vmul.f32 1.442695, %v2249_v9 }
 0x3b3   : > { %v2370_v63 = vsel %vm2210_vm3, %v2161_v33, %v3006_v43  ;;  %v2537_v0 = vsel %vm1733_vm4, %v2477_v14, 0.0 }
 0x3b4   : > { %v2424_v60 = vsel %vm1733_vm4, %v2370_v63, 0.0  ;;  %v2471_v4 = vmul.f32 %v2370_v63, %v2370_v63  ;;  %2575 = vst.msk [vmem:[#allocation2 + $0xb8] sm:$0xff] %vm1733_vm4, %v2370_v63  ;;  %3132 = vpow2.f32 %v2311_v44 }
 0x3b5   : > { %v2425_v12 = vadd.f32 %v2424_v60, %v2423_v49 }
 0x3b6   : > { %v2525_v6 = vsel %vm1733_vm4, %v2471_v4, 0.0 }
 0x3b7   : > { %v2427_v20 = vadd.f32 %v2426_v18, %v2425_v12  ;;  %v2526_v1 = vadd.f32 %v2525_v6, %v2524_v34 }
 0x3b8   : > { %v2612_v37 = vld [vmem:[#allocation2 + $0xe0] ss:$2 sm:$0xff]  ;;  %v2644_v34 = vld [vmem:[#allocation2 + $0xe1] ss:$2 sm:$0xff] }
 0x3b9   : > { %v2429_v16 = vadd.f32 %v2428_v61, %v2427_v20  ;;  %v2528_v54 = vadd.f32 %v2527_v56, %v2526_v1  ;;  %v2661_v20 = vmax.f32 %v2612_v37, %v2644_v34  ;;  %v2677_v1 = vmin.f32 %v2612_v37, %v2644_v34 }
 0x3ba   : > { %v3133_v38 = vpop.eup %3132 }
 0x3bb   : > { %v2431_v27 = vadd.f32 %v2430_v36, %v2429_v16  ;;  %v2530_v52 = vadd.f32 %v2529_v40, %v2528_v54  ;;  %v2606_v24 = vld [vmem:[#allocation2 + $0xb0] ss:$2 sm:$0xff]  ;;  %v2638_v35 = vld [vmem:[#allocation2 + $0xb1] ss:$2 sm:$0xff]  ;;  %v3013_v51 = vadd.f32 -1.0, %v3133_v38  ;;  %v2184_v46 = vpop.f32.mrf.mxu3 }
 0x3bc   : > { %v2658_v47 = vmax.f32 %v2606_v24, %v2638_v35  ;;  %v2674_v53 = vmin.f32 %v2606_v24, %v2638_v35  ;;  %v2185_v10 = vadd.f32 %v5259_v30, %v2184_v46 }
 0x3bd   : > { %v2532_v19 = vadd.f32 %v2531_v39, %v2530_v52  ;;  %v2377_v28 = vsel %vm2217_vm5, %v2182_v45, %v3013_v51  ;;  %v2433_v22 = vadd.f32 %v2432_v15, %v2431_v27  ;;  %v2436_v45 = vsel %vm1733_vm4, %v5326_v41, 0.0 }
 0x3be   : > { %v2684_v13 = vmax.f32 %v2657_v31, %v2658_v47  ;;  %v2700_v33 = vmin.f32 %v2673_v2, %v2674_v53  ;;  %2582 = vst.msk [vmem:[#allocation2 + $0xf0] sm:$0xff] %vm1733_vm4, %v2377_v28  ;;  %v2250_v42 = vmin.f32 %v2185_v10, 0.0  ;;  %v2478_v9 = vmul.f32 %v2377_v28, %v2377_v28 }
 0x3bf   : > { %v2534_v55 = vadd.f32 %v2533_v58, %v2532_v19  ;;  %v2435_v62 = vadd.f32 %v2434_v29, %v2433_v22  ;;  %v2438_v8 = vsel %vm1733_vm4, %v2377_v28, 0.0  ;;  %vm2218_vm6 = vcmp.gt.f32.partialorder %v2185_v10, 0.0 }
 0x3c0   : > { %2692 = vst.msk [vmem:[%s5050_s19 + $0x28] sm:$0xff] %vm1733_vm4, %v2684_v13  ;;  %v2313_v30 = vmul.f32 1.442695, %v2250_v42  ;;  %v2539_v44 = vsel %vm1733_vm4, %v2478_v9, 0.0 }
 0x3c1   : > { %2708 = vst.msk [vmem:[%s5056_s23 + $0x28] sm:$0xff] %vm1733_vm4, %v2700_v33  ;;  %v2536_v3 = vadd.f32 %v2535_v21, %v2534_v55  ;;  %v2437_v7 = vadd.f32 %v2436_v45, %v2435_v62 }
 0x3c2   : > { %3134 = vpow2.f32 %v2313_v30 }
 0x3c3   : > { %v2538_v50 = vadd.f32 %v2537_v0, %v2536_v3  ;;  %v2439_v57 = vadd.f32 %v2438_v8, %v2437_v7 }
 0x3c5   : > { %v2540_v41 = vadd.f32 %v2539_v44, %v2538_v50 }
 0x3c8   : > { %v3135_v25 = vpop.eup %3134 }
 0x3c9   : > { %v3014_v43 = vadd.f32 -1.0, %v3135_v25 }
 0x3cb   : > { %v2378_v26 = vsel %vm2218_vm6, %v2185_v10, %v3014_v43 }
 0x3cc   : > { %v2440_v49 = vsel %vm1733_vm4, %v2378_v26, 0.0  ;;  %v2479_v59 = vmul.f32 %v2378_v26, %v2378_v26  ;;  %2583 = vst.msk [vmem:[#allocation2 + $0xf8] sm:$0xff] %vm1733_vm4, %v2378_v26 }
 0x3cd   : > { %v2441_v63 = vadd.f32 %v2440_v49, %v2439_v57 }
 0x3ce   : > { %v2541_v11 = vsel %vm1733_vm4, %v2479_v59, 0.0 }
 0x3cf   : > { %v2442_v60 = vrot.slane %v2441_v63, 4  ;;  %v2542_v4 = vadd.f32 %v2541_v11, %v2540_v41 }
 0x3d1   : > { %v2443_v12 = vadd.f32 %v2442_v60, %v2441_v63  ;;  %v2543_v18 = vrot.slane %v2542_v4, 4 }
 0x3d3   : > { %v2444_v5 = vrot.slane %v2443_v12, 2  ;;  %v2544_v6 = vadd.f32 %v2543_v18, %v2542_v4  ;;  %v2614_v48 = vld [vmem:[#allocation2 + $0xf0] ss:$2 sm:$0xff]  ;;  %v2646_v23 = vld [vmem:[#allocation2 + $0xf1] ss:$2 sm:$0xff] }
 0x3d4   : > { %v2662_v56 = vmax.f32 %v2614_v48, %v2646_v23  ;;  %v2678_v61 = vmin.f32 %v2614_v48, %v2646_v23 }
 0x3d5   : > { %v2445_v40 = vadd.f32 %v2444_v5, %v2443_v12  ;;  %v2545_v16 = vrot.slane %v2544_v6, 2 }
 0x3d6   : > { %v2686_v54 = vmax.f32 %v2661_v20, %v2662_v56  ;;  %v2702_v38 = vmin.f32 %v2677_v1, %v2678_v61 }
 0x3d7   : > { %v2446_v36 = vrot.slane %v2445_v40, 1  ;;  %v2546_v39 = vadd.f32 %v2545_v16, %v2544_v6 }
 0x3d8   : > { %2694 = vst.msk [vmem:[%s5050_s19 + $0x38] sm:$0xff] %vm1733_vm4, %v2686_v54 }
 0x3d9   : > { %v2547_v31 = vrot.slane %v2546_v39, 1  ;;  %2710 = vst.msk [vmem:[%s5056_s23 + $0x38] sm:$0xff] %vm1733_vm4, %v2702_v38  ;;  %v2447_v15 = vadd.f32 %v2446_v36, %v2445_v40 }
 0x3db   : > { %v2548_v2 = vadd.f32 %v2547_v31, %v2546_v39 }
 0x3dd   : > { %v2549_v27 = vsel %vm571_vm0, %v2447_v15, %v2548_v2 }
 0x3de   : > { %2551 = vst.msk [vmem:[%s486_s11] sm:$0x3] %vm2550_vm7, %v2549_v27 }
 0x3df PF: > { %s18_s26 = sadd.s32 1, %s3159_s26   ;;  %s5894_s24 = smov %s3155_s25 }
 0x3e0   : > { %p15_p5 = scmp.ge.s32.totalorder %s18_s26, 4   ;;  %s5895_s25 = smov %s5897_s27 }
 0x3e2   :  { %17 = sbr.rel (!%p15_p5) target bundleno = 2 (0x2), region = 131 }

</bundles_post_ra>
